<compile_context>
chip_gen: v7x
topology: tpu7x:2x2x1
jax: 0.10.0
libtpu: 0.0.40
codegen_flags: <defaults>
</compile_context>

<pallas_src>
import functools

import jax
import jax.numpy as jnp
import numpy as np
from jax.experimental import pallas as pl
from jax.experimental.pallas import tpu as pltpu


def _conv3x3_layer(pad_ref, wk_ref, b_ref, *, H, WP, col0, relu):
    """One 3x3 'same' conv over a zero-padded (H+2, WP, Cin) bf16 VMEM slab.

    wk_ref: (3, 3*Cin, Cout) bf16, indexed [dx, dy*Cin + cin, cout] -- the row
            layout matches the dy-concatenated LHS built below.
    b_ref:  (1, Cout) f32.
    Returns (H, WP, Cout) f32 where output column j lives at column j + col0;
    columns outside [col0, col0 + W) hold don't-care values.
    """
    Cin3 = wk_ref.shape[1]
    Cout = wk_ref.shape[2]
    M = H * WP

    # dy-fused im2col: three free row-shifted views of the slab, concatenated
    # on the (128-aligned) channel/lane axis, then a free sublane-aligned merge
    # (WP % 8 == 0) -> a single (M, 3*Cin) LHS feeding the MXU with K = 384.
    lhs = jnp.concatenate(
        [pad_ref[0:H], pad_ref[1:H + 1], pad_ref[2:H + 2]], axis=-1
    ).reshape(M, Cin3)

    # Bias-initialized f32 accumulator at padded width (full-vreg VPU adds).
    acc = jnp.broadcast_to(b_ref[...].astype(jnp.float32), (M, Cout))
    for dx in range(3):
        p = jnp.dot(lhs, wk_ref[dx], preferred_element_type=jnp.float32)
        # Align tap dx with the accumulator: acc row (y*WP + c) needs
        # p row (y*WP + c - col0 + dx), i.e. jnp.roll by (col0 - dx).
        # pltpu.roll (XLU rotate) == jnp.roll; wrapped rows only land in
        # columns outside the valid window and are discarded below.
        shift = (col0 - dx) % M
        if shift:
            p = pltpu.roll(p, shift, axis=0)
        acc = acc + p
    if relu:
        acc = jnp.maximum(acc, 0.0)
    return acc.reshape(H, WP, Cout)


def _denoise_kernel(x_ref, w1_ref, b1_ref, w2_ref, b2_ref, w3_ref, b3_ref,
                    o_ref, pad1, pad2, pad3, *, H, W, WP):
    CP = pad1.shape[-1]

    # --- Layer 1: in-VMEM zero padding of the (channel-padded) input block.
    # Full zero of this slab is only 10 unmasked vreg stores; done every step
    # (scratch persists across steps / per-core instances under "parallel").
    pad1[...] = jnp.zeros_like(pad1)
    pad1[1:H + 1, 1:W + 1, :] = x_ref[0]
    a1 = _conv3x3_layer(pad1, w1_ref, b1_ref, H=H, WP=WP, col0=1, relu=True)

    # Interior-column mask: columns [1, W] keep the activation, everything
    # else (left/right halo + WP alignment padding) is written as zero, so the
    # activation store below is one dense full-width write per row-band and
    # doubles as the column-halo zeroing (no full-slab zero, no masked vst).
    col = jax.lax.broadcasted_iota(jnp.int32, (1, WP, CP), 1)
    interior = jnp.logical_and(col >= 1, col <= W)
    zrow = jnp.zeros((1, WP, CP), dtype=pad2.dtype)

    # --- Layer 2: activation never leaves VMEM; bf16 for the MXU. -----------
    pad2[1:H + 1, :, :] = jnp.where(interior, a1, 0.0).astype(pad2.dtype)
    pad2[0:1, :, :] = zrow
    pad2[H + 1:H + 2, :, :] = zrow
    a2 = _conv3x3_layer(pad2, w2_ref, b2_ref, H=H, WP=WP, col0=1, relu=True)

    # --- Layer 3 (no ReLU): col0=0 so the final slice is sublane-aligned. ---
    pad3[1:H + 1, :, :] = jnp.where(interior, a2, 0.0).astype(pad3.dtype)
    pad3[0:1, :, :] = zrow
    pad3[H + 1:H + 2, :, :] = zrow
    a3 = _conv3x3_layer(pad3, w3_ref, b3_ref, H=H, WP=WP, col0=0, relu=False)

    # Only HBM store of the whole network: (1, H, W, 128) f32, lane-dense
    # (the zero-padded output channels are dropped by the wrapper).
    o_ref[...] = a3[:, 0:W, :].reshape(1, H, W, CP).astype(o_ref.dtype)


def _fuse_weight(w, cp):
    """(3,3,cin,cout) -> (3, 3*cp, cp) bf16, indexed [dx, dy*cp + cin, cout]."""
    kh, kw, cin, cout = w.shape
    wp = jnp.pad(w, ((0, 0), (0, 0), (0, cp - cin), (0, cp - cout)))
    return jnp.transpose(wp, (1, 0, 2, 3)).reshape(kw, kh * cp, cp).astype(
        jnp.bfloat16)


def _fuse_bias(b, cp):
    return jnp.pad(b, (0, cp - b.shape[0])).reshape(1, cp).astype(jnp.float32)


@jax.jit
def denoise_m(x_nchw, params):
    """Forward pass of DenoiseM. Input/output are NCHW to match PyTorch."""
    w1, b1, w2, b2, w3, b3 = params
    N, C1, H, W = x_nchw.shape
    C3 = w3.shape[-1]
    CP = 128                              # lane-padded channel width in-kernel
    WP = pl.cdiv(W + 2, 8) * 8            # padded width rounded to sublane mult

    # NCHW -> NHWC (channels on the lane axis), bf16 MXU operands, and channel
    # padding to 128 lanes (zero channels x zero weights is exact).
    x = jnp.transpose(x_nchw, (0, 2, 3, 1)).astype(jnp.bfloat16)
    x = jnp.pad(x, ((0, 0), (0, 0), (0, 0), (0, CP - C1)))

    w1f, w2f, w3f = (_fuse_weight(w, CP) for w in (w1, w2, w3))
    b1f, b2f, b3f = (_fuse_bias(b, CP) for b in (b1, b2, b3))

    kernel = functools.partial(_denoise_kernel, H=H, W=W, WP=WP)
    wspec = pl.BlockSpec((3, 3 * CP, CP), lambda n: (0, 0, 0))
    bspec = pl.BlockSpec((1, CP), lambda n: (0, 0))

    out_nhwc = pl.pallas_call(
        kernel,
        out_shape=jax.ShapeDtypeStruct((N, H, W, CP), jnp.float32),
        grid=(N,),
        in_specs=[
            pl.BlockSpec((1, H, W, CP), lambda n: (n, 0, 0, 0)),
            wspec, bspec, wspec, bspec, wspec, bspec,
        ],
        out_specs=pl.BlockSpec((1, H, W, CP), lambda n: (n, 0, 0, 0)),
        scratch_shapes=[
            pltpu.VMEM((H + 2, WP, CP), jnp.bfloat16),   # padded input
            pltpu.VMEM((H + 2, WP, CP), jnp.bfloat16),   # padded act1
            pltpu.VMEM((H + 2, WP, CP), jnp.bfloat16),   # padded act2
        ],
        compiler_params=pltpu.CompilerParams(
            dimension_semantics=("parallel",)),
    )(x, w1f, b1f, w2f, b2f, w3f, b3f)

    # Drop the exact-zero padded output channels, NHWC -> NCHW.
    return jnp.transpose(out_nhwc[..., :C3], (0, 3, 1, 2))


def init_conv(key, cin, cout):
    """Deterministic init (PyTorch Conv2d default-style uniform bounds)."""
    kw, kb = jax.random.split(key)
    bound = 1.0 / np.sqrt(cin * 9)
    w = jax.random.uniform(kw, (3, 3, cin, cout), jnp.float32, -bound, bound)
    b = jax.random.uniform(kb, (cout,), jnp.float32, -bound, bound)
    return w, b


def _ref_conv(x_nhwc, w, b):
    # Same math as the kernel: bf16 operands, f32 accumulation, f32 bias.
    y = jax.lax.conv_general_dilated(
        x_nhwc.astype(jnp.bfloat16), w.astype(jnp.bfloat16),
        window_strides=(1, 1), padding="SAME",
        dimension_numbers=("NHWC", "HWIO", "NHWC"),
        preferred_element_type=jnp.float32)
    return y + b.reshape(1, 1, 1, -1)


if __name__ == "__main__":
    n = 4
    cin, c, cout = 25 * n, 16 * n, 16 * n            # 100, 64, 64
    N, H, W = 2, 8, 8

    key = jax.random.PRNGKey(0)
    k_x, k1, k2, k3 = jax.random.split(key, 4)
    x_nchw = jax.random.normal(k_x, (N, cin, H, W), jnp.float32)
    w1, b1 = init_conv(k1, cin, c)
    w2, b2 = init_conv(k2, c, c)
    w3, b3 = init_conv(k3, c, cout)
    params = (w1, b1, w2, b2, w3, b3)

    out = jax.block_until_ready(denoise_m(x_nchw, params))
    assert out.shape == (N, cout, H, W)

    # Pure-JAX reference with matching bf16-operand / f32-accumulate math.
    x_nhwc = jnp.transpose(x_nchw, (0, 2, 3, 1))
    h = jax.nn.relu(_ref_conv(x_nhwc, w1, b1))
    h = jax.nn.relu(_ref_conv(h, w2, b2))
    ref = jnp.transpose(_ref_conv(h, w3, b3), (0, 3, 1, 2))
    np.testing.assert_allclose(np.asarray(out), np.asarray(ref),
                               rtol=5e-3, atol=2e-3)

    print("KERNEL_OK")
</pallas_src>

<mosaic_0001>
module attributes {stable_mosaic.version = 11 : i64} {
  func.func @_denoise_kernel(%arg0: i32, %arg1: memref<1x8x8x128xbf16, #tpu.memory_space<vmem>>, %arg2: memref<3x384x128xbf16, #tpu.memory_space<vmem>>, %arg3: memref<1x128xf32, #tpu.memory_space<vmem>>, %arg4: memref<3x384x128xbf16, #tpu.memory_space<vmem>>, %arg5: memref<1x128xf32, #tpu.memory_space<vmem>>, %arg6: memref<3x384x128xbf16, #tpu.memory_space<vmem>>, %arg7: memref<1x128xf32, #tpu.memory_space<vmem>>, %arg8: memref<1x8x8x128xf32, #tpu.memory_space<vmem>>, %arg9: memref<10x16x128xbf16, #tpu.memory_space<vmem>>, %arg10: memref<10x16x128xbf16, #tpu.memory_space<vmem>>, %arg11: memref<10x16x128xbf16, #tpu.memory_space<vmem>>) attributes {dimension_semantics = [#tpu.dimension_semantics<parallel>], iteration_bounds = array<i64: 2>, scalar_prefetch = 0 : i64, scratch_operands = 3 : i64, tpu.core_type = #tpu.core_type<tc>, window_params = [{transform_indices = @transform_0, window_bounds = array<i64: 1, 8, 8, 128>}, {pipeline_mode = #tpu.pipeline_mode<synchronous>, transform_indices = @transform_1, window_bounds = array<i64: 3, 384, 128>}, {pipeline_mode = #tpu.pipeline_mode<synchronous>, transform_indices = @transform_2, window_bounds = array<i64: 1, 128>}, {pipeline_mode = #tpu.pipeline_mode<synchronous>, transform_indices = @transform_3, window_bounds = array<i64: 3, 384, 128>}, {pipeline_mode = #tpu.pipeline_mode<synchronous>, transform_indices = @transform_4, window_bounds = array<i64: 1, 128>}, {pipeline_mode = #tpu.pipeline_mode<synchronous>, transform_indices = @transform_5, window_bounds = array<i64: 3, 384, 128>}, {pipeline_mode = #tpu.pipeline_mode<synchronous>, transform_indices = @transform_6, window_bounds = array<i64: 1, 128>}, {transform_indices = @transform_7, window_bounds = array<i64: 1, 8, 8, 128>}]} {
    %cst = arith.constant 0.000000e+00 : bf16
    %0 = vector.broadcast %cst : bf16 to vector<10x16x128xbf16>
    %c0 = arith.constant 0 : index
    %c0_0 = arith.constant 0 : index
    %c0_1 = arith.constant 0 : index
    %1 = vector.load %arg9[%c0, %c0_0, %c0_1] : memref<10x16x128xbf16, #tpu.memory_space<vmem>>, vector<10x16x128xbf16>
    tpu.vector_store %arg9[%c0, %c0_0, %c0_1], %0 {strides = array<i32>} : memref<10x16x128xbf16, #tpu.memory_space<vmem>>, vector<10x16x128xbf16>,
    %c0_2 = arith.constant 0 : index
    %c0_3 = arith.constant 0 : index
    %c0_4 = arith.constant 0 : index
    %c0_5 = arith.constant 0 : index
    %2 = vector.load %arg1[%c0_2, %c0_3, %c0_4, %c0_5] : memref<1x8x8x128xbf16, #tpu.memory_space<vmem>>, vector<1x8x8x128xbf16>
    %3 = vector.shape_cast %2 : vector<1x8x8x128xbf16> to vector<8x8x128xbf16>
    %c1 = arith.constant 1 : index
    %c1_6 = arith.constant 1 : index
    %c0_7 = arith.constant 0 : index
    %4 = vector.load %arg9[%c1, %c1_6, %c0_7] : memref<10x16x128xbf16, #tpu.memory_space<vmem>>, vector<8x8x128xbf16>
    tpu.vector_store %arg9[%c1, %c1_6, %c0_7], %3 {strides = array<i32>} : memref<10x16x128xbf16, #tpu.memory_space<vmem>>, vector<8x8x128xbf16>,
    %c0_8 = arith.constant 0 : index
    %c0_9 = arith.constant 0 : index
    %c0_10 = arith.constant 0 : index
    %5 = vector.load %arg9[%c0_8, %c0_9, %c0_10] : memref<10x16x128xbf16, #tpu.memory_space<vmem>>, vector<8x16x128xbf16>
    %c1_11 = arith.constant 1 : index
    %c0_12 = arith.constant 0 : index
    %c0_13 = arith.constant 0 : index
    %6 = vector.load %arg9[%c1_11, %c0_12, %c0_13] : memref<10x16x128xbf16, #tpu.memory_space<vmem>>, vector<8x16x128xbf16>
    %c2 = arith.constant 2 : index
    %c0_14 = arith.constant 0 : index
    %c0_15 = arith.constant 0 : index
    %7 = vector.load %arg9[%c2, %c0_14, %c0_15] : memref<10x16x128xbf16, #tpu.memory_space<vmem>>, vector<8x16x128xbf16>
    %8 = tpu.concatenate %5, %6, %7 in 2 : vector<8x16x128xbf16>, vector<8x16x128xbf16>, vector<8x16x128xbf16> -> vector<8x16x384xbf16>
    %9 = vector.shape_cast %8 : vector<8x16x384xbf16> to vector<128x384xbf16>
    %c0_16 = arith.constant 0 : index
    %c0_17 = arith.constant 0 : index
    %10 = vector.load %arg3[%c0_16, %c0_17] : memref<1x128xf32, #tpu.memory_space<vmem>>, vector<1x128xf32>
    %11 = vector.shape_cast %10 : vector<1x128xf32> to vector<1x128xf32>
    %12 = vector.broadcast %11 : vector<1x128xf32> to vector<128x128xf32>
    %c0_18 = arith.constant 0 : index
    %c0_19 = arith.constant 0 : index
    %c0_20 = arith.constant 0 : index
    %13 = vector.load %arg2[%c0_18, %c0_19, %c0_20] : memref<3x384x128xbf16, #tpu.memory_space<vmem>>, vector<1x384x128xbf16>
    %14 = vector.shape_cast %13 : vector<1x384x128xbf16> to vector<384x128xbf16>
    %cst_21 = arith.constant dense<0.000000e+00> : vector<128x128xf32>
    %15 = tpu.matmul %9, %14, %cst_21 {dimension_numbers = #tpu.dot_dimension_numbers<[1], [0], [0], [1], [0, 0, 1, 1], [], []>} : vector<128x384xbf16>, vector<384x128xbf16>, vector<128x128xf32> -> vector<128x128xf32>
    %c1_i32 = arith.constant 1 : i32
    %16 = tpu.dynamic_rotate %15 by %c1_i32 dim 0 : vector<128x128xf32>, i32 -> vector<128x128xf32>
    %17 = arith.addf %12, %16 : vector<128x128xf32>
    %c1_22 = arith.constant 1 : index
    %c0_23 = arith.constant 0 : index
    %c0_24 = arith.constant 0 : index
    %18 = vector.load %arg2[%c1_22, %c0_23, %c0_24] : memref<3x384x128xbf16, #tpu.memory_space<vmem>>, vector<1x384x128xbf16>
    %19 = vector.shape_cast %18 : vector<1x384x128xbf16> to vector<384x128xbf16>
    %cst_25 = arith.constant dense<0.000000e+00> : vector<128x128xf32>
    %20 = tpu.matmul %9, %19, %cst_25 {dimension_numbers = #tpu.dot_dimension_numbers<[1], [0], [0], [1], [0, 0, 1, 1], [], []>} : vector<128x384xbf16>, vector<384x128xbf16>, vector<128x128xf32> -> vector<128x128xf32>
    %21 = arith.addf %17, %20 : vector<128x128xf32>
    %c2_26 = arith.constant 2 : index
    %c0_27 = arith.constant 0 : index
    %c0_28 = arith.constant 0 : index
    %22 = vector.load %arg2[%c2_26, %c0_27, %c0_28] : memref<3x384x128xbf16, #tpu.memory_space<vmem>>, vector<1x384x128xbf16>
    %23 = vector.shape_cast %22 : vector<1x384x128xbf16> to vector<384x128xbf16>
    %cst_29 = arith.constant dense<0.000000e+00> : vector<128x128xf32>
    %24 = tpu.matmul %9, %23, %cst_29 {dimension_numbers = #tpu.dot_dimension_numbers<[1], [0], [0], [1], [0, 0, 1, 1], [], []>} : vector<128x384xbf16>, vector<384x128xbf16>, vector<128x128xf32> -> vector<128x128xf32>
    %c127_i32 = arith.constant 127 : i32
    %25 = tpu.dynamic_rotate %24 by %c127_i32 dim 0 : vector<128x128xf32>, i32 -> vector<128x128xf32>
    %26 = arith.addf %21, %25 : vector<128x128xf32>
    %cst_30 = arith.constant 0.000000e+00 : f32
    %27 = vector.broadcast %cst_30 : f32 to vector<128x128xf32>
    %28 = arith.maximumf %26, %27 : vector<128x128xf32>
    %29 = vector.shape_cast %28 : vector<128x128xf32> to vector<8x16x128xf32>
    %30 = tpu.iota {dimensions = array<i32: 1>} : vector<1x16x128xi32>
    %c1_i32_31 = arith.constant 1 : i32
    %31 = vector.broadcast %c1_i32_31 : i32 to vector<1x16x128xi32>
    %32 = arith.cmpi sge, %30, %31 : vector<1x16x128xi32>
    %c8_i32 = arith.constant 8 : i32
    %33 = vector.broadcast %c8_i32 : i32 to vector<1x16x128xi32>
    %34 = arith.cmpi sle, %30, %33 : vector<1x16x128xi32>
    %35 = arith.andi %32, %34 : vector<1x16x128xi1>
    %cst_32 = arith.constant 0.000000e+00 : bf16
    %36 = vector.broadcast %cst_32 : bf16 to vector<1x16x128xbf16>
    %cst_33 = arith.constant 0.000000e+00 : f32
    %37 = vector.shape_cast %35 : vector<1x16x128xi1> to vector<1x16x128xi1>
    %38 = vector.broadcast %37 : vector<1x16x128xi1> to vector<8x16x128xi1>
    %39 = vector.broadcast %cst_33 : f32 to vector<8x16x128xf32>
    %40 = arith.select %38, %29, %39 : vector<8x16x128xi1>, vector<8x16x128xf32>
    %41 = arith.truncf %40 : vector<8x16x128xf32> to vector<8x16x128xbf16>
    %c1_34 = arith.constant 1 : index
    %c0_35 = arith.constant 0 : index
    %c0_36 = arith.constant 0 : index
    %42 = vector.load %arg10[%c1_34, %c0_35, %c0_36] : memref<10x16x128xbf16, #tpu.memory_space<vmem>>, vector<8x16x128xbf16>
    tpu.vector_store %arg10[%c1_34, %c0_35, %c0_36], %41 {strides = array<i32>} : memref<10x16x128xbf16, #tpu.memory_space<vmem>>, vector<8x16x128xbf16>,
    %c0_37 = arith.constant 0 : index
    %c0_38 = arith.constant 0 : index
    %c0_39 = arith.constant 0 : index
    %43 = vector.load %arg10[%c0_37, %c0_38, %c0_39] : memref<10x16x128xbf16, #tpu.memory_space<vmem>>, vector<1x16x128xbf16>
    tpu.vector_store %arg10[%c0_37, %c0_38, %c0_39], %36 {strides = array<i32>} : memref<10x16x128xbf16, #tpu.memory_space<vmem>>, vector<1x16x128xbf16>,
    %c9 = arith.constant 9 : index
    %c0_40 = arith.constant 0 : index
    %c0_41 = arith.constant 0 : index
    %44 = vector.load %arg10[%c9, %c0_40, %c0_41] : memref<10x16x128xbf16, #tpu.memory_space<vmem>>, vector<1x16x128xbf16>
    tpu.vector_store %arg10[%c9, %c0_40, %c0_41], %36 {strides = array<i32>} : memref<10x16x128xbf16, #tpu.memory_space<vmem>>, vector<1x16x128xbf16>,
    %c0_42 = arith.constant 0 : index
    %c0_43 = arith.constant 0 : index
    %c0_44 = arith.constant 0 : index
    %45 = vector.load %arg10[%c0_42, %c0_43, %c0_44] : memref<10x16x128xbf16, #tpu.memory_space<vmem>>, vector<8x16x128xbf16>
    %c1_45 = arith.constant 1 : index
    %c0_46 = arith.constant 0 : index
    %c0_47 = arith.constant 0 : index
    %46 = vector.load %arg10[%c1_45, %c0_46, %c0_47] : memref<10x16x128xbf16, #tpu.memory_space<vmem>>, vector<8x16x128xbf16>
    %c2_48 = arith.constant 2 : index
    %c0_49 = arith.constant 0 : index
    %c0_50 = arith.constant 0 : index
    %47 = vector.load %arg10[%c2_48, %c0_49, %c0_50] : memref<10x16x128xbf16, #tpu.memory_space<vmem>>, vector<8x16x128xbf16>
    %48 = tpu.concatenate %45, %46, %47 in 2 : vector<8x16x128xbf16>, vector<8x16x128xbf16>, vector<8x16x128xbf16> -> vector<8x16x384xbf16>
    %49 = vector.shape_cast %48 : vector<8x16x384xbf16> to vector<128x384xbf16>
    %c0_51 = arith.constant 0 : index
    %c0_52 = arith.constant 0 : index
    %50 = vector.load %arg5[%c0_51, %c0_52] : memref<1x128xf32, #tpu.memory_space<vmem>>, vector<1x128xf32>
    %51 = vector.shape_cast %50 : vector<1x128xf32> to vector<1x128xf32>
    %52 = vector.broadcast %51 : vector<1x128xf32> to vector<128x128xf32>
    %c0_53 = arith.constant 0 : index
    %c0_54 = arith.constant 0 : index
    %c0_55 = arith.constant 0 : index
    %53 = vector.load %arg4[%c0_53, %c0_54, %c0_55] : memref<3x384x128xbf16, #tpu.memory_space<vmem>>, vector<1x384x128xbf16>
    %54 = vector.shape_cast %53 : vector<1x384x128xbf16> to vector<384x128xbf16>
    %cst_56 = arith.constant dense<0.000000e+00> : vector<128x128xf32>
    %55 = tpu.matmul %49, %54, %cst_56 {dimension_numbers = #tpu.dot_dimension_numbers<[1], [0], [0], [1], [0, 0, 1, 1], [], []>} : vector<128x384xbf16>, vector<384x128xbf16>, vector<128x128xf32> -> vector<128x128xf32>
    %c1_i32_57 = arith.constant 1 : i32
    %56 = tpu.dynamic_rotate %55 by %c1_i32_57 dim 0 : vector<128x128xf32>, i32 -> vector<128x128xf32>
    %57 = arith.addf %52, %56 : vector<128x128xf32>
    %c1_58 = arith.constant 1 : index
    %c0_59 = arith.constant 0 : index
    %c0_60 = arith.constant 0 : index
    %58 = vector.load %arg4[%c1_58, %c0_59, %c0_60] : memref<3x384x128xbf16, #tpu.memory_space<vmem>>, vector<1x384x128xbf16>
    %59 = vector.shape_cast %58 : vector<1x384x128xbf16> to vector<384x128xbf16>
    %cst_61 = arith.constant dense<0.000000e+00> : vector<128x128xf32>
    %60 = tpu.matmul %49, %59, %cst_61 {dimension_numbers = #tpu.dot_dimension_numbers<[1], [0], [0], [1], [0, 0, 1, 1], [], []>} : vector<128x384xbf16>, vector<384x128xbf16>, vector<128x128xf32> -> vector<128x128xf32>
    %61 = arith.addf %57, %60 : vector<128x128xf32>
    %c2_62 = arith.constant 2 : index
    %c0_63 = arith.constant 0 : index
    %c0_64 = arith.constant 0 : index
    %62 = vector.load %arg4[%c2_62, %c0_63, %c0_64] : memref<3x384x128xbf16, #tpu.memory_space<vmem>>, vector<1x384x128xbf16>
    %63 = vector.shape_cast %62 : vector<1x384x128xbf16> to vector<384x128xbf16>
    %cst_65 = arith.constant dense<0.000000e+00> : vector<128x128xf32>
    %64 = tpu.matmul %49, %63, %cst_65 {dimension_numbers = #tpu.dot_dimension_numbers<[1], [0], [0], [1], [0, 0, 1, 1], [], []>} : vector<128x384xbf16>, vector<384x128xbf16>, vector<128x128xf32> -> vector<128x128xf32>
    %c127_i32_66 = arith.constant 127 : i32
    %65 = tpu.dynamic_rotate %64 by %c127_i32_66 dim 0 : vector<128x128xf32>, i32 -> vector<128x128xf32>
    %66 = arith.addf %61, %65 : vector<128x128xf32>
    %cst_67 = arith.constant 0.000000e+00 : f32
    %67 = vector.broadcast %cst_67 : f32 to vector<128x128xf32>
    %68 = arith.maximumf %66, %67 : vector<128x128xf32>
    %69 = vector.shape_cast %68 : vector<128x128xf32> to vector<8x16x128xf32>
    %cst_68 = arith.constant 0.000000e+00 : f32
    %70 = vector.shape_cast %35 : vector<1x16x128xi1> to vector<1x16x128xi1>
    %71 = vector.broadcast %70 : vector<1x16x128xi1> to vector<8x16x128xi1>
    %72 = vector.broadcast %cst_68 : f32 to vector<8x16x128xf32>
    %73 = arith.select %71, %69, %72 : vector<8x16x128xi1>, vector<8x16x128xf32>
    %74 = arith.truncf %73 : vector<8x16x128xf32> to vector<8x16x128xbf16>
    %c1_69 = arith.constant 1 : index
    %c0_70 = arith.constant 0 : index
    %c0_71 = arith.constant 0 : index
    %75 = vector.load %arg11[%c1_69, %c0_70, %c0_71] : memref<10x16x128xbf16, #tpu.memory_space<vmem>>, vector<8x16x128xbf16>
    tpu.vector_store %arg11[%c1_69, %c0_70, %c0_71], %74 {strides = array<i32>} : memref<10x16x128xbf16, #tpu.memory_space<vmem>>, vector<8x16x128xbf16>,
    %c0_72 = arith.constant 0 : index
    %c0_73 = arith.constant 0 : index
    %c0_74 = arith.constant 0 : index
    %76 = vector.load %arg11[%c0_72, %c0_73, %c0_74] : memref<10x16x128xbf16, #tpu.memory_space<vmem>>, vector<1x16x128xbf16>
    tpu.vector_store %arg11[%c0_72, %c0_73, %c0_74], %36 {strides = array<i32>} : memref<10x16x128xbf16, #tpu.memory_space<vmem>>, vector<1x16x128xbf16>,
    %c9_75 = arith.constant 9 : index
    %c0_76 = arith.constant 0 : index
    %c0_77 = arith.constant 0 : index
    %77 = vector.load %arg11[%c9_75, %c0_76, %c0_77] : memref<10x16x128xbf16, #tpu.memory_space<vmem>>, vector<1x16x128xbf16>
    tpu.vector_store %arg11[%c9_75, %c0_76, %c0_77], %36 {strides = array<i32>} : memref<10x16x128xbf16, #tpu.memory_space<vmem>>, vector<1x16x128xbf16>,
    %c0_78 = arith.constant 0 : index
    %c0_79 = arith.constant 0 : index
    %c0_80 = arith.constant 0 : index
    %78 = vector.load %arg11[%c0_78, %c0_79, %c0_80] : memref<10x16x128xbf16, #tpu.memory_space<vmem>>, vector<8x16x128xbf16>
    %c1_81 = arith.constant 1 : index
    %c0_82 = arith.constant 0 : index
    %c0_83 = arith.constant 0 : index
    %79 = vector.load %arg11[%c1_81, %c0_82, %c0_83] : memref<10x16x128xbf16, #tpu.memory_space<vmem>>, vector<8x16x128xbf16>
    %c2_84 = arith.constant 2 : index
    %c0_85 = arith.constant 0 : index
    %c0_86 = arith.constant 0 : index
    %80 = vector.load %arg11[%c2_84, %c0_85, %c0_86] : memref<10x16x128xbf16, #tpu.memory_space<vmem>>, vector<8x16x128xbf16>
    %81 = tpu.concatenate %78, %79, %80 in 2 : vector<8x16x128xbf16>, vector<8x16x128xbf16>, vector<8x16x128xbf16> -> vector<8x16x384xbf16>
    %82 = vector.shape_cast %81 : vector<8x16x384xbf16> to vector<128x384xbf16>
    %c0_87 = arith.constant 0 : index
    %c0_88 = arith.constant 0 : index
    %83 = vector.load %arg7[%c0_87, %c0_88] : memref<1x128xf32, #tpu.memory_space<vmem>>, vector<1x128xf32>
    %84 = vector.shape_cast %83 : vector<1x128xf32> to vector<1x128xf32>
    %85 = vector.broadcast %84 : vector<1x128xf32> to vector<128x128xf32>
    %c0_89 = arith.constant 0 : index
    %c0_90 = arith.constant 0 : index
    %c0_91 = arith.constant 0 : index
    %86 = vector.load %arg6[%c0_89, %c0_90, %c0_91] : memref<3x384x128xbf16, #tpu.memory_space<vmem>>, vector<1x384x128xbf16>
    %87 = vector.shape_cast %86 : vector<1x384x128xbf16> to vector<384x128xbf16>
    %cst_92 = arith.constant dense<0.000000e+00> : vector<128x128xf32>
    %88 = tpu.matmul %82, %87, %cst_92 {dimension_numbers = #tpu.dot_dimension_numbers<[1], [0], [0], [1], [0, 0, 1, 1], [], []>} : vector<128x384xbf16>, vector<384x128xbf16>, vector<128x128xf32> -> vector<128x128xf32>
    %89 = arith.addf %85, %88 : vector<128x128xf32>
    %c1_93 = arith.constant 1 : index
    %c0_94 = arith.constant 0 : index
    %c0_95 = arith.constant 0 : index
    %90 = vector.load %arg6[%c1_93, %c0_94, %c0_95] : memref<3x384x128xbf16, #tpu.memory_space<vmem>>, vector<1x384x128xbf16>
    %91 = vector.shape_cast %90 : vector<1x384x128xbf16> to vector<384x128xbf16>
    %cst_96 = arith.constant dense<0.000000e+00> : vector<128x128xf32>
    %92 = tpu.matmul %82, %91, %cst_96 {dimension_numbers = #tpu.dot_dimension_numbers<[1], [0], [0], [1], [0, 0, 1, 1], [], []>} : vector<128x384xbf16>, vector<384x128xbf16>, vector<128x128xf32> -> vector<128x128xf32>
    %c127_i32_97 = arith.constant 127 : i32
    %93 = tpu.dynamic_rotate %92 by %c127_i32_97 dim 0 : vector<128x128xf32>, i32 -> vector<128x128xf32>
    %94 = arith.addf %89, %93 : vector<128x128xf32>
    %c2_98 = arith.constant 2 : index
    %c0_99 = arith.constant 0 : index
    %c0_100 = arith.constant 0 : index
    %95 = vector.load %arg6[%c2_98, %c0_99, %c0_100] : memref<3x384x128xbf16, #tpu.memory_space<vmem>>, vector<1x384x128xbf16>
    %96 = vector.shape_cast %95 : vector<1x384x128xbf16> to vector<384x128xbf16>
    %cst_101 = arith.constant dense<0.000000e+00> : vector<128x128xf32>
    %97 = tpu.matmul %82, %96, %cst_101 {dimension_numbers = #tpu.dot_dimension_numbers<[1], [0], [0], [1], [0, 0, 1, 1], [], []>} : vector<128x384xbf16>, vector<384x128xbf16>, vector<128x128xf32> -> vector<128x128xf32>
    %c126_i32 = arith.constant 126 : i32
    %98 = tpu.dynamic_rotate %97 by %c126_i32 dim 0 : vector<128x128xf32>, i32 -> vector<128x128xf32>
    %99 = arith.addf %94, %98 : vector<128x128xf32>
    %100 = vector.shape_cast %99 : vector<128x128xf32> to vector<8x16x128xf32>
    %101 = vector.extract_strided_slice %100 {offsets = [0, 0, 0], sizes = [8, 8, 128], strides = [1, 1, 1]} : vector<8x16x128xf32> to vector<8x8x128xf32>
    %102 = vector.shape_cast %101 : vector<8x8x128xf32> to vector<1x8x8x128xf32>
    %c0_102 = arith.constant 0 : index
    %c0_103 = arith.constant 0 : index
    %c0_104 = arith.constant 0 : index
    %c0_105 = arith.constant 0 : index
    %103 = vector.load %arg8[%c0_102, %c0_103, %c0_104, %c0_105] : memref<1x8x8x128xf32, #tpu.memory_space<vmem>>, vector<1x8x8x128xf32>
    tpu.vector_store %arg8[%c0_102, %c0_103, %c0_104, %c0_105], %102 {strides = array<i32>} : memref<1x8x8x128xf32, #tpu.memory_space<vmem>>, vector<1x8x8x128xf32>,
    return
  }
  func.func @transform_0(%arg0: i32) -> (i32, i32, i32, i32) {
    %c0_i32 = arith.constant 0 : i32
    %c0_i32_0 = arith.constant 0 : i32
    %c0_i32_1 = arith.constant 0 : i32
    %c0_i32_2 = arith.constant 0 : i32
    return %arg0, %c0_i32, %c0_i32_0, %c0_i32_1 : i32, i32, i32, i32
  }
  func.func @transform_1(%arg0: i32) -> (i32, i32, i32) {
    %c0_i32 = arith.constant 0 : i32
    %c0_i32_0 = arith.constant 0 : i32
    %c0_i32_1 = arith.constant 0 : i32
    %c0_i32_2 = arith.constant 0 : i32
    return %c0_i32, %c0_i32_0, %c0_i32_1 : i32, i32, i32
  }
  func.func @transform_2(%arg0: i32) -> (i32, i32) {
    %c0_i32 = arith.constant 0 : i32
    %c0_i32_0 = arith.constant 0 : i32
    %c0_i32_1 = arith.constant 0 : i32
    return %c0_i32, %c0_i32_0 : i32, i32
  }
  func.func @transform_3(%arg0: i32) -> (i32, i32, i32) {
    %c0_i32 = arith.constant 0 : i32
    %c0_i32_0 = arith.constant 0 : i32
    %c0_i32_1 = arith.constant 0 : i32
    %c0_i32_2 = arith.constant 0 : i32
    return %c0_i32, %c0_i32_0, %c0_i32_1 : i32, i32, i32
  }
  func.func @transform_4(%arg0: i32) -> (i32, i32) {
    %c0_i32 = arith.constant 0 : i32
    %c0_i32_0 = arith.constant 0 : i32
    %c0_i32_1 = arith.constant 0 : i32
    return %c0_i32, %c0_i32_0 : i32, i32
  }
  func.func @transform_5(%arg0: i32) -> (i32, i32, i32) {
    %c0_i32 = arith.constant 0 : i32
    %c0_i32_0 = arith.constant 0 : i32
    %c0_i32_1 = arith.constant 0 : i32
    %c0_i32_2 = arith.constant 0 : i32
    return %c0_i32, %c0_i32_0, %c0_i32_1 : i32, i32, i32
  }
  func.func @transform_6(%arg0: i32) -> (i32, i32) {
    %c0_i32 = arith.constant 0 : i32
    %c0_i32_0 = arith.constant 0 : i32
    %c0_i32_1 = arith.constant 0 : i32
    return %c0_i32, %c0_i32_0 : i32, i32
  }
  func.func @transform_7(%arg0: i32) -> (i32, i32, i32, i32) {
    %c0_i32 = arith.constant 0 : i32
    %c0_i32_0 = arith.constant 0 : i32
    %c0_i32_1 = arith.constant 0 : i32
    %c0_i32_2 = arith.constant 0 : i32
    return %arg0, %c0_i32, %c0_i32_0, %c0_i32_1 : i32, i32, i32, i32
  }
}

</mosaic_0001>

<bundles_post_ra>
// kernel: denoise_m.1
= control target key start
LH: loop header
LB: loop body
LE: loop exit
PB: predicated region body
PF: predicated region fallthrough
CT: control target
= control target key end

     0   :  { %s6670_s24 = smov 0   ;;  %s8463_s0 = inlined_call_operand.vmem [shape: bf16[2,8,8,128], index: 0, kind: input, shape index: {}]   ;;  %s8464_s1 = inlined_call_operand.vmem [shape: bf16[3,384,128], index: 1, kind: input, shape index: {}]   ;;  %s8465_s2 = inlined_call_operand.vmem [shape: f32[1,128], index: 2, kind: input, shape index: {}]   ;;  %s8466_s3 = inlined_call_operand.vmem [shape: bf16[3,384,128], index: 3, kind: input, shape index: {}]   ;;  %s8467_s4 = inlined_call_operand.vmem [shape: f32[1,128], index: 4, kind: input, shape index: {}]   ;;  %s8468_s5 = inlined_call_operand.vmem [shape: bf16[3,384,128], index: 5, kind: input, shape index: {}]   ;;  %s8469_s6 = inlined_call_operand.vmem [shape: f32[1,128], index: 6, kind: input, shape index: {}]   ;;  %s8470_s7 = inlined_call_operand.vmem [shape: f32[2,8,8,128], index: 7, kind: output, shape index: {}]  }
   0x1 LB: > { %s4453_s25 = sadd.s32 4294967295, %s6627_s24   ;;  %p4457_p0 = scmp.ge.s32.totalorder %s6627_s24, 1  ;;  %s6627_s24 = sphi %s6670_s24, %s17_s24  }
   0x2   : > { %p237_p1 = scmp.lt.s32.totalorder %s6627_s24, 3 }
   0x4   : > { %p238_p2 = pnand %p4457_p0, %p237_p1 }
   0x5   : > { %v6394_v0 = vld [vmem:[%s8464_s1 + $0x40] sm:$0xff] (!%p238_p2)   ;;  %v6629_v3 = vmov (!%p238_p2), 0   ;;  %v6397_v4 = vld [vmem:[%s8464_s1 + $0x48] sm:$0xff] (!%p238_p2)   ;;  %v6400_v7 = vld [vmem:[%s8464_s1 + $0x50] sm:$0xff] (!%p238_p2)   ;;  %p269_p3 = scmp.lt.s32.totalorder (!%p238_p2), %s4453_s25, 1  ;;  %vm387_vm0 = vcmask (!%p238_p2), 1044480  }
   0x6   : > { %241 = sbr.rel (%p238_p2) target bundleno = 1102 (0x44e), region = 48  ;;  %v6395_v1 = vld [vmem:[%s8464_s1 + $0x80] sm:$0xff] (!%p238_p2)   ;;  %5377 = vmatprep.subr.bf16.mxu0 (!%p238_p2), %v6394_v0  ;;  %281 = vst [vmem:[#allocation2 + $0x8] sm:$0xff] (!%p238_p2), %v6629_v3  ;;  %280 = vst [vmem:[#allocation2] sm:$0xff] (!%p238_p2), %v6629_v3  ;;  %v6398_v5 = vld [vmem:[%s8464_s1 + $0x88] sm:$0xff] (!%p238_p2)  }
   0x7   : > { %v6396_v2 = vld [vmem:[%s8464_s1] sm:$0xff] (!%p238_p2)   ;;  %282 = vst [vmem:[#allocation2 + $0x10] sm:$0xff] (!%p238_p2), %v6629_v3  ;;  %283 = vst [vmem:[#allocation2 + $0x18] sm:$0xff] (!%p238_p2), %v6629_v3  ;;  %6097 = vmatprep.subr.bf16.mxu1 (!%p238_p2), %v6395_v1  ;;  %v6399_v6 = vld [vmem:[%s8464_s1 + $0x8] sm:$0xff] (!%p238_p2)   ;;  %vm388_vm1 = vsmask.f32 (!%p238_p2), 4354 }
   0x8   : > { %284 = vst [vmem:[#allocation2 + $0x20] sm:$0xff] (!%p238_p2), %v6629_v3  ;;  %285 = vst [vmem:[#allocation2 + $0x28] sm:$0xff] (!%p238_p2), %v6629_v3  ;;  %5378 = vmatpush3.bf16.msra.mxu0 (!%p238_p2), %v6396_v2  ;;  %6098 = vmatpush3.bf16.msra.mxu1 (!%p238_p2), %v6395_v1  ;;  %v6401_v8 = vld [vmem:[%s8464_s1 + $0x90] sm:$0xff] (!%p238_p2)   ;;  %v6403_v10 = vld [vmem:[%s8464_s1 + $0x58] sm:$0xff] (!%p238_p2)  }
   0x9   : > { %286 = vst [vmem:[#allocation2 + $0x30] sm:$0xff] (!%p238_p2), %v6629_v3  ;;  %287 = vst [vmem:[#allocation2 + $0x38] sm:$0xff] (!%p238_p2), %v6629_v3  ;;  %5379 = vmatprep.subr.bf16.mxu0 (!%p238_p2), %v6397_v4  ;;  %6099 = vmatprep.subr.bf16.mxu1 (!%p238_p2), %v6398_v5  ;;  %v6402_v9 = vld [vmem:[%s8464_s1 + $0x10] sm:$0xff] (!%p238_p2)   ;;  %v6404_v11 = vld [vmem:[%s8464_s1 + $0x98] sm:$0xff] (!%p238_p2)  }
   0xa   : > { %288 = vst [vmem:[#allocation2 + $0x40] sm:$0xff] (!%p238_p2), %v6629_v3  ;;  %v6405_v12 = vld [vmem:[%s8464_s1 + $0x18] sm:$0xff] (!%p238_p2)   ;;  %v6406_v13 = vld [vmem:[%s8464_s1 + $0x60] sm:$0xff] (!%p238_p2)   ;;  %v6409_v16 = vld [vmem:[%s8464_s1 + $0x68] sm:$0xff] (!%p238_p2)  }
   0xb   : > { %v6407_v14 = vld [vmem:[%s8464_s1 + $0xa0] sm:$0xff] (!%p238_p2)   ;;  %v6410_v17 = vld [vmem:[%s8464_s1 + $0xa8] sm:$0xff] (!%p238_p2)   ;;  %v6412_v19 = vld [vmem:[%s8464_s1 + $0x70] sm:$0xff] (!%p238_p2)  }
   0xc   : > { %5380 = vmatpush3.bf16.msra.mxu0 (!%p238_p2), %v6399_v6  ;;  %6100 = vmatpush3.bf16.msra.mxu1 (!%p238_p2), %v6398_v5  ;;  %v6408_v15 = vld [vmem:[%s8464_s1 + $0x20] sm:$0xff] (!%p238_p2)   ;;  %v6411_v18 = vld [vmem:[%s8464_s1 + $0x28] sm:$0xff] (!%p238_p2)   ;;  %v6413_v20 = vld [vmem:[%s8464_s1 + $0xb0] sm:$0xff] (!%p238_p2)  }
   0xd   : > { %5381 = vmatprep.subr.bf16.mxu0 %v6400_v7  ;;  %6101 = vmatprep.subr.bf16.mxu1 %v6401_v8  ;;  %s8476_s25 = smov (!%p269_p3, %s4453_s25), 1  ;;  %v6414_v21 = vld [vmem:[%s8464_s1 + $0x30] sm:$0xff]   ;;  %v6415_v23 = vld [vmem:[%s8464_s1 + $0x78] sm:$0xff]   ;;  %v390_v29 = vld [vmem:[#allocation2 + $0x8] sm:$0x1f] }
   0xe   : > { %s4979_s16 = sshll.u32 %s8476_s25, 5  ;;  %v6416_v24 = vld [vmem:[%s8464_s1 + $0xb8] sm:$0xff]   ;;  %v6421_v34 = vld [vmem:[%s8464_s1 + $0x100] sm:$0xff]   ;;  %vm6778_vm2 = vmand %vm387_vm0, %vm388_vm1  ;;  %s4980_s28 = sshll.u32 %s8476_s25, 6 }
   0xf   : > { %s6757_s27 = scalar_lea.vmem %s8463_s0, %s4979_s16  ;;  %v6417_v25 = vld [vmem:[%s8464_s1 + $0x38] sm:$0xff]   ;;  %v393_v36 = vld [vmem:[#allocation2 + $0x10] sm:$0x1f]  ;;  %v6422_v41 = vld [vmem:[%s8464_s1 + $0x140] sm:$0xff]   ;;  %s8426_s8 = scalar_lea.vmem %s8470_s7, %s4980_s28 }
  0x10   : > { %5382 = vmatpush3.bf16.msra.mxu0 %v6402_v9  ;;  %6102 = vmatpush3.bf16.msra.mxu1 %v6401_v8  ;;  %v6418_v22 = vld [vmem:[%s6757_s27] ss:$0 sps:$4 sm:$0xff]   ;;  %v6419_v28 = vld [vmem:[%s6757_s27 + $0x4] ss:$0 sps:$4 sm:$0xff]   ;;  %v6420_v30 = vld [vmem:[%s6757_s27 + $0x8] ss:$0 sps:$4 sm:$0xff]  }
  0x11   : > { %5383 = vmatprep.subr.bf16.mxu0 %v6403_v10  ;;  %6103 = vmatprep.subr.bf16.mxu1 %v6404_v11  ;;  %v323_v26 = vshrl.u32 %v6418_v22, 16  ;;  %v326_v27 = vshll.u32 %v6418_v22, 16  ;;  %v330_v32 = vshrl.u32 %v6419_v28, 16  ;;  %v333_v33 = vshll.u32 %v6419_v28, 16  ;;  %v396_v45 = vld [vmem:[#allocation2 + $0x18] sm:$0x1f] }
  0x12   : > { %v337_v37 = vshrl.u32 %v6420_v30, 16  ;;  %v340_v38 = vshll.u32 %v6420_v30, 16  ;;  %v6426_v48 = vld [vmem:[%s6757_s27 + $0xc] ss:$0 sps:$4 sm:$0xff]   ;;  %v6427_v50 = vld [vmem:[%s6757_s27 + $0x10] ss:$0 sps:$4 sm:$0xff]  }
  0x13   : > { %v325_v31 = vrot.slane %v323_v26, 7  ;;  %v332_v40 = vrot.slane %v330_v32, 7  ;;  %v344_v51 = vshrl.u32 %v6426_v48, 16  ;;  %v347_v52 = vshll.u32 %v6426_v48, 16  ;;  %v399_v53 = vld [vmem:[#allocation2 + $0x20] sm:$0x1f] }
  0x14   : > { %5384 = vmatpush3.bf16.msra.mxu0 %v6405_v12  ;;  %6104 = vmatpush3.bf16.msra.mxu1 %v6404_v11  ;;  %v339_v42 = vrot.slane %v337_v37, 7  ;;  %v351_v54 = vshrl.u32 %v6427_v50, 16  ;;  %v354_v55 = vshll.u32 %v6427_v50, 16  ;;  %v402_v57 = vld [vmem:[#allocation2 + $0x28] sm:$0x1f]  ;;  %v6423_v58 = vld [vmem:[%s8464_s1 + $0xc0] sm:$0xff]  }
  0x15   : > { %5385 = vmatprep.subr.bf16.mxu0 %v6406_v13  ;;  %6105 = vmatprep.subr.bf16.mxu1 %v6407_v14  ;;  %v328_v39 = vor.u32 %v326_v27, %v325_v31  ;;  %v335_v44 = vor.u32 %v333_v33, %v332_v40  ;;  %v346_v56 = vrot.slane %v344_v51, 7  ;;  %v6429_v63 = vld [vmem:[%s8464_s1 + $0x148] sm:$0xff]   ;;  %v6433_v0 = vld [vmem:[%s6757_s27 + $0x14] ss:$0 sps:$4 sm:$0xff]   ;;  %v6434_v10 = vld [vmem:[%s6757_s27 + $0x18] ss:$0 sps:$4 sm:$0xff]  }
  0x16   : > { %v342_v46 = vor.u32 %v340_v38, %v339_v42  ;;  %v353_v59 = vrot.slane %v351_v54, 7  ;;  %v6424_v2 = vld [vmem:[%s8464_s1 + $0x108] sm:$0xff]   ;;  %v358_v8 = vshrl.u32 %v6433_v0, 16  ;;  %v361_v9 = vshll.u32 %v6433_v0, 16  ;;  %v6428_v11 = vld [vmem:[%s8464_s1 + $0x110] sm:$0xff]   ;;  %v6432_v27 = vld [vmem:[%s8464_s1 + $0xd8] sm:$0xff]  }
  0x17   : > { %v391_v43 = vsel %vm6778_vm2, %v328_v39, %v390_v29  ;;  %v394_v47 = vsel %vm6778_vm2, %v335_v44, %v393_v36  ;;  %v349_v61 = vor.u32 %v347_v52, %v346_v56  ;;  %v6425_v6 = vld [vmem:[%s8464_s1 + $0xc8] sm:$0xff]   ;;  %v405_v12 = vld [vmem:[#allocation2 + $0x30] sm:$0x1f]  ;;  %v6442_v31 = vld [vmem:[%s8464_s1 + $0x158] sm:$0xff]  }
  0x18   : > { %5386 = vmatpush3.bf16.msra.mxu0 %v6408_v15  ;;  %6106 = vmatpush3.bf16.msra.mxu1 %v6407_v14  ;;  %392 = vst [vmem:[#allocation2 + $0x8] sm:$0x1f] %v391_v43  ;;  %395 = vst [vmem:[#allocation2 + $0x10] sm:$0x1f] %v394_v47  ;;  %v397_v49 = vsel %vm6778_vm2, %v342_v46, %v396_v45  ;;  %v356_v62 = vor.u32 %v354_v55, %v353_v59  ;;  %v360_v13 = vrot.slane %v358_v8, 7  ;;  %v6435_v32 = vld [vmem:[%s8464_s1 + $0x120] sm:$0xff]  }
  0x19   : > { %5387 = vmatprep.subr.bf16.mxu0 %v6409_v16  ;;  %6107 = vmatprep.subr.bf16.mxu1 %v6410_v17  ;;  %398 = vst [vmem:[#allocation2 + $0x18] sm:$0x1f] %v397_v49  ;;  %v400_v4 = vsel %vm6778_vm2, %v349_v61, %v399_v53  ;;  %v365_v14 = vshrl.u32 %v6434_v10, 16  ;;  %v368_v15 = vshll.u32 %v6434_v10, 16  ;;  %v6436_v16 = vld [vmem:[%s8464_s1 + $0x150] sm:$0xff]   ;;  %v6437_v36 = vld [vmem:[%s8464_s1 + $0xe0] sm:$0xff]  }
  0x1a   : > { %401 = vst [vmem:[#allocation2 + $0x20] sm:$0x1f] %v400_v4  ;;  %v403_v7 = vsel %vm6778_vm2, %v356_v62, %v402_v57  ;;  %v6438_v38 = vld [vmem:[%s8464_s1 + $0x128] sm:$0xff]   ;;  %v6446_v39 = vld [vmem:[%s8464_s1 + $0x160] sm:$0xff]   ;;  %v6441_v44 = vld [vmem:[%s8464_s1 + $0x130] sm:$0xff]  }
  0x1b   : > { %404 = vst [vmem:[#allocation2 + $0x28] sm:$0x1f] %v403_v7  ;;  %v6447_v42 = vld [vmem:[%s8464_s1 + $0x168] sm:$0xff]   ;;  %v6448_v45 = vld [vmem:[%s8464_s1 + $0x170] sm:$0xff]   ;;  %v6444_v48 = vld [vmem:[%s8464_s1 + $0x138] sm:$0xff]  }
  0x1c   : > { %5388 = vmatpush3.bf16.msra.mxu0 %v6411_v18  ;;  %6108 = vmatpush3.bf16.msra.mxu1 %v6410_v17  ;;  %v363_v17 = vor.u32 %v361_v9, %v360_v13  ;;  %v367_v18 = vrot.slane %v365_v14, 7  ;;  %v6439_v35 = vld [vmem:[%s8464_s1 + $0xe8] sm:$0xff]   ;;  %v6443_v47 = vld [vmem:[%s8464_s1 + $0xf0] sm:$0xff]   ;;  %v6449_v49 = vld [vmem:[%s8464_s1 + $0x178] sm:$0xff]  }
  0x1d   : > { %5389 = vmatprep.subr.bf16.mxu0 %v6412_v19  ;;  %6109 = vmatprep.subr.bf16.mxu1 %v6413_v20  ;;  %v408_v19 = vld [vmem:[#allocation2 + $0x38] sm:$0x1f]  ;;  %v6450_v51 = vld [vmem:[%s8464_s1 + $0x200] sm:$0xff]   ;;  %v6455_v53 = vld [vmem:[%s8464_s1 + $0x208] sm:$0xff]  }
  0x1e   : > { %v370_v22 = vor.u32 %v368_v15, %v367_v18  ;;  %v6445_v50 = vld [vmem:[%s8464_s1 + $0xf8] sm:$0xff]   ;;  %v6451_v52 = vld [vmem:[%s8464_s1 + $0x1c0] sm:$0xff]   ;;  %v6458_v54 = vld [vmem:[%s8464_s1 + $0x210] sm:$0xff]  }
  0x1f   : > { %v6796_v60 = vld [vmem:[#allocation2 + $0x8] sm:$0xff]  ;;  %v6803_v1 = vld [vmem:[#allocation2 + $0x10] sm:$0xff]  ;;  %v6461_v55 = vld [vmem:[%s8464_s1 + $0x218] sm:$0xff]  }
  0x20   : > { %5390 = vmatpush3.bf16.msra.mxu0 %v6414_v21  ;;  %6110 = vmatpush3.bf16.msra.mxu1 %v6413_v20  ;;  %v6812_v5 = vld [vmem:[#allocation2 + $0x18] sm:$0xff]  ;;  %v6430_v20 = vld [vmem:[%s8464_s1 + $0xd0] sm:$0xff]   ;;  %v406_v21 = vsel %vm6778_vm2, %v363_v17, %v405_v12  ;;  %v409_v28 = vsel %vm6778_vm2, %v370_v22, %v408_v19  ;;  %v6467_v56 = vld [vmem:[%s8464_s1 + $0x228] sm:$0xff]  }
  0x21   : > { %5391 = vmatprep.subr.bf16.mxu0 %v6415_v23  ;;  %6111 = vmatprep.subr.bf16.mxu1 %v6416_v24  ;;  %v6440_v23 = vld [vmem:[%s6757_s27 + $0x1c] ss:$0 sps:$4 sm:$0xff]   ;;  %407 = vst [vmem:[#allocation2 + $0x30] sm:$0x1f] %v406_v21  ;;  %410 = vst [vmem:[#allocation2 + $0x38] sm:$0x1f] %v409_v28 }
  0x22   : > { %670 = vmatprep.mubr.bf16.mxu0 %v6796_v60  ;;  %6113 = vmatprep.mubr.bf16.mxu1 %v6803_v1  ;;  %v6841_v26 = vld [vmem:[#allocation2 + $0x28] sm:$0xff]  ;;  %v372_v29 = vshrl.u32 %v6440_v23, 16  ;;  %v375_v30 = vshll.u32 %v6440_v23, 16  ;;  %v6470_v57 = vld [vmem:[%s8464_s1 + $0x230] sm:$0xff]   ;;  %v6452_v59 = vld [vmem:[%s8464_s1 + $0x180] sm:$0xff]  }
  0x23   : > { %v6453_v61 = vld [vmem:[%s8464_s1 + $0x1c8] sm:$0xff]   ;;  %v6457_v0 = vld [vmem:[%s8464_s1 + $0x190] sm:$0xff]   ;;  %v6460_v4 = vld [vmem:[%s8464_s1 + $0x198] sm:$0xff]  }
  0x24   : > { %5392 = vmatpush3.bf16.msra.mxu0 %v6417_v25  ;;  %6112 = vmatpush3.bf16.msra.mxu1 %v6416_v24  ;;  %v6834_v24 = vld [vmem:[#allocation2 + $0x20] sm:$0xff]  ;;  %v6431_v25 = vld [vmem:[%s8464_s1 + $0x118] sm:$0xff]   ;;  %v374_v33 = vrot.slane %v372_v29, 7  ;;  %v6454_v62 = vld [vmem:[%s8464_s1 + $0x188] sm:$0xff]  }
  0x25   : > { %5457 = vmatprep.subr.bf16.mxu1 %v6421_v34  ;;  %6129 = vmatprep.subr.bf16.mxu0 %v6422_v41  ;;  %v411_v34 = vld [vmem:[#allocation2 + $0x40] sm:$0x1f]  ;;  %v6465_v8 = vld [vmem:[%s8464_s1 + $0x1e8] sm:$0xff]   ;;  %v6468_v10 = vld [vmem:[%s8464_s1 + $0x1f0] sm:$0xff]  }
  0x26   : > { %v377_v37 = vor.u32 %v375_v30, %v374_v33  ;;  %v6463_v7 = vld [vmem:[%s8464_s1 + $0x1a0] sm:$0xff]   ;;  %v6466_v9 = vld [vmem:[%s8464_s1 + $0x1a8] sm:$0xff]   ;;  %v6471_v12 = vld [vmem:[%s8464_s1 + $0x1f8] sm:$0xff]  }
  0x27   : > { %671 = vmatmul.mubr.bf16.vlgmr.msra.gmra.mrb[0].mxu0 %v6629_v3  ;;  %6114 = vmatmul.mubr.bf16.vlgmr.msra.gmra.mrb[0].mxu1 %v6812_v5  ;;  %v6472_v13 = vld [vmem:[%s8464_s1 + $0x1b8] sm:$0xff]   ;;  %v6618_v14 = vld [vmem:[#allocation2] sm:$0xff]  ;;  %v6477_v15 = vld [vmem:[%s8466_s3 + $0x48] sm:$0xff]  }
  0x28   : > { %6130 = vmatpush3.bf16.msra.mxu0 %v6422_v41  ;;  %678 = vmatprep.mubr.bf16.mxu0 %v6803_v1  ;;  %v6865_v40 = vld [vmem:[#allocation2 + $0x30] sm:$0xff]  ;;  %v412_v41 = vsel %vm6778_vm2, %v377_v37, %v411_v34  ;;  %v6874_v43 = vld [vmem:[#allocation2 + $0x38] sm:$0xff]  ;;  %v6479_v19 = vld [vmem:[%s8466_s3 + $0x88] sm:$0xff]   ;;  %v848_v34 = vlaneseq }
  0x29   : > { %5458 = vmatpush3.bf16.msra.mxu1 %v6423_v58  ;;  %6131 = vmatprep.subr.bf16.mxu0 %v6429_v63  ;;  %413 = vst [vmem:[#allocation2 + $0x40] sm:$0x1f] %v412_v41  ;;  %v6473_v58 = vld [vmem:[%s8464_s1 + $0x238] sm:$0xff]   ;;  %v6480_v17 = vld [vmem:[%s8466_s3 + $0x50] sm:$0xff]   ;;  %v6485_v22 = vld [vmem:[%s8466_s3 + $0x60] sm:$0xff]  }
  0x2a   : > { %5459 = vmatprep.subr.bf16.mxu1 %v6424_v2  ;;  %6117 = vmatprep.mubr.bf16.mxu1 %v6834_v24  ;;  %v6459_v2 = vld [vmem:[%s8464_s1 + $0x1d8] sm:$0xff]   ;;  %v6481_v18 = vld [vmem:[%s8466_s3 + $0x10] sm:$0xff]   ;;  %v6486_v23 = vld [vmem:[%s8466_s3 + $0x20] sm:$0xff]  }
  0x2b   : > { %v6483_v21 = vld [vmem:[%s8466_s3 + $0x18] sm:$0xff]   ;;  %v6491_v28 = vld [vmem:[%s8466_s3 + $0x30] sm:$0xff]   ;;  %v6495_v33 = vld [vmem:[%s8466_s3 + $0xa8] sm:$0xff]  }
  0x2c   : > { %6132 = vmatpush3.bf16.msra.mxu0 %v6429_v63  ;;  %v6456_v63 = vld [vmem:[%s8464_s1 + $0x1d0] sm:$0xff]   ;;  %v6489_v29 = vld [vmem:[%s8466_s3 + $0x98] sm:$0xff]  }
  0x2d   : > { %6133 = vmatprep.subr.bf16.mxu0 %v6436_v16  ;;  %5460 = vmatpush3.bf16.msra.mxu1 %v6425_v6  ;;  %v6462_v6 = vld [vmem:[%s8464_s1 + $0x1e0] sm:$0xff]   ;;  %v6492_v30 = vld [vmem:[%s8466_s3 + $0x78] sm:$0xff]  }
  0x2e   : > { %5461 = vmatprep.subr.bf16.mxu1 %v6428_v11  ;;  %v6469_v11 = vld [vmem:[%s8464_s1 + $0x1b0] sm:$0xff]  }
  0x2f   : > { %679 = vmatmul.mubr.bf16.gmra.mrb[4].mxu0 %v6796_v60  ;;  %6118 = vmatmul.mubr.bf16.gmra.mrb[4].mxu1 %v6841_v26 }
  0x30   : > { %686 = vmatprep.mubr.bf16.mxu0 %v6812_v5  ;;  %6134 = vmatpush3.bf16.msra.mxu0 %v6436_v16  ;;  %v6887_v46 = vld [vmem:[#allocation2 + $0x40] sm:$0xff]  ;;  %v6478_v16 = vld [vmem:[%s8466_s3 + $0x8] sm:$0xff]  }
  0x31   : > { %5462 = vmatpush3.bf16.msra.mxu1 %v6430_v20  ;;  %6135 = vmatprep.subr.bf16.mxu0 %v6442_v31  ;;  %v6482_v20 = vld [vmem:[%s8466_s3 + $0x58] sm:$0xff]  }
  0x32   : > { %5463 = vmatprep.subr.bf16.mxu1 %v6431_v25  ;;  %6121 = vmatprep.mubr.bf16.mxu1 %v6865_v40  ;;  %v6484_v25 = vld [vmem:[%s8466_s3 + $0x90] sm:$0xff]  }
  0x34   : > { %6136 = vmatpush3.bf16.msra.mxu0 %v6442_v31  ;;  %v6493_v31 = vld [vmem:[%s8466_s3 + $0x38] sm:$0xff]  }
  0x35   : > { %5464 = vmatpush3.bf16.msra.mxu1 %v6432_v27  ;;  %6137 = vmatprep.subr.bf16.mxu0 %v6446_v39  ;;  %v6490_v27 = vld [vmem:[%s8466_s3 + $0x70] sm:$0xff]  }
  0x36   : > { %5465 = vmatprep.subr.bf16.mxu1 %v6435_v32  ;;  %v6494_v32 = vld [vmem:[%s8466_s3 + $0xa0] sm:$0xff]  }
  0x37   : > { %687 = vmatmul.mubr.bf16.gmra.mrb[8].mxu0 %v6803_v1  ;;  %6122 = vmatmul.mubr.bf16.gmra.mrb[8].mxu1 %v6874_v43 }
  0x38   : > { %694 = vmatprep.mubr.bf16.mxu0 %v6834_v24  ;;  %6138 = vmatpush3.bf16.msra.mxu0 %v6446_v39 }
  0x39   : > { %5466 = vmatpush3.bf16.msra.mxu1 %v6437_v36  ;;  %6139 = vmatprep.subr.bf16.mxu0 %v6447_v42  ;;  %v6496_v36 = vld [vmem:[%s8466_s3 + $0xb0] sm:$0xff]  }
  0x3a   : > { %5467 = vmatprep.subr.bf16.mxu1 %v6438_v38  ;;  %6125 = vmatprep.mubr.bf16.mxu1 %v6887_v46 }
  0x3c   : > { %6140 = vmatpush3.bf16.msra.mxu0 %v6447_v42 }
  0x3d   : > { %5468 = vmatpush3.bf16.msra.mxu1 %v6439_v35  ;;  %6141 = vmatprep.subr.bf16.mxu0 %v6448_v45  ;;  %v7098_v35 = vshrl.u32 %v848_v34, 7 }
  0x3e   : > { %5469 = vmatprep.subr.bf16.mxu1 %v6441_v44  ;;  %v6497_v44 = vld [vmem:[%s8466_s3 + $0xb8] sm:$0xff]  }
  0x3f   : > { %695 = vmatmul.mubr.bf16.gmra.mrb[12].mxu0 %v6812_v5  ;;  %6126 = vmatmul.mubr.bf16.gmra.mrb[12].mxu1 %v6629_v3  ;;  %vm850_vm3 = vcmp.lt.s32.totalorder %v7098_v35, 1  ;;  %vm1689_vm4 = vcmp.lt.s32.totalorder %v7098_v35, 7  ;;  %vm1739_vm5 = vcmp.ge.s32.totalorder %v7098_v35, 1  ;;  %vm4373_vm8 = vcmp.lt.s32.totalorder %v7098_v35, 6 }
  0x40   : > { %702 = vmatprep.mubr.bf16.mxu0 %v6841_v26  ;;  %1108 = vmatprep.mubr.bf16.mxu1 %v6796_v60 }
  0x41   : > { %5470 = vmatpush3.bf16.msra.mxu1 %v6443_v47  ;;  %6142 = vmatpush3.bf16.msra.mxu0 %v6448_v45 }
  0x42   : > { %5471 = vmatprep.subr.bf16.mxu1 %v6444_v48  ;;  %6143 = vmatprep.subr.bf16.mxu0 %v6449_v49 }
  0x45   : > { %5472 = vmatpush3.bf16.msra.mxu1 %v6445_v50  ;;  %6144 = vmatpush3.bf16.msra.mxu0 %v6449_v49 }
  0x46   : > { %6161 = vmatprep.subr.bf16.mxu1 %v6450_v51  ;;  %5537 = vmatprep.subr.bf16.mxu0 %v6451_v52 }
  0x47   : > { %703 = vmatmul.mubr.bf16.gmra.mrb[16].mxu0 %v6834_v24 }
  0x48   : > { %710 = vmatprep.mubr.bf16.mxu0 %v6865_v40  ;;  %1109 = vmatmul.mubr.bf16.vlgmr.msra.gmra.mrb[16].mxu1 %v6629_v3  ;;  %v6464_v3 = vld [vmem:[%s8464_s1 + $0x220] sm:$0xff]  }
  0x49   : > { %1116 = vmatprep.mubr.bf16.mxu1 %v6803_v1  ;;  %6162 = vmatpush3.bf16.msra.mxu1 %v6450_v51 }
  0x4a   : > { %6163 = vmatprep.subr.bf16.mxu1 %v6455_v53 }
  0x4d   : > { %6164 = vmatpush3.bf16.msra.mxu1 %v6455_v53 }
  0x4e   : > { %6165 = vmatprep.subr.bf16.mxu1 %v6458_v54 }
  0x4f   : > { %711 = vmatmul.mubr.bf16.gmra.mrb[20].mxu0 %v6841_v26 }
  0x50   : > { %718 = vmatprep.mubr.bf16.mxu0 %v6874_v43  ;;  %1117 = vmatmul.mubr.bf16.gmra.mrb[20].mxu1 %v6796_v60 }
  0x51   : > { %1124 = vmatprep.mubr.bf16.mxu1 %v6812_v5  ;;  %6166 = vmatpush3.bf16.msra.mxu1 %v6458_v54 }
  0x52   : > { %6167 = vmatprep.subr.bf16.mxu1 %v6461_v55 }
  0x55   : > { %6168 = vmatpush3.bf16.msra.mxu1 %v6461_v55 }
  0x56   : > { %6169 = vmatprep.subr.bf16.mxu1 %v6464_v3 }
  0x57   : > { %719 = vmatmul.mubr.bf16.gmra.mrb[24].mxu0 %v6865_v40 }
  0x58   : > { %726 = vmatprep.mubr.bf16.mxu0 %v6887_v46  ;;  %1125 = vmatmul.mubr.bf16.gmra.mrb[24].mxu1 %v6803_v1 }
  0x59   : > { %1132 = vmatprep.mubr.bf16.mxu1 %v6834_v24  ;;  %6170 = vmatpush3.bf16.msra.mxu1 %v6464_v3 }
  0x5a   : > { %6171 = vmatprep.subr.bf16.mxu1 %v6467_v56 }
  0x5d   : > { %6172 = vmatpush3.bf16.msra.mxu1 %v6467_v56 }
  0x5e   : > { %6173 = vmatprep.subr.bf16.mxu1 %v6470_v57 }
  0x5f   : > { %727 = vmatmul.mubr.bf16.gmra.mrb[28].mxu0 %v6874_v43 }
  0x60   : > { %6145 = vmatprep.mubr.bf16.mxu0 %v6803_v1  ;;  %1133 = vmatmul.mubr.bf16.gmra.mrb[28].mxu1 %v6812_v5 }
  0x61   : > { %1140 = vmatprep.mubr.bf16.mxu1 %v6841_v26  ;;  %6174 = vmatpush3.bf16.msra.mxu1 %v6470_v57 }
  0x62   : > { %6175 = vmatprep.subr.bf16.mxu1 %v6473_v58 }
  0x65   : > { %6176 = vmatpush3.bf16.msra.mxu1 %v6473_v58 }
  0x67   : > { %6146 = vmatmul.mubr.bf16.vlgmr.msra.gmra.mrb[32].mxu0 %v6812_v5 }
  0x68   : > { %5538 = vmatpush3.bf16.msra.mxu0 %v6452_v59  ;;  %6149 = vmatprep.mubr.bf16.mxu0 %v6834_v24 }
  0x69   : > { %1141 = vmatmul.mubr.bf16.gmra.mrb[32].mxu1 %v6834_v24  ;;  %5539 = vmatprep.subr.bf16.mxu0 %v6453_v61 }
  0x6a   : > { %1148 = vmatprep.mubr.bf16.mxu1 %v6865_v40 }
  0x6c   : > { %5540 = vmatpush3.bf16.msra.mxu0 %v6454_v62 }
  0x6d   : > { %5541 = vmatprep.subr.bf16.mxu0 %v6456_v63 }
  0x6f   : > { %6150 = vmatmul.mubr.bf16.gmra.mrb[36].mxu0 %v6841_v26 }
  0x70   : > { %5542 = vmatpush3.bf16.msra.mxu0 %v6457_v0  ;;  %6153 = vmatprep.mubr.bf16.mxu0 %v6865_v40 }
  0x71   : > { %1149 = vmatmul.mubr.bf16.gmra.mrb[36].mxu1 %v6841_v26  ;;  %5543 = vmatprep.subr.bf16.mxu0 %v6459_v2 }
  0x72   : > { %1156 = vmatprep.mubr.bf16.mxu1 %v6874_v43 }
  0x74   : > { %5544 = vmatpush3.bf16.msra.mxu0 %v6460_v4 }
  0x75   : > { %5545 = vmatprep.subr.bf16.mxu0 %v6462_v6 }
  0x77   : > { %6154 = vmatmul.mubr.bf16.gmra.mrb[40].mxu0 %v6874_v43 }
  0x78   : > { %5546 = vmatpush3.bf16.msra.mxu0 %v6463_v7  ;;  %6157 = vmatprep.mubr.bf16.mxu0 %v6887_v46 }
  0x79   : > { %1157 = vmatmul.mubr.bf16.gmra.mrb[40].mxu1 %v6865_v40  ;;  %5547 = vmatprep.subr.bf16.mxu0 %v6465_v8 }
  0x7a   : > { %1164 = vmatprep.mubr.bf16.mxu1 %v6887_v46 }
  0x7c   : > { %5548 = vmatpush3.bf16.msra.mxu0 %v6466_v9 }
  0x7d   : > { %5549 = vmatprep.subr.bf16.mxu0 %v6468_v10 }
  0x7f   : > { %6158 = vmatmul.mubr.bf16.gmra.mrb[44].mxu0 %v6618_v14 }
  0x80   : > { %5550 = vmatpush3.bf16.msra.mxu0 %v6469_v11  ;;  %1511 = vmatprep.mubr.bf16.mxu0 %v6796_v60 }
  0x81   : > { %1165 = vmatmul.mubr.bf16.gmra.mrb[44].mxu1 %v6874_v43  ;;  %5551 = vmatprep.subr.bf16.mxu0 %v6471_v12 }
  0x82   : > { %6177 = vmatprep.mubr.bf16.mxu1 %v6803_v1 }
  0x84   : > { %5552 = vmatpush3.bf16.msra.mxu0 %v6472_v13 }
  0x87   : > { %1512 = vmatmul.mubr.bf16.vlgmr.msra.gmra.mrb[48].mxu0 %v6618_v14 }
  0x88   : > { %1519 = vmatprep.mubr.bf16.mxu0 %v6803_v1 }
  0x89   : > { %6178 = vmatmul.mubr.bf16.vlgmr.msra.gmra.mrb[48].mxu1 %v6812_v5 }
  0x8a   : > { %6181 = vmatprep.mubr.bf16.mxu1 %v6834_v24 }
  0x8f   : > { %1520 = vmatmul.mubr.bf16.gmra.mrb[52].mxu0 %v6796_v60  ;;  %v6474_v60 = vld [vmem:[%s8466_s3 + $0x80] sm:$0xff]  }
  0x90   : > { %1527 = vmatprep.mubr.bf16.mxu0 %v6812_v5  ;;  %6193 = vmatprep.subr.bf16.mxu0 %v6474_v60 }
  0x91   : > { %6182 = vmatmul.mubr.bf16.gmra.mrb[52].mxu1 %v6841_v26  ;;  %6194 = vmatpush3.bf16.msra.mxu0 %v6474_v60 }
  0x92   : > { %6185 = vmatprep.mubr.bf16.mxu1 %v6865_v40  ;;  %6195 = vmatprep.subr.bf16.mxu0 %v6479_v19 }
  0x95   : > { %6196 = vmatpush3.bf16.msra.mxu0 %v6479_v19  ;;  %v6499_v19 = vld [vmem:[%s8466_s3 + $0x100] sm:$0xff]  }
  0x96   : > { %6197 = vmatprep.subr.bf16.mxu0 %v6484_v25 }
  0x97   : > { %1528 = vmatmul.mubr.bf16.gmra.mrb[56].mxu0 %v6803_v1  ;;  %v6475_v1 = vld [vmem:[%s8466_s3 + $0x40] sm:$0xff]  }
  0x98   : > { %1535 = vmatprep.mubr.bf16.mxu0 %v6834_v24  ;;  %5617 = vmatprep.subr.bf16.mxu1 %v6475_v1 }
  0x99   : > { %6186 = vmatmul.mubr.bf16.gmra.mrb[56].mxu1 %v6874_v43  ;;  %6198 = vmatpush3.bf16.msra.mxu0 %v6484_v25 }
  0x9a   : > { %6189 = vmatprep.mubr.bf16.mxu1 %v6887_v46  ;;  %6199 = vmatprep.subr.bf16.mxu0 %v6489_v29 }
  0x9d   : > { %6200 = vmatpush3.bf16.msra.mxu0 %v6489_v29 }
  0x9e   : > { %6201 = vmatprep.subr.bf16.mxu0 %v6494_v32 }
  0x9f   : > { %1536 = vmatmul.mubr.bf16.gmra.mrb[60].mxu0 %v6812_v5  ;;  %v6476_v5 = vld [vmem:[%s8466_s3] sm:$0xff]  }
  0xa0   : > { %1543 = vmatprep.mubr.bf16.mxu0 %v6841_v26  ;;  %5618 = vmatpush3.bf16.msra.mxu1 %v6476_v5 }
  0xa1   : > { %6190 = vmatmul.mubr.bf16.gmra.mrb[60].mxu1 %v6618_v14  ;;  %5619 = vmatprep.subr.bf16.mxu1 %v6477_v15 }
  0xa2   : > { %6202 = vmatpush3.bf16.msra.mxu0 %v6494_v32 }
  0xa3   : > { %6203 = vmatprep.subr.bf16.mxu0 %v6495_v33 }
  0xa4   : > { %5620 = vmatpush3.bf16.msra.mxu1 %v6478_v16  ;;  %v7124_v16 = vld [vmem:[%s8466_s3 + $0x140] sm:$0xff]  }
  0xa5   : > { %5621 = vmatprep.subr.bf16.mxu1 %v6480_v17 }
  0xa6   : > { %6204 = vmatpush3.bf16.msra.mxu0 %v6495_v33 }
  0xa7   : > { %1544 = vmatmul.mubr.bf16.gmra.mrb[64].mxu0 %v6834_v24  ;;  %v6487_v24 = vld [vmem:[%s8466_s3 + $0x68] sm:$0xff]   ;;  %6205 = vmatprep.subr.bf16.mxu0 %v6496_v36 }
  0xa8   : > { %1551 = vmatprep.mubr.bf16.mxu0 %v6865_v40  ;;  %5622 = vmatpush3.bf16.msra.mxu1 %v6481_v18 }
  0xa9   : > { %5623 = vmatprep.subr.bf16.mxu1 %v6482_v20 }
  0xaa   : > { %6206 = vmatpush3.bf16.msra.mxu0 %v6496_v36 }
  0xab   : > { %6207 = vmatprep.subr.bf16.mxu0 %v6497_v44 }
  0xac   : > { %5624 = vmatpush3.bf16.msra.mxu1 %v6483_v21 }
  0xad   : > { %5625 = vmatprep.subr.bf16.mxu1 %v6485_v22 }
  0xae   : > { %6208 = vmatpush3.bf16.msra.mxu0 %v6497_v44 }
  0xaf   : > { %1552 = vmatmul.mubr.bf16.gmra.mrb[68].mxu0 %v6841_v26  ;;  %v6488_v26 = vld [vmem:[%s8466_s3 + $0x28] sm:$0xff]   ;;  %5697 = vmatprep.subr.bf16.mxu0 %v6499_v19 }
  0xb0   : > { %1559 = vmatprep.mubr.bf16.mxu0 %v6874_v43  ;;  %5626 = vmatpush3.bf16.msra.mxu1 %v6486_v23 }
  0xb1   : > { %5627 = vmatprep.subr.bf16.mxu1 %v6487_v24 }
  0xb4   : > { %5628 = vmatpush3.bf16.msra.mxu1 %v6488_v26 }
  0xb5   : > { %5629 = vmatprep.subr.bf16.mxu1 %v6490_v27 }
  0xb7   : > { %1560 = vmatmul.mubr.bf16.gmra.mrb[72].mxu0 %v6865_v40 }
  0xb8   : > { %1567 = vmatprep.mubr.bf16.mxu0 %v6887_v46  ;;  %5630 = vmatpush3.bf16.msra.mxu1 %v6491_v28 }
  0xb9   : > { %5631 = vmatprep.subr.bf16.mxu1 %v6492_v30 }
  0xbc   : > { %5632 = vmatpush3.bf16.msra.mxu1 %v6493_v31 }
  0xbd   : > { %6225 = vmatprep.subr.bf16.mxu1 %v7124_v16 }
  0xbf   : > { %1568 = vmatmul.mubr.bf16.gmra.mrb[76].mxu0 %v6874_v43 }
  0xfa   : > { %v5393_v37 = vpop.f32.mrb[0].mxu0  ;;  %v6115_v41 = vpop.f32.mrb[0].mxu1 }
  0xfb   : > { %v5394_v38 = vpop.f32.mrb[1].mxu0  ;;  %v769_v43 = vpop.f32.mrb[1].mxu1 }
  0xfc   : > { %v5395_v39 = vadd.f32 %v5394_v38, %v5393_v37  ;;  %v5396_v40 = vpop.f32.mrb[2].mxu0  ;;  %v6116_v47 = vpop.f32.mrb[2].mxu1 }
  0xfd   : > { %v5397_v42 = vpop.f32.mrb[3].mxu0  ;;  %v772_v48 = vpop.f32.mrb[3].mxu1 }
  0xfe   : > { %v5398_v45 = vadd.f32 %v5397_v42, %v5396_v40  ;;  %v7103_v46 = vadd.f32 %v5395_v39, %v769_v43 }
 0x100   : > { %v773_v49 = vadd.f32 %v5398_v45, %v772_v48  ;;  %v832_v50 = vrot.slane %v7103_v46, 7 }
 0x102   : > { %v833_v51 = vrot.slane %v773_v49, 7  ;;  %v5399_v52 = vpop.f32.mrb[4].mxu0  ;;  %v6119_v3 = vpop.f32.mrb[4].mxu1 }
 0x103   : > { %v5400_v53 = vpop.f32.mrb[5].mxu0  ;;  %v785_v58 = vpop.f32.mrb[5].mxu1 }
 0x104   : > { %v5401_v54 = vadd.f32 %v5400_v53, %v5399_v52  ;;  %v5402_v55 = vpop.f32.mrb[6].mxu0  ;;  %v7111_v56 = vsel %vm850_vm3, %v832_v50, %v833_v51  ;;  %v6120_v62 = vpop.f32.mrb[6].mxu1 }
 0x105   : > { %v5403_v57 = vpop.f32.mrb[7].mxu0  ;;  %v788_v63 = vpop.f32.mrb[7].mxu1 }
 0x106   : > { %v778_v59 = vadd.f32 %v6115_v41, %v5401_v54  ;;  %v5404_v61 = vadd.f32 %v5403_v57, %v5402_v55 }
 0x108   : > { %v834_v0 = vrot.slane %v778_v59, 7  ;;  %v781_v2 = vadd.f32 %v6116_v47, %v5404_v61 }
 0x10a   : > { %v835_v4 = vrot.slane %v781_v2, 7  ;;  %v5405_v6 = vpop.f32.mrb[8].mxu0  ;;  %v7115_v7 = vsel %vm850_vm3, %v833_v51, %v834_v0  ;;  %v6123_v11 = vpop.f32.mrb[8].mxu1 }
 0x10b   : > { %v5406_v8 = vpop.f32.mrb[9].mxu0  ;;  %v801_v14 = vpop.f32.mrb[9].mxu1 }
 0x10c   : > { %v5407_v9 = vadd.f32 %v5406_v8, %v5405_v6  ;;  %v5408_v10 = vpop.f32.mrb[10].mxu0  ;;  %v7119_v12 = vsel %vm850_vm3, %v834_v0, %v835_v4  ;;  %v6124_v5 = vpop.f32.mrb[10].mxu1 }
 0x10d   : > { %v5409_v13 = vpop.f32.mrb[11].mxu0  ;;  %v804_v15 = vpop.f32.mrb[11].mxu1 }
 0x10e   : > { %v5410_v60 = vadd.f32 %v5409_v13, %v5408_v10  ;;  %v786_v1 = vadd.f32 %v5407_v9, %v785_v58 }
 0x110   : > { %v836_v17 = vrot.slane %v786_v1, 7  ;;  %v789_v18 = vadd.f32 %v5410_v60, %v788_v63 }
 0x112   : > { %v837_v20 = vrot.slane %v789_v18, 7  ;;  %v5411_v21 = vpop.f32.mrb[12].mxu0  ;;  %v7132_v22 = vsel %vm850_vm3, %v835_v4, %v836_v17  ;;  %v7134_v26 = vpop.f32.mrb[12].mxu1 }
 0x113   : > { %v5412_v23 = vpop.f32.mrb[13].mxu0  ;;  %v817_v29 = vpop.f32.mrb[13].mxu1 }
 0x114   : > { %v5413_v24 = vadd.f32 %v5412_v23, %v5411_v21  ;;  %v5414_v25 = vpop.f32.mrb[14].mxu0  ;;  %v7138_v27 = vsel %vm850_vm3, %v836_v17, %v837_v20  ;;  %v7140_v32 = vpop.f32.mrb[14].mxu1 }
 0x115   : > { %v5415_v28 = vpop.f32.mrb[15].mxu0  ;;  %v820_v33 = vpop.f32.mrb[15].mxu1 }
 0x116   : > { %v794_v30 = vadd.f32 %v6119_v3, %v5413_v24  ;;  %v5416_v31 = vadd.f32 %v5415_v28, %v5414_v25 }
 0x118   : > { %v838_v34 = vrot.slane %v794_v30, 7  ;;  %v797_v36 = vadd.f32 %v6120_v62, %v5416_v31 }
 0x11a   : > { %v839_v37 = vrot.slane %v797_v36, 7  ;;  %v5417_v38 = vpop.f32.mrb[16].mxu0  ;;  %v7144_v39 = vsel %vm850_vm3, %v837_v20, %v838_v34 }
 0x11b   : > { %v5418_v40 = vpop.f32.mrb[17].mxu0  ;;  %v5473_v43 = vpop.f32.mrb[16].mxu1 }
 0x11c   : > { %v5419_v41 = vadd.f32 %v5418_v40, %v5417_v38  ;;  %v5420_v42 = vpop.f32.mrb[18].mxu0  ;;  %v7148_v44 = vsel %vm850_vm3, %v838_v34, %v839_v37  ;;  %v5474_v47 = vpop.f32.mrb[17].mxu1 }
 0x11d   : > { %v5421_v45 = vpop.f32.mrb[19].mxu0  ;;  %v7150_v51 = vadd.f32 %v5474_v47, %v5473_v43  ;;  %v5476_v52 = vpop.f32.mrb[18].mxu1 }
 0x11e   : > { %v5422_v48 = vadd.f32 %v5421_v45, %v5420_v42  ;;  %v802_v49 = vadd.f32 %v5419_v41, %v801_v14  ;;  %v5477_v53 = vpop.f32.mrb[19].mxu1 }
 0x11f   : > { %v7152_v3 = vadd.f32 %v5477_v53, %v5476_v52 }
 0x120   : > { %v840_v54 = vrot.slane %v802_v49, 7  ;;  %v805_v55 = vadd.f32 %v5422_v48, %v804_v15 }
 0x122   : > { %v841_v57 = vrot.slane %v805_v55, 7  ;;  %v5423_v58 = vpop.f32.mrb[20].mxu0  ;;  %v7156_v59 = vsel %vm850_vm3, %v839_v37, %v840_v54 }
 0x123   : > { %v5424_v61 = vpop.f32.mrb[21].mxu0  ;;  %v5479_v0 = vpop.f32.mrb[20].mxu1 }
 0x124   : > { %v5425_v62 = vadd.f32 %v5424_v61, %v5423_v58  ;;  %v5426_v63 = vpop.f32.mrb[22].mxu0  ;;  %v7160_v2 = vsel %vm850_vm3, %v840_v54, %v841_v57  ;;  %v5480_v6 = vpop.f32.mrb[21].mxu1 }
 0x125   : > { %v5427_v4 = vpop.f32.mrb[23].mxu0  ;;  %v5481_v10 = vadd.f32 %v5480_v6, %v5479_v0  ;;  %v5482_v13 = vpop.f32.mrb[22].mxu1 }
 0x126   : > { %v810_v8 = vadd.f32 %v6123_v11, %v5425_v62  ;;  %v5428_v9 = vadd.f32 %v5427_v4, %v5426_v63  ;;  %v5483_v14 = vpop.f32.mrb[23].mxu1  ;;  %v7183_v4 = vld [vmem:[%s8465_s2] ss:$0 sm:$0xff] }
 0x127   : > { %v5484_v15 = vadd.f32 %v5483_v14, %v5482_v13 }
 0x128   : > { %v842_v60 = vrot.slane %v810_v8, 7  ;;  %v813_v1 = vadd.f32 %v6124_v5, %v5428_v9 }
 0x12a   : > { %v843_v17 = vrot.slane %v813_v1, 7  ;;  %v5429_v18 = vpop.f32.mrb[24].mxu0  ;;  %v7164_v19 = vsel %vm850_vm3, %v841_v57, %v842_v60 }
 0x12b   : > { %v5430_v20 = vpop.f32.mrb[25].mxu0  ;;  %v5485_v24 = vpop.f32.mrb[24].mxu1 }
 0x12c   : > { %v5431_v21 = vadd.f32 %v5430_v20, %v5429_v18  ;;  %v5432_v23 = vpop.f32.mrb[26].mxu0  ;;  %v7168_v11 = vsel %vm850_vm3, %v842_v60, %v843_v17  ;;  %v5486_v28 = vpop.f32.mrb[25].mxu1 }
 0x12d   : > { %v5433_v25 = vpop.f32.mrb[27].mxu0  ;;  %v5487_v5 = vadd.f32 %v5486_v28, %v5485_v24  ;;  %v5488_v34 = vpop.f32.mrb[26].mxu1 }
 0x12e   : > { %v5434_v30 = vadd.f32 %v5433_v25, %v5432_v23  ;;  %v818_v31 = vadd.f32 %v5431_v21, %v817_v29  ;;  %v5489_v36 = vpop.f32.mrb[27].mxu1 }
 0x12f   : > { %v5490_v40 = vadd.f32 %v5489_v36, %v5488_v34 }
 0x130   : > { %v844_v37 = vrot.slane %v818_v31, 7  ;;  %v821_v38 = vadd.f32 %v5434_v30, %v820_v33 }
 0x132   : > { %v845_v41 = vrot.slane %v821_v38, 7  ;;  %v5435_v42 = vpop.f32.mrb[28].mxu0  ;;  %v7172_v43 = vsel %vm850_vm3, %v843_v17, %v844_v37 }
 0x133   : > { %v5436_v45 = vpop.f32.mrb[29].mxu0  ;;  %v5491_v49 = vpop.f32.mrb[28].mxu1 }
 0x134   : > { %v5437_v47 = vadd.f32 %v5436_v45, %v5435_v42  ;;  %v5438_v48 = vpop.f32.mrb[30].mxu0  ;;  %v7176_v52 = vsel %vm850_vm3, %v844_v37, %v845_v41  ;;  %v5492_v53 = vpop.f32.mrb[29].mxu1  ;;  %v874_v45 = vadd.f32 %v7183_v4, %v7148_v44  ;;  %v877_v44 = vadd.f32 %v7183_v4, %v7164_v19 }
 0x135   : > { %v5439_v29 = vpop.f32.mrb[31].mxu0  ;;  %v5493_v55 = vadd.f32 %v5492_v53, %v5491_v49  ;;  %v5494_v57 = vpop.f32.mrb[30].mxu1  ;;  %v876_v19 = vadd.f32 %v7183_v4, %v7160_v2 }
 0x136   : > { %v826_v54 = vadd.f32 %v7134_v26, %v5437_v47  ;;  %v5440_v33 = vadd.f32 %v5439_v29, %v5438_v48  ;;  %v5495_v58 = vpop.f32.mrb[31].mxu1  ;;  %v869_v26 = vadd.f32 %v7183_v4, %v7115_v7  ;;  %v870_v7 = vadd.f32 %v7183_v4, %v7119_v12 }
 0x137   : > { %v5496_v63 = vadd.f32 %v5495_v58, %v5494_v57  ;;  %v873_v12 = vadd.f32 %v7183_v4, %v7144_v39  ;;  %v872_v39 = vadd.f32 %v7183_v4, %v7138_v27 }
 0x138   : > { %v846_v61 = vrot.slane %v826_v54, 7  ;;  %v829_v62 = vadd.f32 %v7140_v32, %v5440_v33 }
 0x13a   : > { %v847_v0 = vrot.slane %v829_v62, 7  ;;  %v6147_v6 = vpop.f32.mrb[32].mxu0  ;;  %v7187_v8 = vsel %vm850_vm3, %v845_v41, %v846_v61 }
 0x13b   : > { %v1216_v9 = vadd.f32 %v6147_v6, %v5481_v10  ;;  %v1207_v13 = vpop.f32.mrb[33].mxu0 }
 0x13c   : > { %v866_v32 = vsel %vm850_vm3, %v847_v0, %v832_v50  ;;  %v1208_v14 = vadd.f32 %v7150_v51, %v1207_v13  ;;  %v6148_v60 = vpop.f32.mrb[34].mxu0  ;;  %v5497_v1 = vpop.f32.mrb[32].mxu1  ;;  %v7198_v17 = vsel %vm850_vm3, %v846_v61, %v847_v0  ;;  %v868_v50 = vadd.f32 %v7183_v4, %v7111_v56 }
 0x13d   : > { %v7200_v18 = vadd.f32 %v1216_v9, %v869_v26  ;;  %v867_v20 = vadd.f32 %v7183_v4, %v866_v32  ;;  %v1219_v10 = vadd.f32 %v6148_v60, %v5484_v15  ;;  %v1210_v46 = vpop.f32.mrb[35].mxu0  ;;  %v5498_v21 = vpop.f32.mrb[33].mxu1  ;;  %v871_v56 = vadd.f32 %v7183_v4, %v7132_v22 }
 0x13e   : > { %v1211_v51 = vadd.f32 %v7152_v3, %v1210_v46  ;;  %v5499_v23 = vadd.f32 %v5498_v21, %v5497_v1  ;;  %v5500_v24 = vpop.f32.mrb[34].mxu1  ;;  %v878_v26 = vadd.f32 %v7183_v4, %v7168_v11 }
 0x13f   : > { %v7208_v25 = vadd.f32 %v1208_v14, %v867_v20  ;;  %v7210_v28 = vadd.f32 %v1219_v10, %v870_v7  ;;  %v5501_v30 = vpop.f32.mrb[35].mxu1 }
 0x140   : > { %v7212_v31 = vadd.f32 %v1211_v51, %v868_v50  ;;  %v5502_v34 = vadd.f32 %v5501_v30, %v5500_v24  ;;  %v879_v51 = vadd.f32 %v7183_v4, %v7172_v43 }
 0x142   : > { %v6151_v36 = vpop.f32.mrb[36].mxu0 }
 0x143   : > { %v1232_v15 = vadd.f32 %v6151_v36, %v5493_v55  ;;  %v1223_v37 = vpop.f32.mrb[37].mxu0 }
 0x144   : > { %v1224_v3 = vadd.f32 %v5487_v5, %v1223_v37  ;;  %v6152_v38 = vpop.f32.mrb[38].mxu0  ;;  %v5503_v41 = vpop.f32.mrb[36].mxu1 }
 0x145   : > { %v7218_v42 = vadd.f32 %v1232_v15, %v873_v12  ;;  %v1235_v47 = vadd.f32 %v6152_v38, %v5496_v63  ;;  %v1226_v48 = vpop.f32.mrb[39].mxu0  ;;  %v5504_v49 = vpop.f32.mrb[37].mxu1  ;;  %v875_v63 = vadd.f32 %v7183_v4, %v7156_v59  ;;  %v880_v15 = vadd.f32 %v7183_v4, %v7176_v52 }
 0x146   : > { %v7222_v29 = vadd.f32 %v1224_v3, %v871_v56  ;;  %v1227_v53 = vadd.f32 %v5490_v40, %v1226_v48  ;;  %v5505_v54 = vadd.f32 %v5504_v49, %v5503_v41  ;;  %v5506_v33 = vpop.f32.mrb[38].mxu1  ;;  %v881_v3 = vadd.f32 %v7183_v4, %v7187_v8 }
 0x147   : > { %v7226_v22 = vadd.f32 %v1235_v47, %v874_v45  ;;  %v5507_v5 = vpop.f32.mrb[39].mxu1  ;;  %v882_v47 = vadd.f32 %v7183_v4, %v7198_v17 }
 0x148   : > { %v7228_v55 = vadd.f32 %v1227_v53, %v872_v39  ;;  %v5508_v57 = vadd.f32 %v5507_v5, %v5506_v33 }
 0x14a   : > { %v6155_v58 = vpop.f32.mrb[40].mxu0 }
 0x14b   : > { %v1248_v61 = vadd.f32 %v6155_v58, %v5505_v54  ;;  %v1239_v62 = vpop.f32.mrb[41].mxu0 }
 0x14c   : > { %v1240_v0 = vadd.f32 %v5499_v23, %v1239_v62  ;;  %v6156_v27 = vpop.f32.mrb[42].mxu0  ;;  %v5509_v40 = vpop.f32.mrb[40].mxu1 }
 0x14d   : > { %v7234_v6 = vadd.f32 %v1248_v61, %v877_v44  ;;  %v1251_v9 = vadd.f32 %v6156_v27, %v5508_v57  ;;  %v1242_v13 = vpop.f32.mrb[43].mxu0  ;;  %v5510_v32 = vpop.f32.mrb[41].mxu1 }
 0x14e   : > { %v7238_v14 = vadd.f32 %v1240_v0, %v875_v63  ;;  %v1243_v60 = vadd.f32 %v5502_v34, %v1242_v13  ;;  %v5511_v1 = vadd.f32 %v5510_v32, %v5509_v40  ;;  %v5512_v20 = vpop.f32.mrb[42].mxu1 }
 0x14f   : > { %v7242_v59 = vadd.f32 %v1251_v9, %v878_v26  ;;  %v5513_v7 = vpop.f32.mrb[43].mxu1 }
 0x150   : > { %v7244_v10 = vadd.f32 %v1243_v60, %v876_v19  ;;  %v5514_v46 = vadd.f32 %v5513_v7, %v5512_v20 }
 0x152   : > { %v6159_v21 = vpop.f32.mrb[44].mxu0 }
 0x153   : > { %v1255_v50 = vpop.f32.mrb[45].mxu0 }
 0x154   : > { %v5515_v11 = vpop.f32.mrb[44].mxu1  ;;  %v1256_v23 = vadd.f32 %v5511_v1, %v1255_v50  ;;  %v6160_v24 = vpop.f32.mrb[46].mxu0 }
 0x155   : > { %v5516_v30 = vpop.f32.mrb[45].mxu1  ;;  %v1258_v36 = vpop.f32.mrb[47].mxu0 }
 0x156   : > { %v5517_v2 = vadd.f32 %v5516_v30, %v5515_v11  ;;  %v7248_v34 = vadd.f32 %v1256_v23, %v879_v51  ;;  %v5518_v12 = vpop.f32.mrb[46].mxu1  ;;  %v1259_v37 = vadd.f32 %v5514_v46, %v1258_v36  ;;  %v1738_v46 = vadd.s32 8, %v7098_v35 }
 0x157   : > { %v5519_v56 = vpop.f32.mrb[47].mxu1 }
 0x158   : > { %v1264_v38 = vadd.f32 %v6159_v21, %v5517_v2  ;;  %v5520_v41 = vadd.f32 %v5519_v56, %v5518_v12  ;;  %v7254_v45 = vadd.f32 %v1259_v37, %v880_v15  ;;  %vm1742_vm6 = vcmp.le.s32.totalorder %v1738_v46, 8 }
 0x159   : > { %vm7281_vm7 = vmpackc.low %vm1742_vm6, %vm1739_vm5 }
 0x15a   : > { %v7256_v43 = vadd.f32 %v1264_v38, %v881_v3  ;;  %v1267_v48 = vadd.f32 %v6160_v24, %v5520_v41  ;;  %v5553_v49 = vpop.f32.mrb[48].mxu0 }
 0x15b   : > { %v5554_v39 = vpop.f32.mrb[49].mxu0 }
 0x15c   : > { %v7260_v53 = vadd.f32 %v1267_v48, %v882_v47  ;;  %v5555_v52 = vadd.f32 %v5554_v39, %v5553_v49  ;;  %v5556_v54 = vpop.f32.mrb[50].mxu0  ;;  %v6179_v33 = vpop.f32.mrb[48].mxu1 }
 0x15d   : > { %v5557_v5 = vpop.f32.mrb[51].mxu0  ;;  %v1610_v57 = vpop.f32.mrb[49].mxu1 }
 0x15e   : > { %v5558_v8 = vadd.f32 %v5557_v5, %v5556_v54  ;;  %v7262_v58 = vadd.f32 %v5555_v52, %v1610_v57  ;;  %v6180_v44 = vpop.f32.mrb[50].mxu1 }
 0x15f   : > { %v1613_v61 = vpop.f32.mrb[51].mxu1 }
 0x160   : > { %v1614_v62 = vadd.f32 %v5558_v8, %v1613_v61  ;;  %v1673_v4 = vrot.slane %v7262_v58, 1  ;;  %v7297_v8 = vld [vmem:[#allocation2] sm:$0xff]  ;;  %v6525_v58 = vld [vmem:[%s8466_s3 + $0x1c8] sm:$0xff]  }
 0x162   : > { %v1674_v17 = vrot.slane %v1614_v62, 1  ;;  %v5559_v63 = vpop.f32.mrb[52].mxu0 }
 0x163   : > { %v5560_v0 = vpop.f32.mrb[53].mxu0 }
 0x164   : > { %v1704_v27 = vsel %vm1689_vm4, %v1673_v4, %v1674_v17  ;;  %v5561_v40 = vadd.f32 %v5560_v0, %v5559_v63  ;;  %v5562_v26 = vpop.f32.mrb[54].mxu0  ;;  %v6183_v9 = vpop.f32.mrb[52].mxu1 }
 0x165   : > { %v1706_v13 = vadd.f32 %v1704_v27, %v7208_v25  ;;  %v5563_v32 = vpop.f32.mrb[55].mxu0  ;;  %v1626_v19 = vpop.f32.mrb[53].mxu1  ;;  %v6505_v27 = vld [vmem:[%s8466_s3 + $0x150] sm:$0xff]  }
 0x166   : > { %v1619_v60 = vadd.f32 %v6179_v33, %v5561_v40  ;;  %v5564_v1 = vadd.f32 %v5563_v32, %v5562_v26  ;;  %v6184_v20 = vpop.f32.mrb[54].mxu1  ;;  %v6500_v33 = vld [vmem:[%s8466_s3 + $0x148] sm:$0xff]  }
 0x167   : > { %v1629_v7 = vpop.f32.mrb[55].mxu1  ;;  %v1722_v15 = vmax.f32 %v1706_v13, 0.0 }
 0x168   : > { %v1675_v21 = vrot.slane %v1619_v60, 1  ;;  %v1622_v50 = vadd.f32 %v6180_v44, %v5564_v1 }
 0x16a   : > { %v1703_v11 = vsel %vm1689_vm4, %v1674_v17, %v1675_v21  ;;  %v1676_v51 = vrot.slane %v1622_v50, 1  ;;  %v5565_v23 = vpop.f32.mrb[56].mxu0  ;;  %v6509_v50 = vld [vmem:[%s8466_s3 + $0x158] sm:$0xff]  }
 0x16b   : > { %v1707_v24 = vadd.f32 %v1703_v11, %v7212_v31  ;;  %v5566_v30 = vpop.f32.mrb[57].mxu0 }
 0x16c   : > { %v1702_v25 = vsel %vm1689_vm4, %v1675_v21, %v1676_v51  ;;  %v5567_v36 = vadd.f32 %v5566_v30, %v5565_v23  ;;  %v5568_v2 = vpop.f32.mrb[58].mxu0  ;;  %v7278_v12 = vpop.f32.mrb[56].mxu1 }
 0x16d   : > { %v1723_v37 = vmax.f32 %v1707_v24, 0.0  ;;  %v1708_v56 = vadd.f32 %v1702_v25, %v7200_v18  ;;  %v5569_v3 = vpop.f32.mrb[59].mxu0  ;;  %v1642_v38 = vpop.f32.mrb[57].mxu1  ;;  %v6512_v25 = vld [vmem:[%s8466_s3 + $0x160] sm:$0xff]  }
 0x16e   : > { %v5570_v41 = vadd.f32 %v5569_v3, %v5568_v2  ;;  %v1627_v47 = vadd.f32 %v5567_v36, %v1626_v19  ;;  %v7285_v48 = vpop.f32.mrb[58].mxu1 }
 0x16f   : > { %v7287_v49 = vpack.c.bf16 %v1723_v37, %v1722_v15  ;;  %v1645_v39 = vpop.f32.mrb[59].mxu1  ;;  %v1724_v40 = vmax.f32 %v1708_v56, 0.0 }
 0x170   : > { %v1677_v52 = vrot.slane %v1627_v47, 1  ;;  %v1630_v54 = vadd.f32 %v5570_v41, %v1629_v7  ;;  %v6502_v47 = vld [vmem:[%s8466_s3 + $0x108] sm:$0xff]  }
 0x171   : > { %4983 = vmatprep.mubr.msk.bf16.mxu1 %vm7281_vm7, %v7287_v49 }
 0x172   : > { %v1701_v18 = vsel %vm1689_vm4, %v1676_v51, %v1677_v52  ;;  %v1678_v5 = vrot.slane %v1630_v54, 1  ;;  %v5571_v57 = vpop.f32.mrb[60].mxu0  ;;  %2042 = vmatmul.mubr.bf16.vlgmr.msra.gmra.mrb[64].mxu1 %v7297_v8 }
 0x173   : > { %v1709_v44 = vadd.f32 %v1701_v18, %v7210_v28  ;;  %v5572_v61 = vpop.f32.mrb[61].mxu0  ;;  %6226 = vmatpush3.bf16.msra.mxu1 %v7124_v16 }
 0x174   : > { %v1700_v62 = vsel %vm1689_vm4, %v1677_v52, %v1678_v5  ;;  %v5573_v17 = vadd.f32 %v5572_v61, %v5571_v57  ;;  %v5574_v63 = vpop.f32.mrb[62].mxu0  ;;  %v7304_v0 = vpop.f32.mrb[60].mxu1  ;;  %6227 = vmatprep.subr.bf16.mxu1 %v6500_v33 }
 0x175   : > { %v1725_v26 = vmax.f32 %v1709_v44, 0.0  ;;  %v1710_v13 = vadd.f32 %v1700_v62, %v7222_v29  ;;  %v5575_v28 = vpop.f32.mrb[63].mxu0  ;;  %v7310_v32 = vpop.f32.mrb[61].mxu1  ;;  %v6504_v44 = vld [vmem:[%s8466_s3 + $0x110] sm:$0xff]  }
 0x176   : > { %v1635_v16 = vadd.f32 %v6183_v9, %v5573_v17  ;;  %v5576_v19 = vadd.f32 %v5575_v28, %v5574_v63  ;;  %v7312_v60 = vpop.f32.mrb[62].mxu1  ;;  %v6518_v63 = vld [vmem:[%s8466_s3 + $0x170] sm:$0xff]  }
 0x177   : > { %v7314_v1 = vpack.c.bf16 %v1725_v26, %v1724_v40  ;;  %v7316_v7 = vpop.f32.mrb[63].mxu1  ;;  %6228 = vmatpush3.bf16.msra.mxu1 %v6500_v33  ;;  %v1726_v36 = vmax.f32 %v1710_v13, 0.0 }
 0x178   : > { %v1679_v46 = vrot.slane %v1635_v16, 1  ;;  %v1638_v21 = vadd.f32 %v6184_v20, %v5576_v19  ;;  %6229 = vmatprep.subr.bf16.mxu1 %v6505_v27  ;;  %v6506_v16 = vld [vmem:[%s8466_s3 + $0xd0] sm:$0xff]  }
 0x179   : > { %4986 = vmatprep.mubr.msk.bf16.mxu1 %vm7281_vm7, %v7314_v1  ;;  %6209 = vmatprep.mubr.msk.bf16.mxu0 %vm7281_vm7, %v7314_v1 }
 0x17a   : > { %v1699_v29 = vsel %vm1689_vm4, %v1678_v5, %v1679_v46  ;;  %v1680_v9 = vrot.slane %v1638_v21, 1  ;;  %v5577_v11 = vpop.f32.mrb[64].mxu0  ;;  %4989 = vmatmul.mubr.msk.bf16.gmra.mrb[68].mxu1 %vm7281_vm7, %v7287_v49 }
 0x17b   : > { %v1711_v20 = vadd.f32 %v1699_v29, %v7228_v55  ;;  %v5578_v51 = vpop.f32.mrb[65].mxu0  ;;  %6230 = vmatpush3.bf16.msra.mxu1 %v6505_v27  ;;  %v6501_v55 = vld [vmem:[%s8466_s3 + $0xc0] sm:$0xff]  }
 0x17c   : > { %v1698_v23 = vsel %vm1689_vm4, %v1679_v46, %v1680_v9  ;;  %v5579_v24 = vadd.f32 %v5578_v51, %v5577_v11  ;;  %v5580_v30 = vpop.f32.mrb[66].mxu0  ;;  %6231 = vmatprep.subr.bf16.mxu1 %v6509_v50  ;;  %v6507_v46 = vld [vmem:[%s8466_s3 + $0x118] sm:$0xff]   ;;  %v6510_v51 = vld [vmem:[%s8466_s3 + $0x120] sm:$0xff]  }
 0x17d   : > { %v1727_v2 = vmax.f32 %v1711_v20, 0.0  ;;  %v1712_v15 = vadd.f32 %v1698_v23, %v7218_v42  ;;  %v5581_v37 = vpop.f32.mrb[67].mxu0  ;;  %v6515_v42 = vld [vmem:[%s8466_s3 + $0x168] sm:$0xff]  }
 0x17e   : > { %v5582_v56 = vadd.f32 %v5581_v37, %v5580_v30  ;;  %v1643_v3 = vadd.f32 %v5579_v24, %v1642_v38 }
 0x17f   : > { %v7342_v41 = vpack.c.bf16 %v1727_v2, %v1726_v36  ;;  %6232 = vmatpush3.bf16.msra.mxu1 %v6509_v50  ;;  %v1728_v27 = vmax.f32 %v1712_v15, 0.0 }
 0x180   : > { %v1681_v52 = vrot.slane %v1643_v3, 1  ;;  %v1646_v54 = vadd.f32 %v5582_v56, %v1645_v39  ;;  %6233 = vmatprep.subr.bf16.mxu1 %v6512_v25  ;;  %v6503_v39 = vld [vmem:[%s8466_s3 + $0xc8] sm:$0xff]   ;;  %v6511_v3 = vld [vmem:[%s8466_s3 + $0xe0] sm:$0xff]  }
 0x181   : > { %4992 = vmatprep.mubr.msk.bf16.mxu1 %vm7281_vm7, %v7342_v41  ;;  %6210 = vmatmul.mubr.msk.bf16.vlgmr.msra.gmra.mrb[80].mxu0 %vm7281_vm7, %v7342_v41 }
 0x182   : > { %v1697_v38 = vsel %vm1689_vm4, %v1680_v9, %v1681_v52  ;;  %v1682_v33 = vrot.slane %v1646_v54, 1  ;;  %v5583_v18 = vpop.f32.mrb[68].mxu0  ;;  %4995 = vmatmul.mubr.msk.bf16.gmra.mrb[72].mxu1 %vm7281_vm7, %v7314_v1  ;;  %5698 = vmatpush3.bf16.msra.mxu0 %v6501_v55 }
 0x183   : > { %v1713_v5 = vadd.f32 %v1697_v38, %v7226_v22  ;;  %v5584_v57 = vpop.f32.mrb[69].mxu0  ;;  %5699 = vmatprep.subr.bf16.mxu0 %v6502_v47  ;;  %6234 = vmatpush3.bf16.msra.mxu1 %v6512_v25  ;;  %v6523_v25 = vld [vmem:[%s8466_s3 + $0x1c0] sm:$0xff]   ;;  %v6513_v47 = vld [vmem:[%s8466_s3 + $0x128] sm:$0xff]  }
 0x184   : > { %v1696_v61 = vsel %vm1689_vm4, %v1681_v52, %v1682_v33  ;;  %v5585_v62 = vadd.f32 %v5584_v57, %v5583_v18  ;;  %v5586_v17 = vpop.f32.mrb[70].mxu0  ;;  %6235 = vmatprep.subr.bf16.mxu1 %v6515_v42  ;;  %v6516_v18 = vld [vmem:[%s8466_s3 + $0x130] sm:$0xff]  }
 0x185   : > { %v1729_v40 = vmax.f32 %v1713_v5, 0.0  ;;  %v1714_v22 = vadd.f32 %v1696_v61, %v7238_v14  ;;  %v5587_v26 = vpop.f32.mrb[71].mxu0 }
 0x186   : > { %v1651_v13 = vadd.f32 %v7278_v12, %v5585_v62  ;;  %v5588_v28 = vadd.f32 %v5587_v26, %v5586_v17  ;;  %5700 = vmatpush3.bf16.msra.mxu0 %v6503_v39  ;;  %v6521_v12 = vld [vmem:[%s8466_s3 + $0x178] sm:$0xff]  }
 0x187   : > { %v7378_v19 = vpack.c.bf16 %v1729_v40, %v1728_v27  ;;  %5701 = vmatprep.subr.bf16.mxu0 %v6504_v44  ;;  %6236 = vmatpush3.bf16.msra.mxu1 %v6515_v42  ;;  %v1730_v36 = vmax.f32 %v1714_v22, 0.0  ;;  %v6519_v22 = vld [vmem:[%s8466_s3 + $0x138] sm:$0xff]  }
 0x188   : > { %v1683_v21 = vrot.slane %v1651_v13, 1  ;;  %v1654_v14 = vadd.f32 %v7285_v48, %v5588_v28  ;;  %6237 = vmatprep.subr.bf16.mxu1 %v6518_v63  ;;  %v6508_v48 = vld [vmem:[%s8466_s3 + $0xd8] sm:$0xff]  }
 0x189   : > { %4998 = vmatprep.mubr.msk.bf16.mxu1 %vm7281_vm7, %v7378_v19  ;;  %6213 = vmatprep.mubr.msk.bf16.mxu0 %vm7281_vm7, %v7378_v19 }
 0x18a   : > { %v1695_v50 = vsel %vm1689_vm4, %v1682_v33, %v1683_v21  ;;  %v1684_v29 = vrot.slane %v1654_v14, 1  ;;  %v5589_v9 = vpop.f32.mrb[72].mxu0  ;;  %5001 = vmatmul.mubr.msk.bf16.gmra.mrb[76].mxu1 %vm7281_vm7, %v7342_v41  ;;  %5702 = vmatpush3.bf16.msra.mxu0 %v6506_v16  ;;  %v6522_v16 = vld [vmem:[%s8466_s3 + $0x200] sm:$0xff]  }
 0x18b   : > { %v1715_v11 = vadd.f32 %v1695_v50, %v7244_v10  ;;  %v5590_v20 = vpop.f32.mrb[73].mxu0  ;;  %5703 = vmatprep.subr.bf16.mxu0 %v6507_v46  ;;  %6238 = vmatpush3.bf16.msra.mxu1 %v6518_v63 }
 0x18c   : > { %v1694_v23 = vsel %vm1689_vm4, %v1683_v21, %v1684_v29  ;;  %v5591_v24 = vadd.f32 %v5590_v20, %v5589_v9  ;;  %v5592_v30 = vpop.f32.mrb[74].mxu0  ;;  %6239 = vmatprep.subr.bf16.mxu1 %v6521_v12  ;;  %v6532_v20 = vld [vmem:[%s8466_s3 + $0x210] sm:$0xff]  }
 0x18d   : > { %v1731_v2 = vmax.f32 %v1715_v11, 0.0  ;;  %v1716_v10 = vadd.f32 %v1694_v23, %v7234_v6  ;;  %v5593_v15 = vpop.f32.mrb[75].mxu0  ;;  %v6529_v23 = vld [vmem:[%s8466_s3 + $0x190] sm:$0xff]  }
 0x18e   : > { %v5594_v37 = vadd.f32 %v5593_v15, %v5592_v30  ;;  %v1659_v56 = vadd.f32 %v5591_v24, %v7310_v32  ;;  %5704 = vmatpush3.bf16.msra.mxu0 %v6508_v48  ;;  %v6537_v24 = vld [vmem:[%s8466_s3 + $0x218] sm:$0xff]   ;;  %v6543_v15 = vld [vmem:[%s8466_s3 + $0x228] sm:$0xff]  }
 0x18f   : > { %v7415_v55 = vpack.c.bf16 %v1731_v2, %v1730_v36  ;;  %5705 = vmatprep.subr.bf16.mxu0 %v6510_v51  ;;  %6240 = vmatpush3.bf16.msra.mxu1 %v6521_v12  ;;  %v1732_v44 = vmax.f32 %v1716_v10, 0.0  ;;  %v6528_v51 = vld [vmem:[%s8466_s3 + $0x1d0] sm:$0xff]   ;;  %v6530_v30 = vld [vmem:[%s8466_s3 + $0x1d8] sm:$0xff]   ;;  %v6542_v36 = vld [vmem:[%s8466_s3 + $0x220] sm:$0xff]  }
 0x190   : > { %v1685_v52 = vrot.slane %v1659_v56, 1  ;;  %v1662_v6 = vadd.f32 %v5594_v37, %v7316_v7  ;;  %5777 = vmatprep.subr.bf16.mxu1 %v6523_v25  ;;  %v6514_v7 = vld [vmem:[%s8466_s3 + $0xe8] sm:$0xff]   ;;  %v6531_v25 = vld [vmem:[%s8466_s3 + $0x198] sm:$0xff]   ;;  %v6533_v2 = vld [vmem:[%s8466_s3 + $0x1e0] sm:$0xff]  }
 0x191   : > { %5004 = vmatprep.mubr.msk.bf16.mxu1 %vm7281_vm7, %v7415_v55  ;;  %6214 = vmatmul.mubr.msk.bf16.gmra.mrb[84].mxu0 %vm7281_vm7, %v7415_v55  ;;  %v6534_v10 = vld [vmem:[%s8466_s3 + $0x1a0] sm:$0xff]   ;;  %v6535_v37 = vld [vmem:[%s8466_s3 + $0x1e8] sm:$0xff]  }
 0x192   : > { %v1693_v32 = vsel %vm1689_vm4, %v1684_v29, %v1685_v52  ;;  %v1686_v54 = vrot.slane %v1662_v6, 1  ;;  %v5595_v42 = vpop.f32.mrb[76].mxu0  ;;  %5007 = vmatmul.mubr.msk.bf16.gmra.mrb[80].mxu1 %vm7281_vm7, %v7378_v19  ;;  %5706 = vmatpush3.bf16.msra.mxu0 %v6511_v3  ;;  %v6536_v56 = vld [vmem:[%s8466_s3 + $0x1a8] sm:$0xff]   ;;  %v6544_v3 = vld [vmem:[%s8466_s3 + $0x230] sm:$0xff]   ;;  %v6545_v6 = vld [vmem:[%s8466_s3 + $0x238] sm:$0xff]  }
 0x193   : > { %v1717_v38 = vadd.f32 %v1693_v32, %v7242_v59  ;;  %v5596_v33 = vpop.f32.mrb[77].mxu0  ;;  %5707 = vmatprep.subr.bf16.mxu0 %v6513_v47  ;;  %v6517_v59 = vld [vmem:[%s8466_s3 + $0xf0] sm:$0xff]   ;;  %v6540_v32 = vld [vmem:[%s8466_s3 + $0x1f8] sm:$0xff]  }
 0x194   : > { %v1692_v39 = vsel %vm1689_vm4, %v1685_v52, %v1686_v54  ;;  %v5597_v5 = vadd.f32 %v5596_v33, %v5595_v42  ;;  %v5598_v57 = vpop.f32.mrb[78].mxu0  ;;  %v6538_v47 = vld [vmem:[%s8466_s3 + $0x1f0] sm:$0xff]   ;;  %v6555_v33 = vld [vmem:[%s8468_s5 + $0x18] sm:$0xff]  }
 0x195   : > { %v1733_v61 = vmax.f32 %v1717_v38, 0.0  ;;  %v1718_v62 = vadd.f32 %v1692_v39, %v7248_v34  ;;  %v5599_v17 = vpop.f32.mrb[79].mxu0  ;;  %v6539_v52 = vld [vmem:[%s8466_s3 + $0x1b0] sm:$0xff]   ;;  %v6554_v38 = vld [vmem:[%s8468_s5 + $0x58] sm:$0xff]   ;;  %v6557_v39 = vld [vmem:[%s8468_s5 + $0x60] sm:$0xff]  }
 0x196   : > { %v1667_v63 = vadd.f32 %v7304_v0, %v5597_v5  ;;  %v5600_v27 = vadd.f32 %v5599_v17, %v5598_v57  ;;  %5708 = vmatpush3.bf16.msra.mxu0 %v6514_v7  ;;  %v6552_v42 = vld [vmem:[%s8468_s5 + $0x10] sm:$0xff]   ;;  %v6553_v7 = vld [vmem:[%s8468_s5 + $0x88] sm:$0xff]   ;;  %v6558_v57 = vld [vmem:[%s8468_s5 + $0x20] sm:$0xff]  }
 0x197   : > { %v7446_v40 = vpack.c.bf16 %v1733_v61, %v1732_v44  ;;  %5709 = vmatprep.subr.bf16.mxu0 %v6516_v18  ;;  %v1734_v14 = vmax.f32 %v1718_v62, 0.0  ;;  %v6556_v18 = vld [vmem:[%s8468_s5 + $0x90] sm:$0xff]   ;;  %v6559_v17 = vld [vmem:[%s8468_s5 + $0x98] sm:$0xff]  }
 0x198   : > { %v1687_v26 = vrot.slane %v1667_v63, 1  ;;  %v1670_v13 = vadd.f32 %v7312_v60, %v5600_v27  ;;  %v6520_v60 = vld [vmem:[%s8466_s3 + $0xf8] sm:$0xff]   ;;  %v6560_v27 = vld [vmem:[%s8468_s5 + $0x68] sm:$0xff]  }
 0x199   : > { %5010 = vmatprep.mubr.msk.bf16.mxu1 %vm7281_vm7, %v7446_v40  ;;  %6217 = vmatprep.mubr.msk.bf16.mxu0 %vm7281_vm7, %v7446_v40 }
 0x19a   : > { %v1691_v34 = vsel %vm1689_vm4, %v1686_v54, %v1687_v26  ;;  %v1688_v0 = vrot.slane %v1670_v13, 1  ;;  %5013 = vmatmul.mubr.msk.bf16.gmra.mrb[84].mxu1 %vm7281_vm7, %v7415_v55  ;;  %5710 = vmatpush3.bf16.msra.mxu0 %v6517_v59  ;;  %v6541_v54 = vld [vmem:[%s8466_s3 + $0x1b8] sm:$0xff]  }
 0x19b   : > { %v1719_v28 = vadd.f32 %v1691_v34, %v7254_v45  ;;  %5711 = vmatprep.subr.bf16.mxu0 %v6519_v22  ;;  %v6562_v22 = vld [vmem:[%s8468_s5 + $0xa0] sm:$0xff]   ;;  %v6564_v34 = vld [vmem:[%s8468_s5 + $0x30] sm:$0xff]  }
 0x19c   : > { %v1690_v46 = vsel %vm1689_vm4, %v1687_v26, %v1688_v0  ;;  %v1705_v21 = vsel %vm1689_vm4, %v1688_v0, %v1673_v4  ;;  %v6526_v4 = vld [vmem:[%s8466_s3 + $0x188] sm:$0xff]   ;;  %v6563_v26 = vld [vmem:[%s8468_s5 + $0x70] sm:$0xff]  }
 0x19d   : > { %v1735_v12 = vmax.f32 %v1719_v28, 0.0  ;;  %v1720_v50 = vadd.f32 %v1690_v46, %v7256_v43  ;;  %v1721_v29 = vadd.f32 %v1705_v21, %v7260_v53  ;;  %v6524_v43 = vld [vmem:[%s8466_s3 + $0x180] sm:$0xff]   ;;  %v6527_v53 = vld [vmem:[%s8466_s3 + $0x208] sm:$0xff]   ;;  %v6566_v21 = vld [vmem:[%s8468_s5 + $0x78] sm:$0xff]  }
 0x19e   : > { %5712 = vmatpush3.bf16.msra.mxu0 %v6520_v60 }
 0x19f   : > { %v7478_v45 = vpack.c.bf16 %v1735_v12, %v1734_v14  ;;  %v1736_v9 = vmax.f32 %v1720_v50, 0.0  ;;  %v1737_v48 = vmax.f32 %v1721_v29, 0.0  ;;  %6257 = vmatprep.subr.bf16.mxu0 %v6522_v16  ;;  %v6567_v12 = vld [vmem:[%s8468_s5 + $0x38] sm:$0xff]   ;;  %v6568_v50 = vld [vmem:[%s8468_s5 + $0xb0] sm:$0xff]  }
 0x1a1   : > { %v7480_v11 = vpack.c.bf16 %v1737_v48, %v1736_v9  ;;  %5016 = vmatprep.mubr.msk.bf16.mxu1 %vm7281_vm7, %v7478_v45  ;;  %6218 = vmatmul.mubr.msk.bf16.gmra.mrb[88].mxu0 %vm7281_vm7, %v7478_v45 }
 0x1a2   : > { %5019 = vmatmul.mubr.msk.bf16.gmra.mrb[88].mxu1 %vm7281_vm7, %v7446_v40 }
 0x1a3   : > { %5022 = vmatprep.mubr.msk.bf16.mxu1 %vm7281_vm7, %v7480_v11  ;;  %6221 = vmatprep.mubr.msk.bf16.mxu0 %vm7281_vm7, %v7480_v11 }
 0x1a9   : > { %6222 = vmatmul.mubr.bf16.gmra.mrb[92].mxu0 %v7297_v8 }
 0x1aa   : > { %5025 = vmatmul.mubr.msk.bf16.gmra.mrb[92].mxu1 %vm7281_vm7, %v7478_v45  ;;  %5049 = vmatprep.mubr.msk.bf16.mxu0 %vm7281_vm7, %v7287_v49 }
 0x1ab   : > { %6241 = vmatprep.mubr.msk.bf16.mxu1 %vm7281_vm7, %v7314_v1 }
 0x1b1   : > { %2477 = vmatmul.mubr.bf16.vlgmr.msra.gmra.mrb[96].mxu0 %v7297_v8 }
 0x1b2   : > { %5052 = vmatprep.mubr.msk.bf16.mxu0 %vm7281_vm7, %v7314_v1  ;;  %6242 = vmatmul.mubr.msk.bf16.vlgmr.msra.gmra.mrb[96].mxu1 %vm7281_vm7, %v7342_v41 }
 0x1b3   : > { %6258 = vmatpush3.bf16.msra.mxu0 %v6522_v16  ;;  %6245 = vmatprep.mubr.msk.bf16.mxu1 %vm7281_vm7, %v7378_v19  ;;  %v6565_v16 = vld [vmem:[%s8468_s5 + $0xa8] sm:$0xff]  }
 0x1b4   : > { %5778 = vmatpush3.bf16.msra.mxu1 %v6524_v43  ;;  %6259 = vmatprep.subr.bf16.mxu0 %v6527_v53 }
 0x1b5   : > { %5779 = vmatprep.subr.bf16.mxu1 %v6525_v58 }
 0x1b7   : > { %6260 = vmatpush3.bf16.msra.mxu0 %v6527_v53 }
 0x1b8   : > { %5780 = vmatpush3.bf16.msra.mxu1 %v6526_v4  ;;  %6261 = vmatprep.subr.bf16.mxu0 %v6532_v20 }
 0x1b9   : > { %5055 = vmatmul.mubr.msk.bf16.gmra.mrb[100].mxu0 %vm7281_vm7, %v7287_v49  ;;  %5781 = vmatprep.subr.bf16.mxu1 %v6528_v51 }
 0x1ba   : > { %5058 = vmatprep.mubr.msk.bf16.mxu0 %vm7281_vm7, %v7342_v41  ;;  %6246 = vmatmul.mubr.msk.bf16.gmra.mrb[100].mxu1 %vm7281_vm7, %v7415_v55 }
 0x1bb   : > { %6249 = vmatprep.mubr.msk.bf16.mxu1 %vm7281_vm7, %v7446_v40  ;;  %6262 = vmatpush3.bf16.msra.mxu0 %v6532_v20 }
 0x1bc   : > { %5782 = vmatpush3.bf16.msra.mxu1 %v6529_v23  ;;  %6263 = vmatprep.subr.bf16.mxu0 %v6537_v24  ;;  %v6570_v23 = vld [vmem:[%s8468_s5 + $0xb8] sm:$0xff]  }
 0x1bd   : > { %5783 = vmatprep.subr.bf16.mxu1 %v6530_v30 }
 0x1bf   : > { %6264 = vmatpush3.bf16.msra.mxu0 %v6537_v24 }
 0x1c0   : > { %5784 = vmatpush3.bf16.msra.mxu1 %v6531_v25  ;;  %6265 = vmatprep.subr.bf16.mxu0 %v6542_v36 }
 0x1c1   : > { %5061 = vmatmul.mubr.msk.bf16.gmra.mrb[104].mxu0 %vm7281_vm7, %v7314_v1  ;;  %5785 = vmatprep.subr.bf16.mxu1 %v6533_v2 }
 0x1c2   : > { %5064 = vmatprep.mubr.msk.bf16.mxu0 %vm7281_vm7, %v7378_v19  ;;  %6250 = vmatmul.mubr.msk.bf16.gmra.mrb[104].mxu1 %vm7281_vm7, %v7478_v45 }
 0x1c3   : > { %6253 = vmatprep.mubr.msk.bf16.mxu1 %vm7281_vm7, %v7480_v11  ;;  %6266 = vmatpush3.bf16.msra.mxu0 %v6542_v36 }
 0x1c4   : > { %5786 = vmatpush3.bf16.msra.mxu1 %v6534_v10  ;;  %6267 = vmatprep.subr.bf16.mxu0 %v6543_v15  ;;  %v7780_v10 = vld [vmem:[%s8468_s5 + $0x140] sm:$0xff]  }
 0x1c5   : > { %5787 = vmatprep.subr.bf16.mxu1 %v6535_v37 }
 0x1c7   : > { %6268 = vmatpush3.bf16.msra.mxu0 %v6543_v15 }
 0x1c8   : > { %5788 = vmatpush3.bf16.msra.mxu1 %v6536_v56  ;;  %6269 = vmatprep.subr.bf16.mxu0 %v6544_v3 }
 0x1c9   : > { %5067 = vmatmul.mubr.msk.bf16.gmra.mrb[108].mxu0 %vm7281_vm7, %v7342_v41  ;;  %5789 = vmatprep.subr.bf16.mxu1 %v6538_v47 }
 0x1ca   : > { %5070 = vmatprep.mubr.msk.bf16.mxu0 %vm7281_vm7, %v7415_v55  ;;  %6254 = vmatmul.mubr.bf16.gmra.mrb[108].mxu1 %v7297_v8 }
 0x1cb   : > { %5115 = vmatprep.mubr.msk.bf16.mxu1 %vm7281_vm7, %v7287_v49  ;;  %6270 = vmatpush3.bf16.msra.mxu0 %v6544_v3 }
 0x1cc   : > { %5790 = vmatpush3.bf16.msra.mxu1 %v6539_v52  ;;  %6271 = vmatprep.subr.bf16.mxu0 %v6545_v6  ;;  %v6571_v52 = vld [vmem:[%s8468_s5 + $0x100] sm:$0xff]  }
 0x1cd   : > { %5791 = vmatprep.subr.bf16.mxu1 %v6540_v32 }
 0x1cf   : > { %6272 = vmatpush3.bf16.msra.mxu0 %v6545_v6 }
 0x1d0   : > { %5792 = vmatpush3.bf16.msra.mxu1 %v6541_v54 }
 0x1d1   : > { %5073 = vmatmul.mubr.msk.bf16.gmra.mrb[112].mxu0 %vm7281_vm7, %v7378_v19 }
 0x1d2   : > { %5076 = vmatprep.mubr.msk.bf16.mxu0 %vm7281_vm7, %v7446_v40 }
 0x1d3   : > { %2880 = vmatmul.mubr.bf16.vlgmr.msra.gmra.mrb[112].mxu1 %v7297_v8 }
 0x1d4   : > { %5118 = vmatprep.mubr.msk.bf16.mxu1 %vm7281_vm7, %v7314_v1 }
 0x1d9   : > { %5079 = vmatmul.mubr.msk.bf16.gmra.mrb[116].mxu0 %vm7281_vm7, %v7415_v55 }
 0x1da   : > { %5082 = vmatprep.mubr.msk.bf16.mxu0 %vm7281_vm7, %v7478_v45 }
 0x1db   : > { %5121 = vmatmul.mubr.msk.bf16.gmra.mrb[116].mxu1 %vm7281_vm7, %v7287_v49  ;;  %v6546_v49 = vld [vmem:[%s8468_s5 + $0x40] sm:$0xff]  }
 0x1dc   : > { %5124 = vmatprep.mubr.msk.bf16.mxu1 %vm7281_vm7, %v7342_v41  ;;  %5857 = vmatprep.subr.bf16.mxu0 %v6546_v49 }
 0x1e1   : > { %5085 = vmatmul.mubr.msk.bf16.gmra.mrb[120].mxu0 %vm7281_vm7, %v7446_v40 }
 0x1e2   : > { %5088 = vmatprep.mubr.msk.bf16.mxu0 %vm7281_vm7, %v7480_v11 }
 0x1e3   : > { %5127 = vmatmul.mubr.msk.bf16.gmra.mrb[120].mxu1 %vm7281_vm7, %v7314_v1 }
 0x1e4   : > { %5130 = vmatprep.mubr.msk.bf16.mxu1 %vm7281_vm7, %v7378_v19 }
 0x1e9   : > { %5091 = vmatmul.mubr.msk.bf16.gmra.mrb[124].mxu0 %vm7281_vm7, %v7478_v45 }
 0x1ea   : > { %6273 = vmatprep.mubr.msk.bf16.mxu0 %vm7281_vm7, %v7314_v1  ;;  %v6547_v1 = vld [vmem:[%s8468_s5] sm:$0xff]  }
 0x1eb   : > { %5133 = vmatmul.mubr.msk.bf16.gmra.mrb[124].mxu1 %vm7281_vm7, %v7342_v41 }
 0x1ec   : > { %5136 = vmatprep.mubr.msk.bf16.mxu1 %vm7281_vm7, %v7415_v55 }
 0x1f1   : > { %6274 = vmatmul.mubr.msk.bf16.vlgmr.msra.gmra.mrb[128].mxu0 %vm7281_vm7, %v7342_v41  ;;  %v6549_v41 = vld [vmem:[%s8468_s5 + $0x48] sm:$0xff]  }
 0x1f2   : > { %6277 = vmatprep.mubr.msk.bf16.mxu0 %vm7281_vm7, %v7378_v19  ;;  %5858 = vmatpush3.bf16.msra.mxu0 %v6547_v1 }
 0x1f3   : > { %5139 = vmatmul.mubr.msk.bf16.gmra.mrb[128].mxu1 %vm7281_vm7, %v7378_v19  ;;  %v6548_v19 = vld [vmem:[%s8468_s5 + $0x80] sm:$0xff]   ;;  %5859 = vmatprep.subr.bf16.mxu0 %v6549_v41 }
 0x1f4   : > { %5142 = vmatprep.mubr.msk.bf16.mxu1 %vm7281_vm7, %v7446_v40  ;;  %6289 = vmatprep.subr.bf16.mxu1 %v6548_v19 }
 0x1f5   : > { %6290 = vmatpush3.bf16.msra.mxu1 %v6548_v19 }
 0x1f6   : > { %6291 = vmatprep.subr.bf16.mxu1 %v6553_v7 }
 0x1f9   : > { %6278 = vmatmul.mubr.msk.bf16.gmra.mrb[132].mxu0 %vm7281_vm7, %v7415_v55  ;;  %6292 = vmatpush3.bf16.msra.mxu1 %v6553_v7 }
 0x1fa   : > { %6281 = vmatprep.mubr.msk.bf16.mxu0 %vm7281_vm7, %v7446_v40  ;;  %6293 = vmatprep.subr.bf16.mxu1 %v6556_v18 }
 0x1fb   : > { %5145 = vmatmul.mubr.msk.bf16.gmra.mrb[132].mxu1 %vm7281_vm7, %v7415_v55  ;;  %v6551_v55 = vld [vmem:[%s8468_s5 + $0x50] sm:$0xff]  }
 0x1fc   : > { %5148 = vmatprep.mubr.msk.bf16.mxu1 %vm7281_vm7, %v7478_v45 }
 0x1fd   : > { %6294 = vmatpush3.bf16.msra.mxu1 %v6556_v18 }
 0x1fe   : > { %6295 = vmatprep.subr.bf16.mxu1 %v6559_v17 }
 0x201   : > { %6282 = vmatmul.mubr.msk.bf16.gmra.mrb[136].mxu0 %vm7281_vm7, %v7478_v45  ;;  %6296 = vmatpush3.bf16.msra.mxu1 %v6559_v17 }
 0x202   : > { %6285 = vmatprep.mubr.msk.bf16.mxu0 %vm7281_vm7, %v7480_v11  ;;  %6297 = vmatprep.subr.bf16.mxu1 %v6562_v22 }
 0x203   : > { %5151 = vmatmul.mubr.msk.bf16.gmra.mrb[136].mxu1 %vm7281_vm7, %v7446_v40  ;;  %v6561_v40 = vld [vmem:[%s8468_s5 + $0x28] sm:$0xff]  }
 0x204   : > { %5154 = vmatprep.mubr.msk.bf16.mxu1 %vm7281_vm7, %v7480_v11 }
 0x205   : > { %6298 = vmatpush3.bf16.msra.mxu1 %v6562_v22 }
 0x206   : > { %6299 = vmatprep.subr.bf16.mxu1 %v6565_v16 }
 0x209   : > { %6286 = vmatmul.mubr.bf16.gmra.mrb[140].mxu0 %v7297_v8  ;;  %v6550_v8 = vld [vmem:[%s8468_s5 + $0x8] sm:$0xff]   ;;  %6300 = vmatpush3.bf16.msra.mxu1 %v6565_v16 }
 0x20a   : > { %5860 = vmatpush3.bf16.msra.mxu0 %v6550_v8  ;;  %6301 = vmatprep.subr.bf16.mxu1 %v6568_v50 }
 0x20b   : > { %5157 = vmatmul.mubr.msk.bf16.gmra.mrb[140].mxu1 %vm7281_vm7, %v7478_v45  ;;  %5861 = vmatprep.subr.bf16.mxu0 %v6551_v55 }
 0x20d   : > { %6302 = vmatpush3.bf16.msra.mxu1 %v6568_v50 }
 0x20e   : > { %5862 = vmatpush3.bf16.msra.mxu0 %v6552_v42  ;;  %6303 = vmatprep.subr.bf16.mxu1 %v6570_v23 }
 0x20f   : > { %5863 = vmatprep.subr.bf16.mxu0 %v6554_v38 }
 0x211   : > { %6304 = vmatpush3.bf16.msra.mxu1 %v6570_v23 }
 0x212   : > { %5864 = vmatpush3.bf16.msra.mxu0 %v6555_v33  ;;  %5937 = vmatprep.subr.bf16.mxu1 %v6571_v52 }
 0x213   : > { %5865 = vmatprep.subr.bf16.mxu0 %v6557_v39 }
 0x216   : > { %5866 = vmatpush3.bf16.msra.mxu0 %v6558_v57 }
 0x217   : > { %5867 = vmatprep.subr.bf16.mxu0 %v6560_v27 }
 0x21a   : > { %5868 = vmatpush3.bf16.msra.mxu0 %v6561_v40 }
 0x21b   : > { %5869 = vmatprep.subr.bf16.mxu0 %v6563_v26 }
 0x21e   : > { %5870 = vmatpush3.bf16.msra.mxu0 %v6564_v34 }
 0x21f   : > { %5871 = vmatprep.subr.bf16.mxu0 %v6566_v21 }
 0x222   : > { %5872 = vmatpush3.bf16.msra.mxu0 %v6567_v12 }
 0x223   : > { %6321 = vmatprep.subr.bf16.mxu0 %v7780_v10 }
 0x245   : > { %v5633_v5 = vpop.f32.mrb[64].mxu1 }
 0x246   : > { %v5634_v44 = vpop.f32.mrb[65].mxu1 }
 0x247   : > { %v5635_v61 = vadd.f32 %v5634_v44, %v5633_v5  ;;  %v5636_v62 = vpop.f32.mrb[66].mxu1 }
 0x248   : > { %v5637_v63 = vpop.f32.mrb[67].mxu1 }
 0x249   : > { %v5638_v59 = vadd.f32 %v5637_v63, %v5636_v62 }
 0x24d   : > { %v5639_v13 = vpop.f32.mrb[68].mxu1 }
 0x24e   : > { %v5640_v0 = vpop.f32.mrb[69].mxu1 }
 0x24f   : > { %v5641_v60 = vadd.f32 %v5640_v0, %v5639_v13  ;;  %v5642_v28 = vpop.f32.mrb[70].mxu1 }
 0x250   : > { %v5643_v46 = vpop.f32.mrb[71].mxu1 }
 0x251   : > { %v5644_v14 = vadd.f32 %v5643_v46, %v5642_v28 }
 0x254   : > { %v6211_v29 = vpop.f32.mrb[80].mxu0 }
 0x255   : > { %v2149_v45 = vadd.f32 %v6211_v29, %v5641_v60  ;;  %v5645_v9 = vpop.f32.mrb[72].mxu1  ;;  %v2140_v48 = vpop.f32.mrb[81].mxu0 }
 0x256   : > { %v7772_v11 = vadd.f32 %v5635_v61, %v2140_v48  ;;  %v5646_v43 = vpop.f32.mrb[73].mxu1  ;;  %v6212_v53 = vpop.f32.mrb[82].mxu0 }
 0x257   : > { %v5647_v58 = vadd.f32 %v5646_v43, %v5645_v9  ;;  %v2152_v4 = vadd.f32 %v6212_v53, %v5644_v14  ;;  %v5648_v20 = vpop.f32.mrb[74].mxu1  ;;  %v2143_v51 = vpop.f32.mrb[83].mxu0  ;;  %v2205_v25 = vrot.slane %v2149_v45, 7 }
 0x258   : > { %v2144_v24 = vadd.f32 %v5638_v59, %v2143_v51  ;;  %v5649_v30 = vpop.f32.mrb[75].mxu1  ;;  %v2203_v15 = vrot.slane %v7772_v11, 7 }
 0x259   : > { %v2206_v36 = vrot.slane %v2152_v4, 7  ;;  %v5650_v2 = vadd.f32 %v5649_v30, %v5648_v20 }
 0x25a   : > { %v2204_v37 = vrot.slane %v2144_v24, 7 }
 0x25b   : > { %v7785_v56 = vsel %vm850_vm3, %v2205_v25, %v2206_v36 }
 0x25c   : > { %v7790_v3 = vsel %vm850_vm3, %v2204_v37, %v2205_v25  ;;  %v7796_v47 = vsel %vm850_vm3, %v2203_v15, %v2204_v37 }
 0x25d   : > { %v5651_v6 = vpop.f32.mrb[76].mxu1 }
 0x25e   : > { %v5652_v32 = vpop.f32.mrb[77].mxu1 }
 0x25f   : > { %v5653_v54 = vadd.f32 %v5652_v32, %v5651_v6  ;;  %v5654_v49 = vpop.f32.mrb[78].mxu1 }
 0x260   : > { %v5655_v1 = vpop.f32.mrb[79].mxu1 }
 0x261   : > { %v5656_v41 = vadd.f32 %v5655_v1, %v5654_v49 }
 0x264   : > { %v6215_v8 = vpop.f32.mrb[84].mxu0 }
 0x265   : > { %v2165_v19 = vadd.f32 %v6215_v8, %v5653_v54  ;;  %v5657_v55 = vpop.f32.mrb[80].mxu1  ;;  %v2156_v42 = vpop.f32.mrb[85].mxu0 }
 0x266   : > { %v2157_v7 = vadd.f32 %v5647_v58, %v2156_v42  ;;  %v5658_v38 = vpop.f32.mrb[81].mxu1  ;;  %v6216_v33 = vpop.f32.mrb[86].mxu0 }
 0x267   : > { %v5659_v18 = vadd.f32 %v5658_v38, %v5657_v55  ;;  %v2168_v39 = vadd.f32 %v6216_v33, %v5656_v41  ;;  %v5660_v5 = vpop.f32.mrb[82].mxu1  ;;  %v2159_v57 = vpop.f32.mrb[87].mxu0  ;;  %v2209_v17 = vrot.slane %v2165_v19, 7 }
 0x268   : > { %v2207_v44 = vrot.slane %v2157_v7, 7  ;;  %v2160_v61 = vadd.f32 %v5650_v2, %v2159_v57  ;;  %v5661_v62 = vpop.f32.mrb[83].mxu1 }
 0x269   : > { %v2210_v63 = vrot.slane %v2168_v39, 7  ;;  %v5662_v27 = vadd.f32 %v5661_v62, %v5660_v5 }
 0x26a   : > { %v7803_v59 = vsel %vm850_vm3, %v2206_v36, %v2207_v44  ;;  %v2208_v40 = vrot.slane %v2160_v61, 7 }
 0x26b   : > { %v7807_v22 = vsel %vm850_vm3, %v2209_v17, %v2210_v63 }
 0x26c   : > { %v7811_v26 = vsel %vm850_vm3, %v2208_v40, %v2209_v17  ;;  %v7815_v13 = vsel %vm850_vm3, %v2207_v44, %v2208_v40 }
 0x26d   : > { %v5663_v34 = vpop.f32.mrb[84].mxu1 }
 0x26e   : > { %v5664_v0 = vpop.f32.mrb[85].mxu1 }
 0x26f   : > { %v5665_v60 = vadd.f32 %v5664_v0, %v5663_v34  ;;  %v5666_v28 = vpop.f32.mrb[86].mxu1 }
 0x270   : > { %v5667_v16 = vpop.f32.mrb[87].mxu1 }
 0x271   : > { %v5668_v46 = vadd.f32 %v5667_v16, %v5666_v28  ;;  %v7848_v28 = vld [vmem:[%s8467_s4] ss:$0 sm:$0xff] }
 0x274   : > { %v6219_v21 = vpop.f32.mrb[88].mxu0 }
 0x275   : > { %v2181_v14 = vadd.f32 %v6219_v21, %v5665_v60  ;;  %v5669_v12 = vpop.f32.mrb[88].mxu1  ;;  %v2172_v50 = vpop.f32.mrb[89].mxu0 }
 0x276   : > { %v2173_v29 = vadd.f32 %v5659_v18, %v2172_v50  ;;  %v5670_v45 = vpop.f32.mrb[89].mxu1  ;;  %v6220_v9 = vpop.f32.mrb[90].mxu0 }
 0x277   : > { %v5671_v48 = vadd.f32 %v5670_v45, %v5669_v12  ;;  %v2184_v43 = vadd.f32 %v6220_v9, %v5668_v46  ;;  %v5672_v53 = vpop.f32.mrb[90].mxu1  ;;  %v2175_v58 = vpop.f32.mrb[91].mxu0  ;;  %v2213_v23 = vrot.slane %v2181_v14, 7 }
 0x278   : > { %v2211_v4 = vrot.slane %v2173_v29, 7  ;;  %v2176_v20 = vadd.f32 %v5662_v27, %v2175_v58  ;;  %v5673_v51 = vpop.f32.mrb[91].mxu1 }
 0x279   : > { %v2214_v24 = vrot.slane %v2184_v43, 7  ;;  %v5674_v30 = vadd.f32 %v5673_v51, %v5672_v53 }
 0x27a   : > { %v7819_v25 = vsel %vm850_vm3, %v2210_v63, %v2211_v4  ;;  %v2212_v36 = vrot.slane %v2176_v20, 7 }
 0x27b   : > { %v7823_v2 = vsel %vm850_vm3, %v2213_v23, %v2214_v24 }
 0x27c   : > { %v7827_v37 = vsel %vm850_vm3, %v2212_v36, %v2213_v23  ;;  %v7831_v52 = vsel %vm850_vm3, %v2211_v4, %v2212_v36  ;;  %v6223_v6 = vpop.f32.mrb[92].mxu0 }
 0x27d   : > { %v5675_v32 = vpop.f32.mrb[92].mxu1  ;;  %v2188_v54 = vpop.f32.mrb[93].mxu0 }
 0x27e   : > { %v2189_v49 = vadd.f32 %v5671_v48, %v2188_v54  ;;  %v5676_v1 = vpop.f32.mrb[93].mxu1  ;;  %v6224_v41 = vpop.f32.mrb[94].mxu0  ;;  %v2236_v48 = vadd.f32 %v7848_v28, %v7796_v47  ;;  %v2238_v47 = vadd.f32 %v7848_v28, %v7785_v56  ;;  %v2240_v56 = vadd.f32 %v7848_v28, %v7815_v13 }
 0x27f   : > { %v5677_v8 = vadd.f32 %v5676_v1, %v5675_v32  ;;  %v5678_v19 = vpop.f32.mrb[94].mxu1  ;;  %v2191_v55 = vpop.f32.mrb[95].mxu0 }
 0x280   : > { %v2215_v42 = vrot.slane %v2189_v49, 7  ;;  %v2192_v7 = vadd.f32 %v5674_v30, %v2191_v55  ;;  %v5679_v38 = vpop.f32.mrb[95].mxu1  ;;  %v2237_v30 = vadd.f32 %v7848_v28, %v7790_v3  ;;  %v2239_v3 = vadd.f32 %v7848_v28, %v7803_v59 }
 0x281   : > { %v2197_v33 = vadd.f32 %v6223_v6, %v5677_v8  ;;  %v5680_v18 = vadd.f32 %v5679_v38, %v5678_v19 }
 0x282   : > { %v7835_v39 = vsel %vm850_vm3, %v2214_v24, %v2215_v42  ;;  %v2216_v5 = vrot.slane %v2192_v7, 7 }
 0x283   : > { %v2217_v57 = vrot.slane %v2197_v33, 7  ;;  %v2200_v44 = vadd.f32 %v6224_v41, %v5680_v18 }
 0x284   : > { %v7839_v61 = vsel %vm850_vm3, %v2215_v42, %v2216_v5  ;;  %v5713_v62 = vpop.f32.mrb[96].mxu0 }
 0x285   : > { %v7843_v17 = vsel %vm850_vm3, %v2216_v5, %v2217_v57  ;;  %v2218_v63 = vrot.slane %v2200_v44, 7  ;;  %v5714_v27 = vpop.f32.mrb[97].mxu0  ;;  %v6243_v40 = vpop.f32.mrb[96].mxu1 }
 0x286   : > { %v5715_v34 = vadd.f32 %v5714_v27, %v5713_v62  ;;  %v5716_v0 = vpop.f32.mrb[98].mxu0  ;;  %v2575_v60 = vpop.f32.mrb[97].mxu1 }
 0x287   : > { %v2234_v16 = vsel %vm850_vm3, %v2218_v63, %v2203_v15  ;;  %v5717_v46 = vpop.f32.mrb[99].mxu0  ;;  %v6244_v21 = vpop.f32.mrb[98].mxu1  ;;  %v7856_v14 = vsel %vm850_vm3, %v2217_v57, %v2218_v63 }
 0x288   : > { %v2235_v12 = vadd.f32 %v7848_v28, %v2234_v16  ;;  %v2576_v50 = vadd.f32 %v5715_v34, %v2575_v60  ;;  %v5718_v29 = vadd.f32 %v5717_v46, %v5716_v0  ;;  %v2578_v45 = vpop.f32.mrb[99].mxu1 }
 0x28a   : > { %v7859_v9 = vadd.f32 %v2576_v50, %v2235_v12  ;;  %v2579_v11 = vadd.f32 %v5718_v29, %v2578_v45  ;;  %v2242_v45 = vadd.f32 %v7848_v28, %v7807_v22 }
 0x28c   : > { %v7863_v43 = vadd.f32 %v2579_v11, %v2236_v48  ;;  %v5719_v15 = vpop.f32.mrb[100].mxu0 }
 0x28d   : > { %v5720_v53 = vpop.f32.mrb[101].mxu0  ;;  %v6247_v58 = vpop.f32.mrb[100].mxu1 }
 0x28e   : > { %v5721_v4 = vadd.f32 %v5720_v53, %v5719_v15  ;;  %v5722_v20 = vpop.f32.mrb[102].mxu0  ;;  %v2591_v51 = vpop.f32.mrb[101].mxu1 }
 0x28f   : > { %v5723_v23 = vpop.f32.mrb[103].mxu0  ;;  %v6248_v24 = vpop.f32.mrb[102].mxu1 }
 0x290   : > { %v2584_v36 = vadd.f32 %v6243_v40, %v5721_v4  ;;  %v5724_v6 = vadd.f32 %v5723_v23, %v5722_v20  ;;  %v2594_v32 = vpop.f32.mrb[103].mxu1 }
 0x292   : > { %v7867_v54 = vadd.f32 %v2584_v36, %v2237_v30  ;;  %v2587_v49 = vadd.f32 %v6244_v21, %v5724_v6  ;;  %v2241_v21 = vadd.f32 %v7848_v28, %v7811_v26  ;;  %v2243_v26 = vadd.f32 %v7848_v28, %v7819_v25 }
 0x294   : > { %v7871_v1 = vadd.f32 %v2587_v49, %v2238_v47  ;;  %v5725_v41 = vpop.f32.mrb[104].mxu0 }
 0x295   : > { %v5726_v8 = vpop.f32.mrb[105].mxu0  ;;  %v6251_v19 = vpop.f32.mrb[104].mxu1 }
 0x296   : > { %v5727_v55 = vadd.f32 %v5726_v8, %v5725_v41  ;;  %v5728_v42 = vpop.f32.mrb[106].mxu0  ;;  %v2607_v7 = vpop.f32.mrb[105].mxu1 }
 0x297   : > { %v5729_v38 = vpop.f32.mrb[107].mxu0  ;;  %v6252_v33 = vpop.f32.mrb[106].mxu1 }
 0x298   : > { %v2592_v18 = vadd.f32 %v5727_v55, %v2591_v51  ;;  %v5730_v5 = vadd.f32 %v5729_v38, %v5728_v42  ;;  %v2610_v57 = vpop.f32.mrb[107].mxu1 }
 0x29a   : > { %v7875_v44 = vadd.f32 %v2592_v18, %v2239_v3  ;;  %v2595_v62 = vadd.f32 %v5730_v5, %v2594_v32  ;;  %v2245_v5 = vadd.f32 %v7848_v28, %v7827_v37 }
 0x29c   : > { %v7879_v63 = vadd.f32 %v2595_v62, %v2240_v56  ;;  %v5731_v27 = vpop.f32.mrb[108].mxu0 }
 0x29d   : > { %v5732_v40 = vpop.f32.mrb[109].mxu0  ;;  %v7881_v34 = vpop.f32.mrb[108].mxu1 }
 0x29e   : > { %v5733_v0 = vadd.f32 %v5732_v40, %v5731_v27  ;;  %v5734_v60 = vpop.f32.mrb[110].mxu0  ;;  %v2623_v16 = vpop.f32.mrb[109].mxu1 }
 0x29f   : > { %v5735_v46 = vpop.f32.mrb[111].mxu0  ;;  %v7883_v59 = vpop.f32.mrb[110].mxu1 }
 0x2a0   : > { %v2600_v12 = vadd.f32 %v6247_v58, %v5733_v0  ;;  %v5736_v50 = vadd.f32 %v5735_v46, %v5734_v60  ;;  %v2626_v29 = vpop.f32.mrb[111].mxu1  ;;  %v2246_v0 = vadd.f32 %v7848_v28, %v7823_v2 }
 0x2a2   : > { %v7887_v13 = vadd.f32 %v2600_v12, %v2241_v21  ;;  %v2603_v48 = vadd.f32 %v6248_v24, %v5736_v50  ;;  %v2244_v24 = vadd.f32 %v7848_v28, %v7831_v52 }
 0x2a4   : > { %v7891_v11 = vadd.f32 %v2603_v48, %v2242_v45  ;;  %v5737_v15 = vpop.f32.mrb[112].mxu0 }
 0x2a5   : > { %v5738_v53 = vpop.f32.mrb[113].mxu0 }
 0x2a6   : > { %v5739_v4 = vadd.f32 %v5738_v53, %v5737_v15  ;;  %v5740_v20 = vpop.f32.mrb[114].mxu0  ;;  %v5793_v51 = vpop.f32.mrb[112].mxu1  ;;  %v2247_v53 = vadd.f32 %v7848_v28, %v7835_v39 }
 0x2a7   : > { %v5741_v23 = vpop.f32.mrb[115].mxu0  ;;  %v5794_v30 = vpop.f32.mrb[113].mxu1 }
 0x2a8   : > { %v2608_v58 = vadd.f32 %v5739_v4, %v2607_v7  ;;  %v5742_v36 = vadd.f32 %v5741_v23, %v5740_v20  ;;  %v7895_v6 = vadd.f32 %v5794_v30, %v5793_v51  ;;  %v5796_v32 = vpop.f32.mrb[114].mxu1 }
 0x2a9   : > { %v5797_v47 = vpop.f32.mrb[115].mxu1 }
 0x2aa   : > { %v7897_v22 = vadd.f32 %v2608_v58, %v2243_v26  ;;  %v2611_v49 = vadd.f32 %v5742_v36, %v2610_v57  ;;  %v7901_v41 = vadd.f32 %v5797_v47, %v5796_v32 }
 0x2ac   : > { %v7903_v8 = vadd.f32 %v2611_v49, %v2244_v24  ;;  %v5743_v55 = vpop.f32.mrb[116].mxu0 }
 0x2ad   : > { %v5744_v42 = vpop.f32.mrb[117].mxu0 }
 0x2ae   : > { %v5745_v38 = vadd.f32 %v5744_v42, %v5743_v55  ;;  %v5799_v25 = vpop.f32.mrb[116].mxu1  ;;  %v5746_v7 = vpop.f32.mrb[118].mxu0  ;;  %v2249_v42 = vadd.f32 %v7848_v28, %v7843_v17 }
 0x2af   : > { %v5800_v3 = vpop.f32.mrb[117].mxu1  ;;  %v5747_v18 = vpop.f32.mrb[119].mxu0 }
 0x2b0   : > { %v2616_v56 = vadd.f32 %v6251_v19, %v5745_v38  ;;  %v5801_v62 = vadd.f32 %v5800_v3, %v5799_v25  ;;  %v5748_v27 = vadd.f32 %v5747_v18, %v5746_v7  ;;  %v5802_v40 = vpop.f32.mrb[118].mxu1  ;;  %v2250_v18 = vadd.f32 %v7848_v28, %v7856_v14 }
 0x2b1   : > { %v5803_v52 = vpop.f32.mrb[119].mxu1 }
 0x2b2   : > { %v7907_v57 = vadd.f32 %v2616_v56, %v2245_v5  ;;  %v2619_v60 = vadd.f32 %v6252_v33, %v5748_v27  ;;  %v5804_v46 = vadd.f32 %v5803_v52, %v5802_v40  ;;  %v2248_v33 = vadd.f32 %v7848_v28, %v7839_v61 }
 0x2b4   : > { %v7911_v21 = vadd.f32 %v2619_v60, %v2246_v0  ;;  %v5749_v12 = vpop.f32.mrb[120].mxu0 }
 0x2b5   : > { %v5750_v50 = vpop.f32.mrb[121].mxu0 }
 0x2b6   : > { %v5751_v45 = vadd.f32 %v5750_v50, %v5749_v12  ;;  %v5805_v48 = vpop.f32.mrb[120].mxu1  ;;  %v5752_v15 = vpop.f32.mrb[122].mxu0 }
 0x2b7   : > { %v5806_v37 = vpop.f32.mrb[121].mxu1  ;;  %v5753_v19 = vpop.f32.mrb[123].mxu0 }
 0x2b8   : > { %v2624_v4 = vadd.f32 %v5751_v45, %v2623_v16  ;;  %v5807_v20 = vadd.f32 %v5806_v37, %v5805_v48  ;;  %v5754_v51 = vadd.f32 %v5753_v19, %v5752_v15  ;;  %v5808_v23 = vpop.f32.mrb[122].mxu1 }
 0x2b9   : > { %v5809_v30 = vpop.f32.mrb[123].mxu1 }
 0x2ba   : > { %v7915_v2 = vadd.f32 %v2624_v4, %v2247_v53  ;;  %v2627_v26 = vadd.f32 %v5754_v51, %v2626_v29  ;;  %v5810_v58 = vadd.f32 %v5809_v30, %v5808_v23 }
 0x2bc   : > { %v7919_v36 = vadd.f32 %v2627_v26, %v2248_v33  ;;  %v5755_v32 = vpop.f32.mrb[124].mxu0 }
 0x2bd   : > { %v5756_v47 = vpop.f32.mrb[125].mxu0 }
 0x2be   : > { %v5757_v24 = vadd.f32 %v5756_v47, %v5755_v32  ;;  %v5811_v49 = vpop.f32.mrb[124].mxu1  ;;  %v5758_v55 = vpop.f32.mrb[126].mxu0 }
 0x2bf   : > { %v5812_v39 = vpop.f32.mrb[125].mxu1  ;;  %v5759_v16 = vpop.f32.mrb[127].mxu0 }
 0x2c0   : > { %v2632_v38 = vadd.f32 %v7881_v34, %v5757_v24  ;;  %v5813_v25 = vadd.f32 %v5812_v39, %v5811_v49  ;;  %v5760_v7 = vadd.f32 %v5759_v16, %v5758_v55  ;;  %v5814_v3 = vpop.f32.mrb[126].mxu1 }
 0x2c1   : > { %v5815_v61 = vpop.f32.mrb[127].mxu1 }
 0x2c2   : > { %v7924_v29 = vadd.f32 %v2632_v38, %v2249_v42  ;;  %v2635_v5 = vadd.f32 %v7883_v59, %v5760_v7  ;;  %v5816_v56 = vadd.f32 %v5815_v61, %v5814_v3 }
 0x2c4   : > { %v7929_v27 = vadd.f32 %v2635_v5, %v2250_v18  ;;  %v6275_v40 = vpop.f32.mrb[128].mxu0 }
 0x2c5   : > { %v2987_v52 = vadd.f32 %v6275_v40, %v5801_v62  ;;  %v2978_v0 = vpop.f32.mrb[129].mxu0  ;;  %v6572_v40 = vld [vmem:[%s8468_s5 + $0x148] sm:$0xff]  }
 0x2c6   : > { %v5817_v17 = vpop.f32.mrb[128].mxu1  ;;  %v7932_v34 = vadd.f32 %v7895_v6, %v2978_v0  ;;  %v6276_v60 = vpop.f32.mrb[130].mxu0 }
 0x2c7   : > { %v5818_v12 = vpop.f32.mrb[129].mxu1  ;;  %v2990_v50 = vadd.f32 %v6276_v60, %v5804_v46  ;;  %v2981_v45 = vpop.f32.mrb[131].mxu0  ;;  %v3043_v14 = vrot.slane %v2987_v52, 1 }
 0x2c8   : > { %v5819_v48 = vadd.f32 %v5818_v12, %v5817_v17  ;;  %v5820_v15 = vpop.f32.mrb[130].mxu1  ;;  %v2982_v28 = vadd.f32 %v7901_v41, %v2981_v45  ;;  %v3041_v19 = vrot.slane %v7932_v34, 1  ;;  %v6584_v34 = vld [vmem:[%s8468_s5 + $0x128] sm:$0xff]  }
 0x2c9   : > { %v3044_v59 = vrot.slane %v2990_v50, 1  ;;  %v5821_v37 = vpop.f32.mrb[131].mxu1  ;;  %v7967_v50 = vld [vmem:[#allocation2] sm:$0xff] }
 0x2ca   : > { %v3042_v53 = vrot.slane %v2982_v28, 1  ;;  %v5822_v62 = vadd.f32 %v5821_v37, %v5820_v15 }
 0x2cb   : > { %v3069_v4 = vsel %vm1689_vm4, %v3043_v14, %v3044_v59 }
 0x2cc   : > { %v3075_v6 = vadd.f32 %v3069_v4, %v7867_v54  ;;  %v3070_v46 = vsel %vm1689_vm4, %v3042_v53, %v3043_v14  ;;  %v3071_v41 = vsel %vm1689_vm4, %v3041_v19, %v3042_v53  ;;  %v6279_v51 = vpop.f32.mrb[132].mxu0 }
 0x2cd   : > { %v3073_v23 = vadd.f32 %v3071_v41, %v7859_v9  ;;  %v3074_v30 = vadd.f32 %v3070_v46, %v7863_v43  ;;  %v3003_v33 = vadd.f32 %v6279_v51, %v5813_v25  ;;  %v2994_v26 = vpop.f32.mrb[133].mxu0 }
 0x2ce   : > { %v5823_v32 = vpop.f32.mrb[132].mxu1  ;;  %v2995_v47 = vadd.f32 %v5807_v20, %v2994_v26  ;;  %v6280_v24 = vpop.f32.mrb[134].mxu0 }
 0x2cf   : > { %v3089_v49 = vmax.f32 %v3073_v23, 0.0  ;;  %v3090_v54 = vmax.f32 %v3074_v30, 0.0  ;;  %v5824_v55 = vpop.f32.mrb[133].mxu1  ;;  %v3006_v39 = vadd.f32 %v6280_v24, %v5816_v56  ;;  %v2997_v16 = vpop.f32.mrb[135].mxu0  ;;  %v3047_v18 = vrot.slane %v3003_v33, 1 }
 0x2d0   : > { %v3045_v42 = vrot.slane %v2995_v47, 1  ;;  %v5825_v38 = vadd.f32 %v5824_v55, %v5823_v32  ;;  %v5826_v7 = vpop.f32.mrb[134].mxu1  ;;  %v2998_v3 = vadd.f32 %v5810_v58, %v2997_v16  ;;  %v3091_v58 = vmax.f32 %v3075_v6, 0.0 }
 0x2d1   : > { %v7947_v61 = vpack.c.bf16 %v3090_v54, %v3089_v49  ;;  %v3048_v9 = vrot.slane %v3006_v39, 1  ;;  %v5827_v5 = vpop.f32.mrb[135].mxu1  ;;  %v6582_v39 = vld [vmem:[%s8468_s5 + $0x158] sm:$0xff]  }
 0x2d2   : > { %v3068_v43 = vsel %vm1689_vm4, %v3044_v59, %v3045_v42  ;;  %v3046_v25 = vrot.slane %v2998_v3, 1  ;;  %v5828_v20 = vadd.f32 %v5827_v5, %v5826_v7  ;;  %v6575_v3 = vld [vmem:[%s8468_s5 + $0xc8] sm:$0xff]  }
 0x2d3   : > { %v3076_v56 = vadd.f32 %v3068_v43, %v7871_v1  ;;  %v3065_v52 = vsel %vm1689_vm4, %v3047_v18, %v3048_v9  ;;  %5181 = vmatprep.mubr.msk.bf16.mxu0 %vm7281_vm7, %v7947_v61 }
 0x2d4   : > { %v7961_v0 = vadd.f32 %v3065_v52, %v7887_v13  ;;  %v3066_v17 = vsel %vm1689_vm4, %v3046_v25, %v3047_v18  ;;  %v3067_v60 = vsel %vm1689_vm4, %v3045_v42, %v3046_v25  ;;  %v6283_v12 = vpop.f32.mrb[136].mxu0  ;;  %3398 = vmatmul.mubr.bf16.vlgmr.msra.gmra.mrb[144].mxu0 %v7967_v50 }
 0x2d5   : > { %v3092_v1 = vmax.f32 %v3076_v56, 0.0  ;;  %v3077_v45 = vadd.f32 %v3067_v60, %v7875_v44  ;;  %v3078_v15 = vadd.f32 %v3066_v17, %v7879_v63  ;;  %v3019_v28 = vadd.f32 %v6283_v12, %v5825_v38  ;;  %v3010_v14 = vpop.f32.mrb[137].mxu0  ;;  %6322 = vmatpush3.bf16.msra.mxu0 %v7780_v10  ;;  %v6577_v44 = vld [vmem:[%s8468_s5 + $0x150] sm:$0xff]   ;;  %v6573_v10 = vld [vmem:[%s8468_s5 + $0xc0] sm:$0xff]  }
 0x2d6   : > { %v5829_v13 = vpop.f32.mrb[136].mxu1  ;;  %v3011_v59 = vadd.f32 %v5819_v48, %v3010_v14  ;;  %v6284_v37 = vpop.f32.mrb[138].mxu0  ;;  %6323 = vmatprep.subr.bf16.mxu0 %v6572_v40  ;;  %v3095_v16 = vmax.f32 %v7961_v0, 0.0  ;;  %v6587_v17 = vld [vmem:[%s8468_s5 + $0x160] sm:$0xff]  }
 0x2d7   : > { %v7973_v53 = vpack.c.bf16 %v3092_v1, %v3091_v58  ;;  %v3093_v4 = vmax.f32 %v3077_v45, 0.0  ;;  %v3094_v6 = vmax.f32 %v3078_v15, 0.0  ;;  %v5830_v46 = vpop.f32.mrb[137].mxu1  ;;  %v3013_v41 = vpop.f32.mrb[139].mxu0  ;;  %v3022_v23 = vadd.f32 %v6284_v37, %v5828_v20  ;;  %v6576_v20 = vld [vmem:[%s8468_s5 + $0x110] sm:$0xff]  }
 0x2d8   : > { %v3049_v51 = vrot.slane %v3011_v59, 1  ;;  %v5831_v63 = vadd.f32 %v5830_v46, %v5829_v13  ;;  %v5832_v30 = vpop.f32.mrb[138].mxu1  ;;  %v3014_v33 = vadd.f32 %v5822_v62, %v3013_v41  ;;  %v3051_v26 = vrot.slane %v3019_v28, 1  ;;  %v6574_v62 = vld [vmem:[%s8468_s5 + $0x108] sm:$0xff]   ;;  %v6578_v15 = vld [vmem:[%s8468_s5 + $0xd0] sm:$0xff]   ;;  %v6579_v13 = vld [vmem:[%s8468_s5 + $0x118] sm:$0xff]  }
 0x2d9   : > { %v7981_v48 = vpack.c.bf16 %v3094_v6, %v3093_v4  ;;  %v5833_v32 = vpop.f32.mrb[139].mxu1  ;;  %5184 = vmatprep.mubr.msk.bf16.mxu0 %vm7281_vm7, %v7973_v53  ;;  %6305 = vmatprep.mubr.msk.bf16.mxu1 %vm7281_vm7, %v7973_v53  ;;  %v3052_v24 = vrot.slane %v3022_v23, 1  ;;  %v6591_v41 = vld [vmem:[%s8468_s5 + $0x168] sm:$0xff]  }
 0x2da   : > { %v3064_v47 = vsel %vm1689_vm4, %v3048_v9, %v3049_v51  ;;  %v3050_v49 = vrot.slane %v3014_v33, 1  ;;  %v5834_v54 = vadd.f32 %v5833_v32, %v5832_v30  ;;  %6324 = vmatpush3.bf16.msra.mxu0 %v6572_v40 }
 0x2db   : > { %v3080_v55 = vadd.f32 %v3064_v47, %v7891_v11  ;;  %6306 = vmatmul.mubr.msk.bf16.vlgmr.msra.gmra.mrb[144].mxu1 %vm7281_vm7, %v7981_v48  ;;  %6325 = vmatprep.subr.bf16.mxu0 %v6577_v44  ;;  %v3061_v42 = vsel %vm1689_vm4, %v3051_v26, %v3052_v24 }
 0x2dc   : > { %v3062_v38 = vsel %vm1689_vm4, %v3050_v49, %v3051_v26  ;;  %v3063_v11 = vsel %vm1689_vm4, %v3049_v51, %v3050_v49  ;;  %v6287_v7 = vpop.f32.mrb[140].mxu0  ;;  %5187 = vmatmul.mubr.msk.bf16.gmra.mrb[148].mxu0 %vm7281_vm7, %v7947_v61  ;;  %5938 = vmatpush3.bf16.msra.mxu1 %v6573_v10  ;;  %v3083_v9 = vadd.f32 %v3061_v42, %v7907_v57  ;;  %v6581_v10 = vld [vmem:[%s8468_s5 + $0x120] sm:$0xff]  }
 0x2dd   : > { %v3096_v18 = vmax.f32 %v3080_v55, 0.0  ;;  %v3081_v5 = vadd.f32 %v3063_v11, %v7897_v22  ;;  %v3082_v43 = vadd.f32 %v3062_v38, %v7903_v8  ;;  %v3026_v25 = vpop.f32.mrb[141].mxu0  ;;  %5190 = vmatprep.mubr.msk.bf16.mxu0 %vm7281_vm7, %v7981_v48  ;;  %5939 = vmatprep.subr.bf16.mxu1 %v6574_v62  ;;  %v6583_v55 = vld [vmem:[%s8468_s5 + $0xe0] sm:$0xff]  }
 0x2de   : > { %v5835_v40 = vpop.f32.mrb[140].mxu1  ;;  %v3027_v56 = vadd.f32 %v5831_v63, %v3026_v25  ;;  %v6288_v52 = vpop.f32.mrb[142].mxu0  ;;  %6326 = vmatpush3.bf16.msra.mxu0 %v6577_v44  ;;  %v3099_v23 = vmax.f32 %v3083_v9, 0.0  ;;  %v6589_v9 = vld [vmem:[%s8468_s5 + $0x138] sm:$0xff]   ;;  %v6601_v25 = vld [vmem:[%s8468_s5 + $0x208] sm:$0xff]  }
 0x2df   : > { %v8023_v58 = vpack.c.bf16 %v3096_v18, %v3095_v16  ;;  %v3097_v57 = vmax.f32 %v3081_v5, 0.0  ;;  %v3098_v22 = vmax.f32 %v3082_v43, 0.0  ;;  %v5836_v0 = vpop.f32.mrb[141].mxu1  ;;  %v3029_v8 = vpop.f32.mrb[143].mxu0  ;;  %6327 = vmatprep.subr.bf16.mxu0 %v6582_v39  ;;  %v6588_v18 = vld [vmem:[%s8468_s5 + $0xf0] sm:$0xff]   ;;  %v6590_v5 = vld [vmem:[%s8468_s5 + $0xf8] sm:$0xff]  }
 0x2e0   : > { %v3053_v60 = vrot.slane %v3027_v56, 1  ;;  %v5837_v12 = vadd.f32 %v5836_v0, %v5835_v40  ;;  %v5838_v1 = vpop.f32.mrb[142].mxu1  ;;  %v3030_v45 = vadd.f32 %v5834_v54, %v3029_v8  ;;  %5940 = vmatpush3.bf16.msra.mxu1 %v6575_v3  ;;  %v6594_v3 = vld [vmem:[%s8468_s5 + $0x1c0] sm:$0xff]   ;;  %v6608_v40 = vld [vmem:[%s8468_s5 + $0x218] sm:$0xff]   ;;  %v6597_v0 = vld [vmem:[%s8468_s5 + $0x1c8] sm:$0xff]  }
 0x2e1   : > { %v8031_v28 = vpack.c.bf16 %v3098_v22, %v3097_v57  ;;  %v5839_v14 = vpop.f32.mrb[143].mxu1  ;;  %6309 = vmatprep.mubr.msk.bf16.mxu1 %vm7281_vm7, %v8023_v58  ;;  %5941 = vmatprep.subr.bf16.mxu1 %v6576_v20  ;;  %v6596_v43 = vld [vmem:[%s8468_s5 + $0x200] sm:$0xff]   ;;  %v6605_v20 = vld [vmem:[%s8468_s5 + $0x210] sm:$0xff]   ;;  %v6617_v8 = vld [vmem:[%s8468_s5 + $0x238] sm:$0xff]  }
 0x2e2   : > { %v3060_v59 = vsel %vm1689_vm4, %v3052_v24, %v3053_v60  ;;  %v3035_v37 = vadd.f32 %v6287_v7, %v5837_v12  ;;  %v3054_v4 = vrot.slane %v3030_v45, 1  ;;  %v5840_v6 = vadd.f32 %v5839_v14, %v5838_v1  ;;  %6328 = vmatpush3.bf16.msra.mxu0 %v6582_v39  ;;  %v6586_v7 = vld [vmem:[%s8468_s5 + $0x130] sm:$0xff]   ;;  %v6611_v56 = vld [vmem:[%s8468_s5 + $0x220] sm:$0xff]   ;;  %v6602_v1 = vld [vmem:[%s8468_s5 + $0x1d8] sm:$0xff]  }
 0x2e3   : > { %v3084_v46 = vadd.f32 %v3060_v59, %v7911_v21  ;;  %6310 = vmatmul.mubr.msk.bf16.gmra.mrb[148].mxu1 %vm7281_vm7, %v8031_v28  ;;  %6329 = vmatprep.subr.bf16.mxu0 %v6587_v17  ;;  %v6580_v21 = vld [vmem:[%s8468_s5 + $0xd8] sm:$0xff]   ;;  %v6616_v57 = vld [vmem:[%s8468_s5 + $0x230] sm:$0xff]   ;;  %v6595_v22 = vld [vmem:[%s8468_s5 + $0x180] sm:$0xff]  }
 0x2e4   : > { %v3055_v44 = vrot.slane %v3035_v37, 1  ;;  %v3059_v51 = vsel %vm1689_vm4, %v3053_v60, %v3054_v4  ;;  %v3038_v63 = vadd.f32 %v6288_v52, %v5840_v6  ;;  %5193 = vmatmul.mubr.msk.bf16.gmra.mrb[152].mxu0 %vm7281_vm7, %v7973_v53  ;;  %5942 = vmatpush3.bf16.msra.mxu1 %v6578_v15  ;;  %v6614_v52 = vld [vmem:[%s8468_s5 + $0x228] sm:$0xff]   ;;  %v6599_v60 = vld [vmem:[%s8468_s5 + $0x1d0] sm:$0xff]   ;;  %v6603_v45 = vld [vmem:[%s8468_s5 + $0x198] sm:$0xff]  }
 0x2e5   : > { %v3100_v30 = vmax.f32 %v3084_v46, 0.0  ;;  %v3085_v33 = vadd.f32 %v3059_v51, %v7915_v2  ;;  %5196 = vmatprep.mubr.msk.bf16.mxu0 %vm7281_vm7, %v8023_v58  ;;  %5943 = vmatprep.subr.bf16.mxu1 %v6579_v13  ;;  %v6592_v2 = vld [vmem:[%s8468_s5 + $0x170] sm:$0xff]   ;;  %v6604_v15 = vld [vmem:[%s8468_s5 + $0x1e0] sm:$0xff]   ;;  %v6607_v13 = vld [vmem:[%s8468_s5 + $0x1e8] sm:$0xff]  }
 0x2e6   : > { %v3058_v26 = vsel %vm1689_vm4, %v3054_v4, %v3055_v44  ;;  %v3056_v32 = vrot.slane %v3038_v63, 1  ;;  %6330 = vmatpush3.bf16.msra.mxu0 %v6587_v17  ;;  %v6598_v17 = vld [vmem:[%s8468_s5 + $0x188] sm:$0xff]   ;;  %v6600_v12 = vld [vmem:[%s8468_s5 + $0x190] sm:$0xff]   ;;  %v6606_v14 = vld [vmem:[%s8468_s5 + $0x1a0] sm:$0xff]  }
 0x2e7   : > { %v8065_v62 = vpack.c.bf16 %v3100_v30, %v3099_v23  ;;  %v3086_v47 = vadd.f32 %v3058_v26, %v7919_v36  ;;  %v3101_v24 = vmax.f32 %v3085_v33, 0.0  ;;  %6331 = vmatprep.subr.bf16.mxu0 %v6591_v41  ;;  %v6609_v59 = vld [vmem:[%s8468_s5 + $0x1a8] sm:$0xff]   ;;  %v6610_v37 = vld [vmem:[%s8468_s5 + $0x1f0] sm:$0xff]   ;;  %v6613_v6 = vld [vmem:[%s8468_s5 + $0x1f8] sm:$0xff]  }
 0x2e8   : > { %v3057_v49 = vsel %vm1689_vm4, %v3055_v44, %v3056_v32  ;;  %v3072_v54 = vsel %vm1689_vm4, %v3056_v32, %v3041_v19  ;;  %5944 = vmatpush3.bf16.msra.mxu1 %v6580_v21  ;;  %v6612_v4 = vld [vmem:[%s8468_s5 + $0x1b0] sm:$0xff]   ;;  %v6615_v46 = vld [vmem:[%s8468_s5 + $0x1b8] sm:$0xff]  }
 0x2e9   : > { %v3102_v36 = vmax.f32 %v3086_v47, 0.0  ;;  %v3087_v39 = vadd.f32 %v3057_v49, %v7924_v29  ;;  %v3088_v16 = vadd.f32 %v3072_v54, %v7929_v27  ;;  %6313 = vmatprep.mubr.msk.bf16.mxu1 %vm7281_vm7, %v8065_v62  ;;  %5945 = vmatprep.subr.bf16.mxu1 %v6581_v10  ;;  %v6593_v29 = vld [vmem:[%s8468_s5 + $0x178] sm:$0xff]   ;;  %v6585_v27 = vld [vmem:[%s8468_s5 + $0xe8] sm:$0xff]  }
 0x2ea   : > { %6332 = vmatpush3.bf16.msra.mxu0 %v6591_v41 }
 0x2eb   : > { %v8088_v19 = vpack.c.bf16 %v3102_v36, %v3101_v24  ;;  %v3103_v42 = vmax.f32 %v3087_v39, 0.0  ;;  %v3104_v38 = vmax.f32 %v3088_v16, 0.0  ;;  %6333 = vmatprep.subr.bf16.mxu0 %v6592_v2 }
 0x2ec   : > { %5199 = vmatmul.mubr.msk.bf16.gmra.mrb[156].mxu0 %vm7281_vm7, %v7981_v48  ;;  %5946 = vmatpush3.bf16.msra.mxu1 %v6583_v55 }
 0x2ed   : > { %v8099_v11 = vpack.c.bf16 %v3104_v38, %v3103_v42  ;;  %6314 = vmatmul.mubr.msk.bf16.gmra.mrb[152].mxu1 %vm7281_vm7, %v8088_v19  ;;  %5202 = vmatprep.mubr.msk.bf16.mxu0 %vm7281_vm7, %v8031_v28 }
 0x2ee   : > { %5947 = vmatprep.subr.bf16.mxu1 %v6584_v34  ;;  %6334 = vmatpush3.bf16.msra.mxu0 %v6592_v2 }
 0x2ef   : > { %6317 = vmatprep.mubr.msk.bf16.mxu1 %vm7281_vm7, %v8099_v11  ;;  %6335 = vmatprep.subr.bf16.mxu0 %v6593_v29 }
 0x2f0   : > { %5948 = vmatpush3.bf16.msra.mxu1 %v6585_v27 }
 0x2f1   : > { %5949 = vmatprep.subr.bf16.mxu1 %v6586_v7 }
 0x2f2   : > { %6336 = vmatpush3.bf16.msra.mxu0 %v6593_v29 }
 0x2f3   : > { %6017 = vmatprep.subr.bf16.mxu0 %v6594_v3 }
 0x2f4   : > { %5205 = vmatmul.mubr.msk.bf16.gmra.mrb[160].mxu0 %vm7281_vm7, %v8023_v58  ;;  %5950 = vmatpush3.bf16.msra.mxu1 %v6588_v18 }
 0x2f5   : > { %6318 = vmatmul.mubr.bf16.gmra.mrb[156].mxu1 %v7967_v50  ;;  %5208 = vmatprep.mubr.msk.bf16.mxu0 %vm7281_vm7, %v8065_v62 }
 0x2f6   : > { %5247 = vmatprep.mubr.msk.bf16.mxu1 %vm7281_vm7, %v7947_v61  ;;  %5951 = vmatprep.subr.bf16.mxu1 %v6589_v9 }
 0x2f8   : > { %5952 = vmatpush3.bf16.msra.mxu1 %v6590_v5 }
 0x2f9   : > { %6353 = vmatprep.subr.bf16.mxu1 %v6596_v43 }
 0x2fc   : > { %5211 = vmatmul.mubr.msk.bf16.gmra.mrb[164].mxu0 %vm7281_vm7, %v8031_v28 }
 0x2fd   : > { %3777 = vmatmul.mubr.bf16.vlgmr.msra.gmra.mrb[160].mxu1 %v7967_v50  ;;  %5214 = vmatprep.mubr.msk.bf16.mxu0 %vm7281_vm7, %v8088_v19 }
 0x2fe   : > { %5250 = vmatprep.mubr.msk.bf16.mxu1 %vm7281_vm7, %v7973_v53  ;;  %6354 = vmatpush3.bf16.msra.mxu1 %v6596_v43 }
 0x2ff   : > { %6355 = vmatprep.subr.bf16.mxu1 %v6601_v25 }
 0x302   : > { %6356 = vmatpush3.bf16.msra.mxu1 %v6601_v25 }
 0x303   : > { %6357 = vmatprep.subr.bf16.mxu1 %v6605_v20 }
 0x304   : > { %5217 = vmatmul.mubr.msk.bf16.gmra.mrb[168].mxu0 %vm7281_vm7, %v8065_v62 }
 0x305   : > { %5253 = vmatmul.mubr.msk.bf16.gmra.mrb[164].mxu1 %vm7281_vm7, %v7947_v61  ;;  %5220 = vmatprep.mubr.msk.bf16.mxu0 %vm7281_vm7, %v8099_v11 }
 0x306   : > { %5256 = vmatprep.mubr.msk.bf16.mxu1 %vm7281_vm7, %v7981_v48  ;;  %6358 = vmatpush3.bf16.msra.mxu1 %v6605_v20 }
 0x307   : > { %6359 = vmatprep.subr.bf16.mxu1 %v6608_v40 }
 0x30a   : > { %6360 = vmatpush3.bf16.msra.mxu1 %v6608_v40 }
 0x30b   : > { %6361 = vmatprep.subr.bf16.mxu1 %v6611_v56 }
 0x30c   : > { %5223 = vmatmul.mubr.msk.bf16.gmra.mrb[172].mxu0 %vm7281_vm7, %v8088_v19 }
 0x30d   : > { %5259 = vmatmul.mubr.msk.bf16.gmra.mrb[168].mxu1 %vm7281_vm7, %v7973_v53  ;;  %6337 = vmatprep.mubr.msk.bf16.mxu0 %vm7281_vm7, %v7973_v53 }
 0x30e   : > { %5262 = vmatprep.mubr.msk.bf16.mxu1 %vm7281_vm7, %v8023_v58  ;;  %6362 = vmatpush3.bf16.msra.mxu1 %v6611_v56 }
 0x30f   : > { %6363 = vmatprep.subr.bf16.mxu1 %v6614_v52 }
 0x312   : > { %6364 = vmatpush3.bf16.msra.mxu1 %v6614_v52 }
 0x313   : > { %6365 = vmatprep.subr.bf16.mxu1 %v6616_v57 }
 0x314   : > { %6338 = vmatmul.mubr.msk.bf16.vlgmr.msra.gmra.mrb[176].mxu0 %vm7281_vm7, %v7981_v48 }
 0x315   : > { %5265 = vmatmul.mubr.msk.bf16.gmra.mrb[172].mxu1 %vm7281_vm7, %v7981_v48  ;;  %6341 = vmatprep.mubr.msk.bf16.mxu0 %vm7281_vm7, %v8023_v58 }
 0x316   : > { %5268 = vmatprep.mubr.msk.bf16.mxu1 %vm7281_vm7, %v8031_v28  ;;  %6018 = vmatpush3.bf16.msra.mxu0 %v6595_v22 }
 0x317   : > { %6019 = vmatprep.subr.bf16.mxu0 %v6597_v0  ;;  %6366 = vmatpush3.bf16.msra.mxu1 %v6616_v57 }
 0x318   : > { %6367 = vmatprep.subr.bf16.mxu1 %v6617_v8 }
 0x31a   : > { %6020 = vmatpush3.bf16.msra.mxu0 %v6598_v17 }
 0x31b   : > { %6021 = vmatprep.subr.bf16.mxu0 %v6599_v60  ;;  %6368 = vmatpush3.bf16.msra.mxu1 %v6617_v8 }
 0x31c   : > { %6342 = vmatmul.mubr.msk.bf16.gmra.mrb[180].mxu0 %vm7281_vm7, %v8031_v28 }
 0x31d   : > { %5271 = vmatmul.mubr.msk.bf16.gmra.mrb[176].mxu1 %vm7281_vm7, %v8023_v58  ;;  %6345 = vmatprep.mubr.msk.bf16.mxu0 %vm7281_vm7, %v8065_v62 }
 0x31e   : > { %5274 = vmatprep.mubr.msk.bf16.mxu1 %vm7281_vm7, %v8065_v62  ;;  %6022 = vmatpush3.bf16.msra.mxu0 %v6600_v12 }
 0x31f   : > { %6023 = vmatprep.subr.bf16.mxu0 %v6602_v1 }
 0x322   : > { %6024 = vmatpush3.bf16.msra.mxu0 %v6603_v45 }
 0x323   : > { %6025 = vmatprep.subr.bf16.mxu0 %v6604_v15 }
 0x324   : > { %6346 = vmatmul.mubr.msk.bf16.gmra.mrb[184].mxu0 %vm7281_vm7, %v8088_v19 }
 0x325   : > { %5277 = vmatmul.mubr.msk.bf16.gmra.mrb[180].mxu1 %vm7281_vm7, %v8031_v28  ;;  %6349 = vmatprep.mubr.msk.bf16.mxu0 %vm7281_vm7, %v8099_v11 }
 0x326   : > { %5280 = vmatprep.mubr.msk.bf16.mxu1 %vm7281_vm7, %v8088_v19  ;;  %6026 = vmatpush3.bf16.msra.mxu0 %v6606_v14 }
 0x327   : > { %6027 = vmatprep.subr.bf16.mxu0 %v6607_v13 }
 0x32a   : > { %6028 = vmatpush3.bf16.msra.mxu0 %v6609_v59 }
 0x32b   : > { %6029 = vmatprep.subr.bf16.mxu0 %v6610_v37 }
 0x32c   : > { %6350 = vmatmul.mubr.bf16.gmra.mrb[188].mxu0 %v7967_v50 }
 0x32d   : > { %5283 = vmatmul.mubr.msk.bf16.gmra.mrb[184].mxu1 %vm7281_vm7, %v8065_v62  ;;  %5313 = vmatprep.mubr.msk.bf16.mxu0 %vm7281_vm7, %v7947_v61 }
 0x32e   : > { %5286 = vmatprep.mubr.msk.bf16.mxu1 %vm7281_vm7, %v8099_v11  ;;  %6030 = vmatpush3.bf16.msra.mxu0 %v6612_v4 }
 0x32f   : > { %6031 = vmatprep.subr.bf16.mxu0 %v6613_v6 }
 0x332   : > { %6032 = vmatpush3.bf16.msra.mxu0 %v6615_v46 }
 0x335   : > { %5289 = vmatmul.mubr.msk.bf16.gmra.mrb[188].mxu1 %vm7281_vm7, %v8088_v19  ;;  %4196 = vmatmul.mubr.bf16.vlgmr.msra.gmra.mrb[192].mxu0 %v7967_v50 }
 0x336   : > { %5316 = vmatprep.mubr.msk.bf16.mxu0 %vm7281_vm7, %v7973_v53  ;;  %6369 = vmatprep.mubr.msk.bf16.mxu1 %vm7281_vm7, %v7973_v53 }
 0x33d   : > { %5319 = vmatmul.mubr.msk.bf16.gmra.mrb[196].mxu0 %vm7281_vm7, %v7947_v61  ;;  %6370 = vmatmul.mubr.msk.bf16.vlgmr.msra.gmra.mrb[192].mxu1 %vm7281_vm7, %v7981_v48 }
 0x33e   : > { %5322 = vmatprep.mubr.msk.bf16.mxu0 %vm7281_vm7, %v7981_v48  ;;  %6373 = vmatprep.mubr.msk.bf16.mxu1 %vm7281_vm7, %v8023_v58 }
 0x345   : > { %5325 = vmatmul.mubr.msk.bf16.gmra.mrb[200].mxu0 %vm7281_vm7, %v7973_v53  ;;  %6374 = vmatmul.mubr.msk.bf16.gmra.mrb[196].mxu1 %vm7281_vm7, %v8031_v28 }
 0x346   : > { %5328 = vmatprep.mubr.msk.bf16.mxu0 %vm7281_vm7, %v8023_v58  ;;  %6377 = vmatprep.mubr.msk.bf16.mxu1 %vm7281_vm7, %v8065_v62 }
 0x34d   : > { %5331 = vmatmul.mubr.msk.bf16.gmra.mrb[204].mxu0 %vm7281_vm7, %v7981_v48  ;;  %6378 = vmatmul.mubr.msk.bf16.gmra.mrb[200].mxu1 %vm7281_vm7, %v8088_v19 }
 0x34e   : > { %5334 = vmatprep.mubr.msk.bf16.mxu0 %vm7281_vm7, %v8031_v28  ;;  %6381 = vmatprep.mubr.msk.bf16.mxu1 %vm7281_vm7, %v8099_v11 }
 0x355   : > { %5337 = vmatmul.mubr.msk.bf16.gmra.mrb[208].mxu0 %vm7281_vm7, %v8023_v58  ;;  %6382 = vmatmul.mubr.bf16.gmra.mrb[204].mxu1 %v7967_v50 }
 0x356   : > { %5340 = vmatprep.mubr.msk.bf16.mxu0 %vm7281_vm7, %v8065_v62 }
 0x35d   : > { %5343 = vmatmul.mubr.msk.bf16.gmra.mrb[212].mxu0 %vm7281_vm7, %v8031_v28 }
 0x35e   : > { %5346 = vmatprep.mubr.msk.bf16.mxu0 %vm7281_vm7, %v8088_v19 }
 0x365   : > { %5349 = vmatmul.mubr.msk.bf16.gmra.mrb[216].mxu0 %vm7281_vm7, %v8065_v62 }
 0x366   : > { %5352 = vmatprep.mubr.msk.bf16.mxu0 %vm7281_vm7, %v8099_v11 }
 0x36d   : > { %5355 = vmatmul.mubr.msk.bf16.gmra.mrb[220].mxu0 %vm7281_vm7, %v8088_v19 }
 0x3a7   : > { %v5873_v61 = vpop.f32.mrb[144].mxu0 }
 0x3a8   : > { %v5874_v50 = vpop.f32.mrb[145].mxu0 }
 0x3a9   : > { %v5875_v53 = vadd.f32 %v5874_v50, %v5873_v61  ;;  %v5876_v48 = vpop.f32.mrb[146].mxu0 }
 0x3aa   : > { %v5877_v58 = vpop.f32.mrb[147].mxu0 }
 0x3ae   : > { %v6307_v28 = vpop.f32.mrb[144].mxu1 }
 0x3af   : > { %v5879_v41 = vpop.f32.mrb[148].mxu0  ;;  %v3488_v44 = vpop.f32.mrb[145].mxu1 }
 0x3b0   : > { %v8352_v51 = vadd.f32 %v5875_v53, %v3488_v44  ;;  %v5880_v63 = vpop.f32.mrb[149].mxu0  ;;  %v6308_v21 = vpop.f32.mrb[146].mxu1 }
 0x3b1   : > { %v5881_v23 = vadd.f32 %v5880_v63, %v5879_v41  ;;  %v5882_v30 = vpop.f32.mrb[150].mxu0  ;;  %v3491_v33 = vpop.f32.mrb[147].mxu1 }
 0x3b2   : > { %v5883_v10 = vpop.f32.mrb[151].mxu0 }
 0x3b3   : > { %v8354_v26 = vadd.f32 %v6307_v28, %v5881_v23 }
 0x3b6   : > { %v6311_v31 = vpop.f32.mrb[148].mxu1 }
 0x3b7   : > { %v5885_v32 = vpop.f32.mrb[152].mxu0  ;;  %v3502_v62 = vpop.f32.mrb[149].mxu1 }
 0x3b8   : > { %v5886_v47 = vpop.f32.mrb[153].mxu0  ;;  %v6312_v24 = vpop.f32.mrb[150].mxu1 }
 0x3b9   : > { %v5887_v2 = vadd.f32 %v5886_v47, %v5885_v32  ;;  %v5888_v49 = vpop.f32.mrb[154].mxu0  ;;  %v3505_v54 = vpop.f32.mrb[151].mxu1 }
 0x3ba   : > { %v5889_v55 = vpop.f32.mrb[155].mxu0 }
 0x3bb   : > { %v8356_v36 = vadd.f32 %v5887_v2, %v3502_v62 }
 0x3bf   : > { %v5891_v39 = vpop.f32.mrb[156].mxu0 }
 0x3c0   : > { %v6315_v16 = vpop.f32.mrb[152].mxu1  ;;  %v5892_v34 = vpop.f32.mrb[157].mxu0 }
 0x3c1   : > { %v5893_v19 = vadd.f32 %v5892_v34, %v5891_v39  ;;  %v3516_v42 = vpop.f32.mrb[153].mxu1  ;;  %v5894_v38 = vpop.f32.mrb[158].mxu0 }
 0x3c2   : > { %v6316_v29 = vpop.f32.mrb[154].mxu1  ;;  %v5895_v27 = vpop.f32.mrb[159].mxu0 }
 0x3c3   : > { %v8358_v11 = vadd.f32 %v6311_v31, %v5893_v19  ;;  %v3519_v7 = vpop.f32.mrb[155].mxu1  ;;  %v8371_v27 = vld [vmem:[%s8469_s6] ss:$0 sm:$0xff] }
 0x3c7   : > { %v5897_v3 = vpop.f32.mrb[160].mxu0 }
 0x3c8   : > { %v5898_v18 = vpop.f32.mrb[161].mxu0  ;;  %v6319_v9 = vpop.f32.mrb[156].mxu1 }
 0x3c9   : > { %v5899_v5 = vadd.f32 %v5898_v18, %v5897_v3  ;;  %v5900_v43 = vpop.f32.mrb[162].mxu0  ;;  %v3530_v25 = vpop.f32.mrb[157].mxu1 }
 0x3ca   : > { %v5901_v20 = vpop.f32.mrb[163].mxu0  ;;  %v6320_v40 = vpop.f32.mrb[158].mxu1  ;;  %v3544_v43 = vadd.f32 %v8371_v27, %v8354_v26 }
 0x3cb   : > { %v8360_v56 = vadd.f32 %v5899_v5, %v3516_v42  ;;  %v3533_v52 = vpop.f32.mrb[159].mxu1  ;;  %v3543_v40 = vadd.f32 %v8371_v27, %v8352_v51 }
 0x3cf   : > { %v5903_v57 = vpop.f32.mrb[164].mxu0 }
 0x3d0   : > { %v5904_v22 = vpop.f32.mrb[165].mxu0  ;;  %v5953_v0 = vpop.f32.mrb[160].mxu1 }
 0x3d1   : > { %v5905_v8 = vadd.f32 %v5904_v22, %v5903_v57  ;;  %v5906_v17 = vpop.f32.mrb[166].mxu0  ;;  %v5954_v60 = vpop.f32.mrb[161].mxu1 }
 0x3d2   : > { %v5907_v12 = vpop.f32.mrb[167].mxu0  ;;  %v5955_v1 = vadd.f32 %v5954_v60, %v5953_v0  ;;  %v5956_v45 = vpop.f32.mrb[162].mxu1 }
 0x3d3   : > { %v8362_v15 = vadd.f32 %v6315_v16, %v5905_v8  ;;  %v5957_v14 = vpop.f32.mrb[163].mxu1 }
 0x3d4   : > { %v5958_v13 = vadd.f32 %v5957_v14, %v5956_v45 }
 0x3d7   : > { %v5909_v59 = vpop.f32.mrb[168].mxu0 }
 0x3d8   : > { %v5959_v37 = vpop.f32.mrb[164].mxu1  ;;  %v5910_v4 = vpop.f32.mrb[169].mxu0 }
 0x3d9   : > { %v5911_v6 = vadd.f32 %v5910_v4, %v5909_v59  ;;  %v5960_v46 = vpop.f32.mrb[165].mxu1  ;;  %v5912_v61 = vpop.f32.mrb[170].mxu0 }
 0x3da   : > { %v5961_v50 = vadd.f32 %v5960_v46, %v5959_v37  ;;  %v5962_v53 = vpop.f32.mrb[166].mxu1  ;;  %v5913_v48 = vpop.f32.mrb[171].mxu0 }
 0x3db   : > { %v8364_v58 = vadd.f32 %v5911_v6, %v3530_v25  ;;  %v5963_v28 = vpop.f32.mrb[167].mxu1 }
 0x3dc   : > { %v5964_v41 = vadd.f32 %v5963_v28, %v5962_v53  ;;  %v3545_v28 = vadd.f32 %v8371_v27, %v8356_v36 }
 0x3df   : > { %v5915_v44 = vpop.f32.mrb[172].mxu0 }
 0x3e0   : > { %v5965_v63 = vpop.f32.mrb[168].mxu1  ;;  %v5916_v21 = vpop.f32.mrb[173].mxu0 }
 0x3e1   : > { %v5917_v23 = vadd.f32 %v5916_v21, %v5915_v44  ;;  %v5966_v30 = vpop.f32.mrb[169].mxu1  ;;  %v5918_v33 = vpop.f32.mrb[174].mxu0 }
 0x3e2   : > { %v5967_v10 = vadd.f32 %v5966_v30, %v5965_v63  ;;  %v5968_v31 = vpop.f32.mrb[170].mxu1  ;;  %v5919_v32 = vpop.f32.mrb[175].mxu0 }
 0x3e3   : > { %v8366_v62 = vadd.f32 %v6319_v9, %v5917_v23  ;;  %v5969_v47 = vpop.f32.mrb[171].mxu1 }
 0x3e4   : > { %v5970_v24 = vadd.f32 %v5969_v47, %v5968_v31 }
 0x3e7   : > { %v6339_v2 = vpop.f32.mrb[176].mxu0 }
 0x3e8   : > { %v5971_v49 = vpop.f32.mrb[172].mxu1  ;;  %v3884_v54 = vadd.f32 %v6339_v2, %v5961_v50  ;;  %v3875_v55 = vpop.f32.mrb[177].mxu0  ;;  %v3546_v50 = vadd.f32 %v8371_v27, %v8358_v11 }
 0x3e9   : > { %v5972_v39 = vpop.f32.mrb[173].mxu1  ;;  %v3876_v16 = vadd.f32 %v5955_v1, %v3875_v55  ;;  %v6340_v34 = vpop.f32.mrb[178].mxu0 }
 0x3ea   : > { %v5973_v19 = vadd.f32 %v5972_v39, %v5971_v49  ;;  %v5974_v42 = vpop.f32.mrb[174].mxu1  ;;  %v3887_v38 = vadd.f32 %v6340_v34, %v5964_v41  ;;  %v3878_v29 = vpop.f32.mrb[179].mxu0  ;;  %v3940_v18 = vrot.slane %v3884_v54, 1 }
 0x3eb   : > { %v5975_v7 = vpop.f32.mrb[175].mxu1  ;;  %v3879_v3 = vadd.f32 %v5958_v13, %v3878_v29  ;;  %v3938_v25 = vrot.slane %v3876_v16, 1  ;;  %v3547_v16 = vadd.f32 %v8371_v27, %v8360_v56 }
 0x3ec   : > { %v3941_v9 = vrot.slane %v3887_v38, 1  ;;  %v5976_v5 = vadd.f32 %v5975_v7, %v5974_v42 }
 0x3ed   : > { %v3939_v20 = vrot.slane %v3879_v3, 1 }
 0x3ee   : > { %v3960_v52 = vsel %vm1689_vm4, %v3940_v18, %v3941_v9  ;;  %v3548_v9 = vadd.f32 %v8371_v27, %v8362_v15  ;;  %v3549_v15 = vadd.f32 %v8371_v27, %v8364_v58 }
 0x3ef   : > { %v8379_v57 = vadd.f32 %v3960_v52, %v3544_v43  ;;  %v3961_v22 = vsel %vm1689_vm4, %v3938_v25, %v3939_v20  ;;  %v6343_v0 = vpop.f32.mrb[180].mxu0 }
 0x3f0   : > { %v8383_v8 = vadd.f32 %v3961_v22, %v3543_v40  ;;  %v5977_v17 = vpop.f32.mrb[176].mxu1  ;;  %v3900_v60 = vadd.f32 %v6343_v0, %v5973_v19  ;;  %v3891_v12 = vpop.f32.mrb[181].mxu0 }
 0x3f1   : > { %v5978_v26 = vpop.f32.mrb[177].mxu1  ;;  %v3892_v1 = vadd.f32 %v5967_v10, %v3891_v12  ;;  %v6344_v45 = vpop.f32.mrb[182].mxu0 }
 0x3f2   : > { %v5979_v14 = vadd.f32 %v5978_v26, %v5977_v17  ;;  %v5980_v13 = vpop.f32.mrb[178].mxu1  ;;  %v3903_v51 = vadd.f32 %v6344_v45, %v5976_v5  ;;  %v3894_v59 = vpop.f32.mrb[183].mxu0  ;;  %v3944_v6 = vrot.slane %v3900_v60, 1 }
 0x3f3   : > { %v5981_v37 = vpop.f32.mrb[179].mxu1  ;;  %v3895_v4 = vadd.f32 %v5970_v24, %v3894_v59  ;;  %v3942_v53 = vrot.slane %v3892_v1, 1 }
 0x3f4   : > { %v3945_v46 = vrot.slane %v3903_v51, 1  ;;  %v5982_v61 = vadd.f32 %v5981_v37, %v5980_v13 }
 0x3f5   : > { %v3943_v48 = vrot.slane %v3895_v4, 1 }
 0x3f6   : > { %v3958_v41 = vsel %vm1689_vm4, %v3944_v6, %v3945_v46 }
 0x3f7   : > { %v8391_v44 = vadd.f32 %v3958_v41, %v3546_v50  ;;  %v3959_v63 = vsel %vm1689_vm4, %v3942_v53, %v3943_v48  ;;  %v6347_v21 = vpop.f32.mrb[184].mxu0 }
 0x3f8   : > { %v8395_v23 = vadd.f32 %v3959_v63, %v3545_v28  ;;  %v5983_v30 = vpop.f32.mrb[180].mxu1  ;;  %v3907_v33 = vpop.f32.mrb[185].mxu0 }
 0x3f9   : > { %v5984_v10 = vpop.f32.mrb[181].mxu1  ;;  %v3908_v11 = vadd.f32 %v5979_v14, %v3907_v33  ;;  %v6348_v31 = vpop.f32.mrb[186].mxu0  ;;  %v3550_v33 = vadd.f32 %v8371_v27, %v8366_v62 }
 0x3fa   : > { %v5985_v32 = vadd.f32 %v5984_v10, %v5983_v30  ;;  %v5986_v47 = vpop.f32.mrb[182].mxu1  ;;  %v3910_v24 = vpop.f32.mrb[187].mxu0 }
 0x3fb   : > { %v5987_v36 = vpop.f32.mrb[183].mxu1  ;;  %v3911_v2 = vadd.f32 %v5982_v61, %v3910_v24  ;;  %v3946_v55 = vrot.slane %v3908_v11, 1 }
 0x3fc   : > { %v3916_v49 = vadd.f32 %v6347_v21, %v5985_v32  ;;  %v5988_v54 = vadd.f32 %v5987_v36, %v5986_v47 }
 0x3fd   : > { %v3947_v39 = vrot.slane %v3911_v2, 1 }
 0x3fe   : > { %v3919_v34 = vadd.f32 %v6348_v31, %v5988_v54  ;;  %v3948_v38 = vrot.slane %v3916_v49, 1 }
 0x3ff   : > { %v3957_v19 = vsel %vm1689_vm4, %v3946_v55, %v3947_v39  ;;  %v6351_v42 = vpop.f32.mrb[188].mxu0 }
 0x400   : > { %v3949_v29 = vrot.slane %v3919_v34, 1  ;;  %v8401_v7 = vadd.f32 %v3957_v19, %v3547_v16  ;;  %v5989_v3 = vpop.f32.mrb[184].mxu1  ;;  %v3923_v18 = vpop.f32.mrb[189].mxu0 }
 0x401   : > { %v5990_v5 = vpop.f32.mrb[185].mxu1  ;;  %v6352_v43 = vpop.f32.mrb[190].mxu0 }
 0x402   : > { %v3956_v25 = vsel %vm1689_vm4, %v3948_v38, %v3949_v29  ;;  %v5991_v56 = vadd.f32 %v5990_v5, %v5989_v3  ;;  %v5992_v20 = vpop.f32.mrb[186].mxu1  ;;  %v3926_v40 = vpop.f32.mrb[191].mxu0 }
 0x403   : > { %v8407_v52 = vadd.f32 %v3956_v25, %v3548_v9  ;;  %v5993_v22 = vpop.f32.mrb[187].mxu1 }
 0x404   : > { %v3924_v0 = vadd.f32 %v5991_v56, %v3923_v18  ;;  %v5994_v17 = vadd.f32 %v5993_v22, %v5992_v20 }
 0x406   : > { %v3927_v60 = vadd.f32 %v5994_v17, %v3926_v40  ;;  %v3950_v12 = vrot.slane %v3924_v0, 1 }
 0x408   : > { %v3951_v26 = vrot.slane %v3927_v60, 1  ;;  %v5995_v1 = vpop.f32.mrb[188].mxu1  ;;  %v6033_v45 = vpop.f32.mrb[192].mxu0 }
 0x409   : > { %v5996_v14 = vpop.f32.mrb[189].mxu1  ;;  %v6034_v13 = vpop.f32.mrb[193].mxu0 }
 0x40a   : > { %v3955_v51 = vsel %vm1689_vm4, %v3950_v12, %v3951_v26  ;;  %v5997_v59 = vadd.f32 %v5996_v14, %v5995_v1  ;;  %v6035_v37 = vadd.f32 %v6034_v13, %v6033_v45  ;;  %v5998_v4 = vpop.f32.mrb[190].mxu1  ;;  %v6036_v6 = vpop.f32.mrb[194].mxu0 }
 0x40b   : > { %v8413_v46 = vadd.f32 %v3955_v51, %v3549_v15  ;;  %v5999_v61 = vpop.f32.mrb[191].mxu1  ;;  %v6037_v50 = vpop.f32.mrb[195].mxu0 }
 0x40c   : > { %v3932_v53 = vadd.f32 %v6351_v42, %v5997_v59  ;;  %v6000_v48 = vadd.f32 %v5999_v61, %v5998_v4  ;;  %v6038_v28 = vadd.f32 %v6037_v50, %v6036_v6 }
 0x40e   : > { %v3935_v41 = vadd.f32 %v6352_v43, %v6000_v48  ;;  %v3952_v63 = vrot.slane %v3932_v53, 1 }
 0x410   : > { %v3953_v21 = vrot.slane %v3935_v41, 1  ;;  %v6039_v58 = vpop.f32.mrb[196].mxu0  ;;  %v6371_v30 = vpop.f32.mrb[192].mxu1 }
 0x411   : > { %v6040_v10 = vpop.f32.mrb[197].mxu0  ;;  %v4294_v11 = vpop.f32.mrb[193].mxu1 }
 0x412   : > { %v3954_v31 = vsel %vm1689_vm4, %v3952_v63, %v3953_v21  ;;  %v6041_v32 = vadd.f32 %v6040_v10, %v6039_v58  ;;  %v4295_v47 = vadd.f32 %v6035_v37, %v4294_v11  ;;  %v6042_v24 = vpop.f32.mrb[198].mxu0  ;;  %v6372_v36 = vpop.f32.mrb[194].mxu1 }
 0x413   : > { %v8419_v2 = vadd.f32 %v3954_v31, %v3550_v33  ;;  %v6043_v49 = vpop.f32.mrb[199].mxu0  ;;  %v4297_v54 = vpop.f32.mrb[195].mxu1 }
 0x414   : > { %v4303_v55 = vadd.f32 %v6371_v30, %v6041_v32  ;;  %v6044_v39 = vadd.f32 %v6043_v49, %v6042_v24  ;;  %v4298_v16 = vadd.f32 %v6038_v28, %v4297_v54  ;;  %v4357_v62 = vrot.slane %v4295_v47, 2 }
 0x416   : > { %v4306_v27 = vadd.f32 %v6372_v36, %v6044_v39  ;;  %v4358_v34 = vrot.slane %v4298_v16, 2  ;;  %v4359_v19 = vrot.slane %v4303_v55, 2 }
 0x418   : > { %v4360_v42 = vrot.slane %v4306_v27, 2  ;;  %v4381_v38 = vsel %vm4373_vm8, %v4357_v62, %v4358_v34  ;;  %v6045_v29 = vpop.f32.mrb[200].mxu0  ;;  %v6375_v3 = vpop.f32.mrb[196].mxu1 }
 0x419   : > { %v4382_v18 = vadd.f32 %v4381_v38, %v8383_v8  ;;  %v6046_v9 = vpop.f32.mrb[201].mxu0  ;;  %v4310_v5 = vpop.f32.mrb[197].mxu1 }
 0x41a   : > { %v4380_v43 = vsel %vm4373_vm8, %v4359_v19, %v4360_v42  ;;  %v6047_v25 = vadd.f32 %v6046_v9, %v6045_v29  ;;  %v6048_v56 = vpop.f32.mrb[202].mxu0  ;;  %v6376_v20 = vpop.f32.mrb[198].mxu1 }
 0x41b   : > { %v4383_v40 = vadd.f32 %v4380_v43, %v8379_v57  ;;  %4390 = vst [vmem:[%s8426_s8] sm:$0xff] %v4382_v18  ;;  %v6049_v22 = vpop.f32.mrb[203].mxu0  ;;  %v4313_v0 = vpop.f32.mrb[199].mxu1 }
 0x41c   : > { %v4311_v17 = vadd.f32 %v6047_v25, %v4310_v5  ;;  %v6050_v60 = vadd.f32 %v6049_v22, %v6048_v56 }
 0x41d   : > { %4391 = vst [vmem:[%s8426_s8 + $0x8] sm:$0xff] %v4383_v40 }
 0x41e   : > { %v4314_v12 = vadd.f32 %v6050_v60, %v4313_v0  ;;  %v4361_v26 = vrot.slane %v4311_v17, 2 }
 0x420   : > { %v4362_v8 = vrot.slane %v4314_v12, 2  ;;  %v6051_v1 = vpop.f32.mrb[204].mxu0  ;;  %v6379_v45 = vpop.f32.mrb[200].mxu1 }
 0x421   : > { %v6052_v15 = vpop.f32.mrb[205].mxu0  ;;  %v4326_v14 = vpop.f32.mrb[201].mxu1 }
 0x422   : > { %v4379_v13 = vsel %vm4373_vm8, %v4361_v26, %v4362_v8  ;;  %v6053_v51 = vadd.f32 %v6052_v15, %v6051_v1  ;;  %v6054_v59 = vpop.f32.mrb[206].mxu0  ;;  %v6380_v57 = vpop.f32.mrb[202].mxu1 }
 0x423   : > { %v4384_v37 = vadd.f32 %v4379_v13, %v8395_v23  ;;  %v6055_v4 = vpop.f32.mrb[207].mxu0  ;;  %v4329_v6 = vpop.f32.mrb[203].mxu1 }
 0x424   : > { %v4319_v61 = vadd.f32 %v6375_v3, %v6053_v51  ;;  %v6056_v50 = vadd.f32 %v6055_v4, %v6054_v59 }
 0x425   : > { %4392 = vst [vmem:[%s8426_s8 + $0x10] sm:$0xff] %v4384_v37 }
 0x426   : > { %v4322_v53 = vadd.f32 %v6376_v20, %v6056_v50  ;;  %v4363_v48 = vrot.slane %v4319_v61, 2 }
 0x428   : > { %v4364_v28 = vrot.slane %v4322_v53, 2  ;;  %v6057_v41 = vpop.f32.mrb[208].mxu0  ;;  %v6383_v63 = vpop.f32.mrb[204].mxu1 }
 0x429   : > { %v6058_v21 = vpop.f32.mrb[209].mxu0  ;;  %v4342_v58 = vpop.f32.mrb[205].mxu1 }
 0x42a   : > { %v4378_v30 = vsel %vm4373_vm8, %v4363_v48, %v4364_v28  ;;  %v6059_v33 = vadd.f32 %v6058_v21, %v6057_v41  ;;  %v6060_v10 = vpop.f32.mrb[210].mxu0  ;;  %v6384_v11 = vpop.f32.mrb[206].mxu1 }
 0x42b   : > { %v4385_v23 = vadd.f32 %v4378_v30, %v8391_v44  ;;  %v6061_v31 = vpop.f32.mrb[211].mxu0  ;;  %v4345_v32 = vpop.f32.mrb[207].mxu1 }
 0x42c   : > { %v4327_v47 = vadd.f32 %v6059_v33, %v4326_v14  ;;  %v6062_v24 = vadd.f32 %v6061_v31, %v6060_v10 }
 0x42d   : > { %4393 = vst [vmem:[%s8426_s8 + $0x18] sm:$0xff] %v4385_v23 }
 0x42e   : > { %v4330_v36 = vadd.f32 %v6062_v24, %v4329_v6  ;;  %v4365_v49 = vrot.slane %v4327_v47, 2 }
 0x430   : > { %v4366_v54 = vrot.slane %v4330_v36, 2  ;;  %v6063_v55 = vpop.f32.mrb[212].mxu0 }
 0x431   : > { %v6064_v39 = vpop.f32.mrb[213].mxu0 }
 0x432   : > { %v4377_v16 = vsel %vm4373_vm8, %v4365_v49, %v4366_v54  ;;  %v6065_v62 = vadd.f32 %v6064_v39, %v6063_v55  ;;  %v6066_v27 = vpop.f32.mrb[214].mxu0 }
 0x433   : > { %v4386_v34 = vadd.f32 %v4377_v16, %v8401_v7  ;;  %v6067_v19 = vpop.f32.mrb[215].mxu0 }
 0x434   : > { %v4335_v44 = vadd.f32 %v6379_v45, %v6065_v62  ;;  %v6068_v42 = vadd.f32 %v6067_v19, %v6066_v27 }
 0x435   : > { %4394 = vst [vmem:[%s8426_s8 + $0x20] sm:$0xff] %v4386_v34 }
 0x436   : > { %v4338_v38 = vadd.f32 %v6380_v57, %v6068_v42  ;;  %v4367_v29 = vrot.slane %v4335_v44, 2 }
 0x438   : > { %v4368_v3 = vrot.slane %v4338_v38, 2  ;;  %v6069_v18 = vpop.f32.mrb[216].mxu0 }
 0x439   : > { %v6070_v9 = vpop.f32.mrb[217].mxu0 }
 0x43a   : > { %v4376_v5 = vsel %vm4373_vm8, %v4367_v29, %v4368_v3  ;;  %v6071_v43 = vadd.f32 %v6070_v9, %v6069_v18  ;;  %v6072_v25 = vpop.f32.mrb[218].mxu0 }
 0x43b   : > { %v4387_v56 = vadd.f32 %v4376_v5, %v8407_v52  ;;  %v6073_v20 = vpop.f32.mrb[219].mxu0 }
 0x43c   : > { %v6074_v7 = vadd.f32 %v6073_v20, %v6072_v25  ;;  %v4343_v40 = vadd.f32 %v6071_v43, %v4342_v58 }
 0x43d   : > { %4395 = vst [vmem:[%s8426_s8 + $0x28] sm:$0xff] %v4387_v56 }
 0x43e   : > { %v4346_v22 = vadd.f32 %v6074_v7, %v4345_v32  ;;  %v4369_v0 = vrot.slane %v4343_v40, 2 }
 0x440   : > { %v4370_v17 = vrot.slane %v4346_v22, 2  ;;  %v6075_v60 = vpop.f32.mrb[220].mxu0 }
 0x441   : > { %v6076_v12 = vpop.f32.mrb[221].mxu0 }
 0x442   : > { %v4375_v26 = vsel %vm4373_vm8, %v4369_v0, %v4370_v17  ;;  %v6077_v8 = vadd.f32 %v6076_v12, %v6075_v60  ;;  %v6078_v1 = vpop.f32.mrb[222].mxu0 }
 0x443   : > { %v4388_v45 = vadd.f32 %v4375_v26, %v8413_v46  ;;  %v6079_v15 = vpop.f32.mrb[223].mxu0 }
 0x444   : > { %v4351_v52 = vadd.f32 %v6383_v63, %v6077_v8  ;;  %v6080_v14 = vadd.f32 %v6079_v15, %v6078_v1 }
 0x445   : > { %4396 = vst [vmem:[%s8426_s8 + $0x30] sm:$0xff] %v4388_v45 }
 0x446   : > { %v4354_v13 = vadd.f32 %v6384_v11, %v6080_v14  ;;  %v4371_v51 = vrot.slane %v4351_v52, 2 }
 0x448   : > { %v4372_v59 = vrot.slane %v4354_v13, 2 }
 0x44a   : > { %v4374_v57 = vsel %vm4373_vm8, %v4371_v51, %v4372_v59 }
 0x44b   : > { %v4389_v37 = vadd.f32 %v4374_v57, %v8419_v2 }
 0x44d   : > { %4397 = vst [vmem:[%s8426_s8 + $0x38] sm:$0xff] %v4389_v37 }
 0x44e PF: > { %s17_s24 = sadd.s32 1, %s6627_s24  }
 0x44f   : > { %p14_p4 = scmp.ge.s32.totalorder %s17_s24, 4  }
 0x451   :  { %16 = sbr.rel (!%p14_p4) target bundleno = 1 (0x1), region = 92 }

</bundles_post_ra>
